<compile_context>
chip_gen: v7x
topology: tpu7x:2x2x1
jax: 0.10.0
libtpu: 0.0.40
codegen_flags: <defaults>
</compile_context>

<pallas_src>
import jax
import jax.numpy as jnp
from jax import lax
from jax.experimental import pallas as pl
from jax.experimental.pallas import tpu as pltpu

D = 256       # style / embedding dim (module: style_features is [num_words, 256])
S = 256       # synthetic audio samples emitted per phoneme
TP = 512      # phonemes per grid step (amortizes per-step pipeline overhead)
VOCAB = 64    # synthetic phoneme vocabulary size


def synth_kernel(word_ids_ref, phon_ids_ref,      # (TP, 1) int32, VMEM
                 style_ref, emb_ref, w_ref,       # VMEM tables (constant block idx)
                 audio_ref, voice_ref):           # VMEM outputs (per-tile blocks)
    tp = word_ids_ref.shape[0]
    n_words = style_ref.shape[0]
    vocab = emb_ref.shape[0]

    wid = word_ids_ref[...]                       # (TP, 1)
    pid = phon_ids_ref[...]                       # (TP, 1)

    # Vectorized row gathers as one-hot matmuls on the MXU: each one-hot row
    # selects exactly one table row.
    # TODO(synk): at realistic word counts (thousands of rows) replace this
    # O(TP * n_words) one-hot with scalar-prefetched word ids in SMEM plus a
    # manual DMA row-gather from an HBM-resident (memory_space=pl.ANY) style
    # table, so the gather is O(TP * D) and the table never occupies VMEM.
    w_onehot = (lax.broadcasted_iota(jnp.int32, (tp, n_words), 1) == wid
                ).astype(jnp.float32)
    p_onehot = (lax.broadcasted_iota(jnp.int32, (tp, vocab), 1) == pid
                ).astype(jnp.float32)

    style = jnp.dot(w_onehot, style_ref[...], preferred_element_type=jnp.float32)
    emb = jnp.dot(p_onehot, emb_ref[...], preferred_element_type=jnp.float32)

    # torch.stack(style_vectors) equivalent -- written directly, no scratch copy.
    voice_ref[...] = style

    # Synthetic "generator": bf16 MXU matmul (full rate on v6e/v7x), f32
    # accumulate; tanh stays in f32 (no bf16 VPU/EUP on v5e) and the result is
    # cast to bf16 only on store to halve audio writeback traffic.
    h = (emb + style).astype(jnp.bfloat16)
    acc = jnp.dot(h, w_ref[...], preferred_element_type=jnp.float32)
    audio_ref[...] = jnp.tanh(acc).astype(audio_ref.dtype)


def kokoro_synthesize(word_ids, phon_ids, style_features, emb_table, w_dec):
    P = word_ids.shape[0]
    assert P % TP == 0, "pad phoneme count to a multiple of TP"
    n_words = style_features.shape[0]

    # Pad the word/style table to a sublane multiple; one-hot indices never
    # touch the padded rows so results are unchanged.
    n_words_pad = ((n_words + 7) // 8) * 8
    style_padded = jnp.pad(style_features, ((0, n_words_pad - n_words), (0, 0)))

    V = emb_table.shape[0]
    w_bf16 = w_dec.astype(jnp.bfloat16)           # bf16 MXU operand, half the bytes
    word_ids2d = word_ids.reshape(P, 1).astype(jnp.int32)
    phon_ids2d = phon_ids.reshape(P, 1).astype(jnp.int32)

    # Constant-block-index tables: DMA'd once, single pipeline buffer.
    def table_spec(shape):
        return pl.BlockSpec(shape, lambda i: (0, 0), pipeline_mode=pl.Buffered(1))

    audio, voice = pl.pallas_call(
        synth_kernel,
        out_shape=(jax.ShapeDtypeStruct((P, S), jnp.bfloat16),   # bf16 audio store
                   jax.ShapeDtypeStruct((P, D), jnp.float32)),
        grid_spec=pltpu.PrefetchScalarGridSpec(
            num_scalar_prefetch=0,
            grid=(P // TP,),
            in_specs=[
                pl.BlockSpec((TP, 1), lambda i: (i, 0)),   # word ids tile
                pl.BlockSpec((TP, 1), lambda i: (i, 0)),   # phoneme ids tile
                table_spec((n_words_pad, D)),              # style table
                table_spec((V, D)),                        # phoneme embeddings
                table_spec((D, S)),                        # decoder W (bf16)
            ],
            out_specs=[
                pl.BlockSpec((TP, S), lambda i: (i, 0)),   # audio rows (bf16)
                pl.BlockSpec((TP, D), lambda i: (i, 0)),   # voice rows (f32)
            ],
        ),
        compiler_params=pltpu.CompilerParams(
            dimension_semantics=("parallel",)),  # independent tiles -> both TCs on v7x
    )(word_ids2d, phon_ids2d, style_padded, emb_table, w_bf16)
    return audio, voice


# ---------------- glue: deterministic stand-ins for KPipeline text ops -------

def split_words(text):
    # TODO(synk): KPipeline.split_words / phonemize are external string-processing
    # components of Kokoro; deterministic synthetic stand-ins are used here.
    return text.lower().split()


def phonemize(word):
    return [(ord(c) - ord('a')) % VOCAB for c in word if c.isalpha()]


if __name__ == "__main__":
    key = jax.random.PRNGKey(0)
    k1, k2, k3 = jax.random.split(key, 3)

    text = "hello world from kokoro"
    words = split_words(text)
    num_words = len(words)

    # Inputs / deterministic synthetic parameters
    style_features = jax.random.normal(k1, (num_words, D), jnp.float32)
    emb_table = jax.random.normal(k2, (VOCAB, D), jnp.float32) * 0.05
    w_dec = jax.random.normal(k3, (D, S), jnp.float32) * 0.02

    # text -> (phoneme ids, per-phoneme word index) exactly like the PyTorch loop
    phon_ids, word_ids = [], []
    for widx, w in enumerate(words):
        for pid in phonemize(w):
            phon_ids.append(pid)
            word_ids.append(widx)

    # Pad to an EVEN number of TP-row tiles so the parallel grid axis has at
    # least 2 steps (keeps both v7x TensorCores busy; harmless on v5e/v6e).
    P_real = len(phon_ids)
    n_tiles = max(2, -(-P_real // TP))
    if n_tiles % 2:
        n_tiles += 1
    P_pad = n_tiles * TP
    phon_ids_arr = jnp.asarray(phon_ids + [0] * (P_pad - P_real), jnp.int32)
    word_ids_arr = jnp.asarray(word_ids + [0] * (P_pad - P_real), jnp.int32)

    audio_rows, voice_tensor = kokoro_synthesize(
        word_ids_arr, phon_ids_arr, style_features, emb_table, w_dec)
    jax.block_until_ready((audio_rows, voice_tensor))

    # Padded rows are valid-but-meaningless; slice them off like the module's
    # consumer would.
    audio = audio_rows[:P_real].astype(jnp.float32).reshape(-1)   # concatenated audio
    voice_tensor = voice_tensor[:P_real]                          # == torch.stack(style_vectors)

    # reference check in plain JAX (f32 reference; audio tolerance covers the
    # bf16 decoder operands and the bf16 audio store)
    ref_voice = style_features[word_ids_arr[:P_real]]
    ref_h = emb_table[phon_ids_arr[:P_real]] + ref_voice
    ref_audio = jnp.tanh(ref_h @ w_dec).reshape(-1)
    assert jnp.allclose(voice_tensor, ref_voice, atol=1e-5)
    assert jnp.allclose(audio, ref_audio, atol=2e-2)

    print("KERNEL_OK")
</pallas_src>

<mosaic_0001>
module attributes {stable_mosaic.version = 11 : i64} {
  func.func @synth_kernel(%arg0: i32, %arg1: memref<512x1xi32, #tpu.memory_space<vmem>>, %arg2: memref<512x1xi32, #tpu.memory_space<vmem>>, %arg3: memref<8x256xf32, #tpu.memory_space<vmem>>, %arg4: memref<64x256xf32, #tpu.memory_space<vmem>>, %arg5: memref<256x256xbf16, #tpu.memory_space<vmem>>, %arg6: memref<512x256xbf16, #tpu.memory_space<vmem>>, %arg7: memref<512x256xf32, #tpu.memory_space<vmem>>) attributes {dimension_semantics = [#tpu.dimension_semantics<parallel>], iteration_bounds = array<i64: 2>, scalar_prefetch = 0 : i64, scratch_operands = 0 : i64, tpu.core_type = #tpu.core_type<tc>, window_params = [{transform_indices = @transform_0, window_bounds = array<i64: 512, 1>}, {transform_indices = @transform_1, window_bounds = array<i64: 512, 1>}, {pipeline_mode = #tpu.pipeline_mode<synchronous>, transform_indices = @transform_2, window_bounds = array<i64: 8, 256>}, {pipeline_mode = #tpu.pipeline_mode<synchronous>, transform_indices = @transform_3, window_bounds = array<i64: 64, 256>}, {pipeline_mode = #tpu.pipeline_mode<synchronous>, transform_indices = @transform_4, window_bounds = array<i64: 256, 256>}, {transform_indices = @transform_5, window_bounds = array<i64: 512, 256>}, {transform_indices = @transform_6, window_bounds = array<i64: 512, 256>}]} {
    %c0 = arith.constant 0 : index
    %c0_0 = arith.constant 0 : index
    %0 = vector.load %arg1[%c0, %c0_0] : memref<512x1xi32, #tpu.memory_space<vmem>>, vector<512x1xi32>
    %c0_1 = arith.constant 0 : index
    %c0_2 = arith.constant 0 : index
    %1 = vector.load %arg2[%c0_1, %c0_2] : memref<512x1xi32, #tpu.memory_space<vmem>>, vector<512x1xi32>
    %2 = tpu.iota {dimensions = array<i32: 1>} : vector<512x8xi32>
    %3 = vector.broadcast %0 : vector<512x1xi32> to vector<512x8xi32>
    %4 = arith.cmpi eq, %2, %3 : vector<512x8xi32>
    %5 = arith.extui %4 : vector<512x8xi1> to vector<512x8xi32>
    %6 = arith.sitofp %5 : vector<512x8xi32> to vector<512x8xf32>
    %7 = tpu.iota {dimensions = array<i32: 1>} : vector<512x64xi32>
    %8 = vector.broadcast %1 : vector<512x1xi32> to vector<512x64xi32>
    %9 = arith.cmpi eq, %7, %8 : vector<512x64xi32>
    %10 = arith.extui %9 : vector<512x64xi1> to vector<512x64xi32>
    %11 = arith.sitofp %10 : vector<512x64xi32> to vector<512x64xf32>
    %c0_3 = arith.constant 0 : index
    %c0_4 = arith.constant 0 : index
    %12 = vector.load %arg3[%c0_3, %c0_4] : memref<8x256xf32, #tpu.memory_space<vmem>>, vector<8x256xf32>
    %cst = arith.constant dense<0.000000e+00> : vector<512x256xf32>
    %13 = tpu.matmul %6, %12, %cst {dimension_numbers = #tpu.dot_dimension_numbers<[1], [0], [0], [1], [0, 0, 1, 1], [], []>} : vector<512x8xf32>, vector<8x256xf32>, vector<512x256xf32> -> vector<512x256xf32>
    %c0_5 = arith.constant 0 : index
    %c0_6 = arith.constant 0 : index
    %14 = vector.load %arg4[%c0_5, %c0_6] : memref<64x256xf32, #tpu.memory_space<vmem>>, vector<64x256xf32>
    %cst_7 = arith.constant dense<0.000000e+00> : vector<512x256xf32>
    %15 = tpu.matmul %11, %14, %cst_7 {dimension_numbers = #tpu.dot_dimension_numbers<[1], [0], [0], [1], [0, 0, 1, 1], [], []>} : vector<512x64xf32>, vector<64x256xf32>, vector<512x256xf32> -> vector<512x256xf32>
    %c0_8 = arith.constant 0 : index
    %c0_9 = arith.constant 0 : index
    %16 = vector.load %arg7[%c0_8, %c0_9] : memref<512x256xf32, #tpu.memory_space<vmem>>, vector<512x256xf32>
    tpu.vector_store %arg7[%c0_8, %c0_9], %13 {strides = array<i32>} : memref<512x256xf32, #tpu.memory_space<vmem>>, vector<512x256xf32>,
    %17 = arith.addf %15, %13 : vector<512x256xf32>
    %18 = arith.truncf %17 : vector<512x256xf32> to vector<512x256xbf16>
    %c0_10 = arith.constant 0 : index
    %c0_11 = arith.constant 0 : index
    %19 = vector.load %arg5[%c0_10, %c0_11] : memref<256x256xbf16, #tpu.memory_space<vmem>>, vector<256x256xbf16>
    %cst_12 = arith.constant dense<0.000000e+00> : vector<512x256xf32>
    %20 = tpu.matmul %18, %19, %cst_12 {dimension_numbers = #tpu.dot_dimension_numbers<[1], [0], [0], [1], [0, 0, 1, 1], [], []>} : vector<512x256xbf16>, vector<256x256xbf16>, vector<512x256xf32> -> vector<512x256xf32>
    %21 = math.tanh %20 : vector<512x256xf32>
    %22 = arith.truncf %21 : vector<512x256xf32> to vector<512x256xbf16>
    %c0_13 = arith.constant 0 : index
    %c0_14 = arith.constant 0 : index
    %23 = vector.load %arg6[%c0_13, %c0_14] : memref<512x256xbf16, #tpu.memory_space<vmem>>, vector<512x256xbf16>
    tpu.vector_store %arg6[%c0_13, %c0_14], %22 {strides = array<i32>} : memref<512x256xbf16, #tpu.memory_space<vmem>>, vector<512x256xbf16>,
    return
  }
  func.func @transform_0(%arg0: i32) -> (i32, i32) {
    %c0_i32 = arith.constant 0 : i32
    %c0_i32_0 = arith.constant 0 : i32
    return %arg0, %c0_i32 : i32, i32
  }
  func.func @transform_1(%arg0: i32) -> (i32, i32) {
    %c0_i32 = arith.constant 0 : i32
    %c0_i32_0 = arith.constant 0 : i32
    return %arg0, %c0_i32 : i32, i32
  }
  func.func @transform_2(%arg0: i32) -> (i32, i32) {
    %c0_i32 = arith.constant 0 : i32
    %c0_i32_0 = arith.constant 0 : i32
    %c0_i32_1 = arith.constant 0 : i32
    return %c0_i32, %c0_i32_0 : i32, i32
  }
  func.func @transform_3(%arg0: i32) -> (i32, i32) {
    %c0_i32 = arith.constant 0 : i32
    %c0_i32_0 = arith.constant 0 : i32
    %c0_i32_1 = arith.constant 0 : i32
    return %c0_i32, %c0_i32_0 : i32, i32
  }
  func.func @transform_4(%arg0: i32) -> (i32, i32) {
    %c0_i32 = arith.constant 0 : i32
    %c0_i32_0 = arith.constant 0 : i32
    %c0_i32_1 = arith.constant 0 : i32
    return %c0_i32, %c0_i32_0 : i32, i32
  }
  func.func @transform_5(%arg0: i32) -> (i32, i32) {
    %c0_i32 = arith.constant 0 : i32
    %c0_i32_0 = arith.constant 0 : i32
    return %arg0, %c0_i32 : i32, i32
  }
  func.func @transform_6(%arg0: i32) -> (i32, i32) {
    %c0_i32 = arith.constant 0 : i32
    %c0_i32_0 = arith.constant 0 : i32
    return %arg0, %c0_i32 : i32, i32
  }
}

</mosaic_0001>

<bundles_post_ra>
// kernel: tpu_custom_call.1
= control target key start
LH: loop header
LB: loop body
LE: loop exit
PB: predicated region body
PF: predicated region fallthrough
CT: control target
= control target key end

     0   :  { %12 = vsyncpa [#allocation3], 0  ;;  %s6545_s0 = inlined_call_operand.vmem [shape: s32[1024,1], index: 0, kind: input, shape index: {}]   ;;  %s6546_s1 = inlined_call_operand.vmem [shape: s32[1024,1], index: 1, kind: input, shape index: {}]   ;;  %s6547_s2 = inlined_call_operand.vmem [shape: f32[8,256], index: 2, kind: input, shape index: {}]   ;;  %s6548_s3 = inlined_call_operand.vmem [shape: f32[64,256], index: 3, kind: input, shape index: {}]   ;;  %s6549_s4 = inlined_call_operand.vmem [shape: bf16[256,256], index: 4, kind: input, shape index: {}]   ;;  %s6550_s5 = inlined_call_operand.hbm [shape: bf16[1024,256], index: 5, kind: output, shape index: {0}]   ;;  %s6551_s6 = inlined_call_operand.hbm [shape: f32[1024,256], index: 6, kind: output, shape index: {1}]  }
   0x1   :  { %14 = vsyncpa [#allocation3 + $0x1], 0 }
   0x2   :  { %15 = vsyncpa [#allocation5], 0 }
   0x3   :  { %17 = vsyncpa [#allocation5 + $0x1], 0  ;;  %s4960_s21 = smov 0   ;;  %s4962_s22 = smov 0  }
   0x4   :  { %s4964_s23 = smov 0   ;;  %s4966_s24 = smov 0  }
   0x5 LB: > { %s4981_s25 = sadd.s32 4294967295, %s4915_s24   ;;  %s3943_s26 = sadd.s32 4294967294, %s4915_s24   ;;  %s4915_s24 = sphi %s4966_s24, %s6557_s24   ;;  %s4911_s23 = sphi %s4964_s23, %s6556_s23   ;;  %s4907_s22 = sphi %s4962_s22, %s6555_s22   ;;  %s4903_s21 = sphi %s4960_s21, %s6554_s21  }
   0x6   : > { %s4985_s27 = sadd.s32 1, %s4915_s24   ;;  %s145_s28 = sadd.s32 1, %s4911_s23 }
   0x7   : > { %s142_s29 = ssub.s32 %s4915_s24, %s4985_s27  ;;  %p155_p0 = scmp.ne.s32.totalorder %s4911_s23, %s4907_s22 }
   0x8   : > { %p143_p1 = scmp.eq.s32.totalorder %s142_s29, 0  ;;  %p156_p2 = scmp.eq.s32.totalorder %s4981_s25, 1 }
   0x9   : > { %p161_p3 = scmp.ne.s32.totalorder %s4907_s22, %s4903_s21  ;;  %p162_p4 = scmp.eq.s32.totalorder %s3943_s26, 1 }
   0xa   : > { %s4996_s30 = scalar_select %p143_p1, %s4911_s23, %s145_s28  }
   0xb   : > { %p4998_p5 = por %p156_p2, %p155_p0  ;;  %p5002_p6 = por %p162_p4, %p161_p3 }
   0xc   : > { %p3946_p7 = scmp.ge.s32.totalorder %s4915_s24, 1  ;;  %p233_p8 = scmp.lt.s32.totalorder %s4915_s24, 3 }
   0xe   : > { %p234_p9 = pnand %p3946_p7, %p233_p8 }
   0xf   : > { %s3949_s9 = sshll.u32 (!%p234_p9), %s4981_s25, 6  ;;  %v4917_v0 = vmov (!%p234_p9), 0   ;;  %v1186_v1 = vld [vmem:[%s6547_s2 + $0x8] sm:$0xff] (!%p234_p9)  ;;  %v4918_v2 = vmov (!%p234_p9), 0.0   ;;  %v1185_v16 = vld [vmem:[%s6547_s2] sm:$0xff] (!%p234_p9)  ;;  %v1832_v19 = vld [vmem:[%s6548_s3 + $0x18] sm:$0xff] (!%p234_p9) }
  0x10   : > { %237 = sbr.rel (%p234_p9) target bundleno = 998 (0x3e6), region = 40  ;;  %4452 = vset.pattern.permute.xlu1 (!%p234_p9), %v4917_v0  ;;  %4451 = vset.pattern.permute.xlu0 (!%p234_p9), %v4917_v0  ;;  %p274_p10 = scmp.lt.s32.totalorder (!%p234_p9), %s3949_s9, 127  ;;  %v1830_v18 = vld [vmem:[%s6548_s3 + $0x8] sm:$0xff] (!%p234_p9)  ;;  %vm1187_vm0 = vcmask (!%p234_p9), 64512  }
  0x11   : > { %4399 = vmatprep.subr.mxu1 (!%p234_p9), %v1186_v1  ;;  %1636 = vmatprep.mubr.f32.mxu1 (!%p234_p9), %v4918_v2  ;;  %v4383_v20 = vpack.c.bf16 (!%p234_p9), %v1832_v19, %v1830_v18  ;;  %v1833_v19 = vld [vmem:[%s6548_s3 + $0x20] sm:$0xff] (!%p234_p9)  ;;  %s5753_s29 = sand.u32 (!%p234_p9), 1, %s4907_s22   ;;  %s4382_s26 = sshll.u32 (!%p234_p9), %s4981_s25, 14 }
  0x12   : > { %1380 = vmatprep.subr.mxu0 (!%p234_p9), %v1186_v1  ;;  %1444 = vmatprep.mubr.f32.mxu0 (!%p234_p9), %v4918_v2  ;;  %s3947_s19 = sshll.u32 (!%p234_p9), %s5753_s29, 9 }
  0x13   : > { %4400 = vmatpush1.msra.mxu1 (!%p234_p9), %v1185_v16  ;;  %1381 = vmatpush1.msra.mxu0 (!%p234_p9), %v1185_v16  ;;  %s6386_s20 = scalar_lea.vmem (!%p234_p9), [#allocation2], %s3947_s19 }
  0x14   : > { %4384 = vmatprep.subr.bf16.mxu1 (!%p234_p9), %v4383_v20  ;;  %v1835_v20 = vld [vmem:[%s6548_s3 + $0x30] sm:$0xff] (!%p234_p9) }
  0x17   : > { %s6559_s9 = smov (!%p274_p10, %s3949_s9), 127 }
  0x18   : > { %s3950_s12 = sshll.u32 %s6559_s9, 3 }
  0x19   : > { %s5021_s15 = scalar_lea.vmem %s6545_s0, %s3950_s12  ;;  %s5070_s10 = scalar_lea.vmem %s6546_s1, %s3950_s12 }
  0x1a   : > { %v321_v3 = vld [vmem:[%s5021_s15 + $0x110] sm:$0xff]  ;;  %v319_v4 = vld [vmem:[%s5021_s15 + $0x100] sm:$0xff]  ;;  %v322_v5 = vld [vmem:[%s5021_s15 + $0x118] sm:$0xff]  ;;  %s3948_s12 = sshll.u32 %s5753_s29, 10 }
  0x1b   : > { %520 = vperm.xlu1 %4452, %v321_v3   ;;  %514 = vperm.xlu0 %4451, %v319_v4   ;;  %v320_v6 = vld [vmem:[%s5021_s15 + $0x108] sm:$0xff]  ;;  %v323_v8 = vld [vmem:[%s5021_s15 + $0x120] sm:$0xff]  ;;  %v326_v9 = vld [vmem:[%s5021_s15 + $0x138] sm:$0xff]  ;;  %s5771_s13 = scalar_lea.vmem [#allocation4], %s3948_s12 }
  0x1c   : > { %v324_v7 = vld [vmem:[%s5021_s15 + $0x128] sm:$0xff]  ;;  %v325_v10 = vld [vmem:[%s5021_s15 + $0x130] sm:$0xff]  ;;  %v327_v12 = vld [vmem:[%s5021_s15 + $0x140] sm:$0xff]  ;;  %s3837_s28 = sshll.u32 %s5771_s13, 4  ;;  %s6437_s28 = int_to_ptr.vmem [resolvable:$true] %s3837_s28 }
  0x1d   : > { %v328_v11 = vld [vmem:[%s5021_s15 + $0x148] sm:$0xff]  ;;  %v330_v13 = vld [vmem:[%s5021_s15 + $0x158] sm:$0xff]  ;;  %v329_v14 = vld [vmem:[%s5021_s15 + $0x150] sm:$0xff]  ;;  %s4821_s12 = scalar_lea.vmem %s6437_s28, 16384 }
  0x1e   : > { %v332_v15 = vld [vmem:[%s5021_s15 + $0x168] sm:$0xff]  ;;  %v331_v17 = vld [vmem:[%s5021_s15 + $0x160] sm:$0xff]  ;;  %v334_v21 = vld [vmem:[%s5021_s15 + $0x178] sm:$0xff]  ;;  %p4822_p11 = scmp.ne.s32.totalorder %s6437_s28, %s4821_s12 }
  0x1f   : > { %523 = vperm.xlu1 %4452, %v322_v5   ;;  %517 = vperm.xlu0 %4451, %v320_v6   ;;  %v333_v22 = vld [vmem:[%s5021_s15 + $0x170] sm:$0xff]  ;;  %v336_v23 = vld [vmem:[%s5021_s15 + $0x188] sm:$0xff]  ;;  %v335_v24 = vld [vmem:[%s5021_s15 + $0x180] sm:$0xff]  ;;  %v415_v6 = vlaneseq }
  0x20   : > { %v338_v25 = vld [vmem:[%s5021_s15 + $0x198] sm:$0xff]  ;;  %v337_v26 = vld [vmem:[%s5021_s15 + $0x190] sm:$0xff]  ;;  %v340_v27 = vld [vmem:[%s5021_s15 + $0x1a8] sm:$0xff]  ;;  %p4823_p12 = pnand %p4822_p11, %p4998_p5 }
  0x21   : > { %v339_v28 = vld [vmem:[%s5021_s15 + $0x1a0] sm:$0xff]  ;;  %v342_v29 = vld [vmem:[%s5021_s15 + $0x1b8] sm:$0xff]  ;;  %v341_v30 = vld [vmem:[%s5021_s15 + $0x1b0] sm:$0xff] }
  0x22   : > { %v344_v31 = vld [vmem:[%s5021_s15 + $0x1c8] sm:$0xff]  ;;  %v343_v32 = vld [vmem:[%s5021_s15 + $0x1c0] sm:$0xff]  ;;  %v346_v33 = vld [vmem:[%s5021_s15 + $0x1d8] sm:$0xff]  ;;  %p4824_p13 = pneg %p4823_p12 }
  0x23   : > { %529 = vperm.xlu1 %4452, %v324_v7   ;;  %526 = vperm.xlu0 %4451, %v323_v8   ;;  %v345_v34 = vld [vmem:[%s5021_s15 + $0x1d0] sm:$0xff]  ;;  %v348_v35 = vld [vmem:[%s5021_s15 + $0x1e8] sm:$0xff]  ;;  %v347_v36 = vld [vmem:[%s5021_s15 + $0x1e0] sm:$0xff] }
  0x24   : > { %v350_v37 = vld [vmem:[%s5021_s15 + $0x1f8] sm:$0xff]  ;;  %v349_v38 = vld [vmem:[%s5021_s15 + $0x1f0] sm:$0xff]  ;;  %v351_v39 = vld [vmem:[%s5070_s10] sm:$0xff] }
  0x25   : > { %v287_v40 = vld [vmem:[%s5021_s15] sm:$0xff]  ;;  %v352_v41 = vld [vmem:[%s5070_s10 + $0x8] sm:$0xff]  ;;  %v353_v43 = vld [vmem:[%s5070_s10 + $0x10] sm:$0xff] }
  0x26   : > { %v288_v42 = vld [vmem:[%s5021_s15 + $0x8] sm:$0xff]  ;;  %v289_v44 = vld [vmem:[%s5021_s15 + $0x10] sm:$0xff]  ;;  %v354_v45 = vld [vmem:[%s5070_s10 + $0x18] sm:$0xff] }
  0x27   : > { %535 = vperm.xlu1 %4452, %v326_v9   ;;  %532 = vperm.xlu0 %4451, %v325_v10   ;;  %v290_v46 = vld [vmem:[%s5021_s15 + $0x18] sm:$0xff]  ;;  %v355_v47 = vld [vmem:[%s5070_s10 + $0x20] sm:$0xff]  ;;  %v356_v49 = vld [vmem:[%s5070_s10 + $0x28] sm:$0xff]  ;;  %v5104_v9 = vand.u32 127, %v415_v6 }
  0x28   : > { %v291_v48 = vld [vmem:[%s5021_s15 + $0x20] sm:$0xff]  ;;  %v292_v50 = vld [vmem:[%s5021_s15 + $0x28] sm:$0xff]  ;;  %v357_v51 = vld [vmem:[%s5070_s10 + $0x30] sm:$0xff] }
  0x29   : > { %v293_v52 = vld [vmem:[%s5021_s15 + $0x30] sm:$0xff]  ;;  %v358_v53 = vld [vmem:[%s5070_s10 + $0x38] sm:$0xff]  ;;  %v359_v55 = vld [vmem:[%s5070_s10 + $0x40] sm:$0xff] }
  0x2a   : > { %v294_v54 = vld [vmem:[%s5021_s15 + $0x38] sm:$0xff]  ;;  %v295_v56 = vld [vmem:[%s5021_s15 + $0x40] sm:$0xff]  ;;  %v360_v57 = vld [vmem:[%s5070_s10 + $0x48] sm:$0xff] }
  0x2b   : > { %541 = vperm.xlu1 %4452, %v328_v11   ;;  %538 = vperm.xlu0 %4451, %v327_v12   ;;  %v296_v58 = vld [vmem:[%s5021_s15 + $0x48] sm:$0xff]  ;;  %v361_v59 = vld [vmem:[%s5070_s10 + $0x50] sm:$0xff]  ;;  %v362_v61 = vld [vmem:[%s5070_s10 + $0x58] sm:$0xff] }
  0x2c   : > { %v297_v60 = vld [vmem:[%s5021_s15 + $0x50] sm:$0xff]  ;;  %v298_v62 = vld [vmem:[%s5021_s15 + $0x58] sm:$0xff]  ;;  %v363_v63 = vld [vmem:[%s5070_s10 + $0x60] sm:$0xff] }
  0x2d   : > { %v299_v0 = vld [vmem:[%s5021_s15 + $0x60] sm:$0xff]  ;;  %v364_v1 = vld [vmem:[%s5070_s10 + $0x68] sm:$0xff]  ;;  %v365_v4 = vld [vmem:[%s5070_s10 + $0x70] sm:$0xff] }
  0x2e   : > { %v300_v3 = vld [vmem:[%s5021_s15 + $0x68] sm:$0xff]  ;;  %v301_v5 = vld [vmem:[%s5021_s15 + $0x70] sm:$0xff]  ;;  %v366_v7 = vld [vmem:[%s5070_s10 + $0x78] sm:$0xff] }
  0x2f   : > { %547 = vperm.xlu1 %4452, %v330_v13   ;;  %544 = vperm.xlu0 %4451, %v329_v14   ;;  %v302_v8 = vld [vmem:[%s5021_s15 + $0x78] sm:$0xff]  ;;  %v1829_v10 = vld [vmem:[%s6548_s3] sm:$0xff]  ;;  %v1831_v11 = vld [vmem:[%s6548_s3 + $0x10] sm:$0xff] }
  0x30   : > { %v367_v12 = vld [vmem:[%s5070_s10 + $0x80] sm:$0xff]  ;;  %v1834_v14 = vld [vmem:[%s6548_s3 + $0x28] sm:$0xff]  ;;  %v4385_v18 = vpack.c.bf16 %v1831_v11, %v1829_v10 }
  0x31   : > { %v303_v13 = vld [vmem:[%s5021_s15 + $0x80] sm:$0xff] }
  0x32   : > { %v311_v10 = vld [vmem:[%s5021_s15 + $0xc0] sm:$0xff] }
  0x33   : > { %553 = vperm.xlu1 %4452, %v332_v15   ;;  %550 = vperm.xlu0 %4451, %v331_v17   ;;  %v1836_v15 = vld [vmem:[%s6548_s3 + $0x38] sm:$0xff] }
  0x37   : > { %559 = vperm.xlu1 %4452, %v334_v21   ;;  %556 = vperm.xlu0 %4451, %v333_v22   ;;  %v368_v22 = vld [vmem:[%s5070_s10 + $0x88] sm:$0xff] }
  0x3b   : > { %565 = vperm.xlu1 %4452, %v336_v23   ;;  %562 = vperm.xlu0 %4451, %v335_v24   ;;  %v304_v23 = vld [vmem:[%s5021_s15 + $0x88] sm:$0xff]  ;;  %v4387_v24 = vpack.c.bf16 %v1836_v15, %v1834_v14 }
  0x3c   : > { %v376_v14 = vld [vmem:[%s5070_s10 + $0xc8] sm:$0xff] }
  0x3d   : > { %v312_v15 = vld [vmem:[%s5021_s15 + $0xc8] sm:$0xff] }
  0x3f   : > { %571 = vperm.xlu1 %4452, %v338_v25   ;;  %568 = vperm.xlu0 %4451, %v337_v26   ;;  %v1838_v25 = vld [vmem:[%s6548_s3 + $0x48] sm:$0xff]  ;;  %v1840_v26 = vld [vmem:[%s6548_s3 + $0x58] sm:$0xff] }
  0x43   : > { %577 = vperm.xlu1 %4452, %v340_v27   ;;  %574 = vperm.xlu0 %4451, %v339_v28  }
  0x47   : > { %583 = vperm.xlu1 %4452, %v342_v29   ;;  %580 = vperm.xlu0 %4451, %v341_v30   ;;  %v4389_v29 = vpack.c.bf16 %v1835_v20, %v1833_v19  ;;  %v1837_v30 = vld [vmem:[%s6548_s3 + $0x40] sm:$0xff]  ;;  %v377_v19 = vld [vmem:[%s5070_s10 + $0xd0] sm:$0xff] }
  0x48   : > { %v313_v20 = vld [vmem:[%s5021_s15 + $0xd0] sm:$0xff] }
  0x4b   : > { %589 = vperm.xlu1 %4452, %v344_v31   ;;  %586 = vperm.xlu0 %4451, %v343_v32   ;;  %v1839_v31 = vld [vmem:[%s6548_s3 + $0x50] sm:$0xff] }
  0x4f   : > { %595 = vperm.xlu1 %4452, %v346_v33   ;;  %592 = vperm.xlu0 %4451, %v345_v34   ;;  %v369_v33 = vld [vmem:[%s5070_s10 + $0x90] sm:$0xff] }
  0x50   : > { %v305_v34 = vld [vmem:[%s5021_s15 + $0x90] sm:$0xff] }
  0x53   : > { %601 = vperm.xlu1 %4452, %v348_v35   ;;  %598 = vperm.xlu0 %4451, %v347_v36   ;;  %v4391_v35 = vpack.c.bf16 %v1840_v26, %v1838_v25  ;;  %v1842_v36 = vld [vmem:[%s6548_s3 + $0x68] sm:$0xff]  ;;  %v314_v25 = vld [vmem:[%s5021_s15 + $0xd8] sm:$0xff] }
  0x57   : > { %607 = vperm.xlu1 %4452, %v350_v37   ;;  %604 = vperm.xlu0 %4451, %v349_v38   ;;  %v1844_v37 = vld [vmem:[%s6548_s3 + $0x78] sm:$0xff] }
  0x5b   : > { %802 = vperm.xlu1 %4452, %v351_v39   ;;  %418 = vperm.xlu0 %4451, %v287_v40  }
  0x5f   : > { %805 = vperm.xlu1 %4452, %v352_v41   ;;  %421 = vperm.xlu0 %4451, %v288_v42   ;;  %v4393_v41 = vpack.c.bf16 %v1839_v31, %v1837_v30  ;;  %v1841_v42 = vld [vmem:[%s6548_s3 + $0x60] sm:$0xff] }
  0x60   : > { %v315_v30 = vld [vmem:[%s5021_s15 + $0xe0] sm:$0xff] }
  0x63   : > { %808 = vperm.xlu1 %4452, %v353_v43   ;;  %424 = vperm.xlu0 %4451, %v289_v44   ;;  %v1843_v43 = vld [vmem:[%s6548_s3 + $0x70] sm:$0xff]  ;;  %v370_v44 = vld [vmem:[%s5070_s10 + $0x98] sm:$0xff] }
  0x67   : > { %811 = vperm.xlu1 %4452, %v354_v45   ;;  %427 = vperm.xlu0 %4451, %v290_v46   ;;  %v306_v45 = vld [vmem:[%s5021_s15 + $0x98] sm:$0xff]  ;;  %v4395_v46 = vpack.c.bf16 %v1844_v37, %v1842_v36 }
  0x6b   : > { %814 = vperm.xlu1 %4452, %v355_v47   ;;  %430 = vperm.xlu0 %4451, %v291_v48  }
  0x6f   : > { %817 = vperm.xlu1 %4452, %v356_v49   ;;  %433 = vperm.xlu0 %4451, %v292_v50   ;;  %v4397_v49 = vpack.c.bf16 %v1843_v43, %v1841_v42 }
  0x73   : > { %820 = vperm.xlu1 %4452, %v357_v51   ;;  %436 = vperm.xlu0 %4451, %v293_v52   ;;  %v371_v51 = vld [vmem:[%s5070_s10 + $0xa0] sm:$0xff] }
  0x74   : > { %v307_v52 = vld [vmem:[%s5021_s15 + $0xa0] sm:$0xff] }
  0x77   : > { %823 = vperm.xlu1 %4452, %v358_v53   ;;  %439 = vperm.xlu0 %4451, %v294_v54  }
  0x7b   : > { %826 = vperm.xlu1 %4452, %v359_v55   ;;  %442 = vperm.xlu0 %4451, %v295_v56   ;;  %v372_v56 = vld [vmem:[%s5070_s10 + $0xa8] sm:$0xff] }
  0x7f   : > { %829 = vperm.xlu1 %4452, %v360_v57   ;;  %445 = vperm.xlu0 %4451, %v296_v58   ;;  %v308_v57 = vld [vmem:[%s5021_s15 + $0xa8] sm:$0xff] }
  0x83   : > { %832 = vperm.xlu1 %4452, %v361_v59   ;;  %448 = vperm.xlu0 %4451, %v297_v60  }
  0x87   : > { %835 = vperm.xlu1 %4452, %v362_v61   ;;  %451 = vperm.xlu0 %4451, %v298_v62   ;;  %v373_v61 = vld [vmem:[%s5070_s10 + $0xb0] sm:$0xff] }
  0x88   : > { %v309_v62 = vld [vmem:[%s5021_s15 + $0xb0] sm:$0xff] }
  0x8b   : > { %838 = vperm.xlu1 %4452, %v363_v63   ;;  %454 = vperm.xlu0 %4451, %v299_v0  }
  0x8f   : > { %841 = vperm.xlu1 %4452, %v364_v1   ;;  %457 = vperm.xlu0 %4451, %v300_v3   ;;  %v374_v3 = vld [vmem:[%s5070_s10 + $0xb8] sm:$0xff] }
  0x93   : > { %844 = vperm.xlu1 %4452, %v365_v4   ;;  %460 = vperm.xlu0 %4451, %v301_v5   ;;  %v310_v4 = vld [vmem:[%s5021_s15 + $0xb8] sm:$0xff] }
  0x97   : > { %847 = vperm.xlu1 %4452, %v366_v7   ;;  %463 = vperm.xlu0 %4451, %v302_v8   ;;  %v375_v8 = vld [vmem:[%s5070_s10 + $0xc0] sm:$0xff] }
  0x9a   : > { %v521_v16 = vpop.permute.xlu1 %520  ;;  %v515_v17 = vpop.permute.xlu0 %514 }
  0x9b   : > { %vm641_vm1 = vcmp.eq.s32.totalorder %v5104_v9, %v515_v17  ;;  %850 = vperm.xlu1 %4452, %v367_v12   ;;  %466 = vperm.xlu0 %4451, %v303_v13   ;;  %vm643_vm2 = vcmp.eq.s32.totalorder %v5104_v9, %v521_v16 }
  0x9c   : > { %v3985_v21 = vsel %vm641_vm1, 1.0, %v4918_v2  ;;  %v3987_v38 = vsel %vm643_vm2, 1.0, %v4918_v2 }
  0x9d   : > { %4113 = vmatmul.mubr.msk.f32.vlgmr.msra.gmra.mrb[0].mxu1 %vm1187_vm0, %v3985_v21 }
  0x9e   : > { %4386 = vmatpush1.bf16.msra.mxu1 %v4385_v18  ;;  %v524_v27 = vpop.permute.xlu1 %523  ;;  %v518_v28 = vpop.permute.xlu0 %517  ;;  %1642 = vmatprep.mubr.f32.mxu1 %v4918_v2 }
  0x9f   : > { %vm642_vm3 = vcmp.eq.s32.totalorder %v5104_v9, %v518_v28  ;;  %853 = vperm.xlu1 %4452, %v368_v22   ;;  %469 = vperm.xlu0 %4451, %v304_v23   ;;  %vm644_vm4 = vcmp.eq.s32.totalorder %v5104_v9, %v524_v27 }
  0xa0   : > { %v3986_v32 = vsel %vm642_vm3, 1.0, %v4918_v2  ;;  %4388 = vmatprep.subr.bf16.mxu1 %v4387_v24  ;;  %v3988_v50 = vsel %vm644_vm4, 1.0, %v4918_v2  ;;  %v378_v24 = vld [vmem:[%s5070_s10 + $0xd8] sm:$0xff] }
  0xa1   : > { %4114 = vmatmul.mubr.msk.f32.gmra.mrb[2].mxu1 %vm1187_vm0, %v3986_v32 }
  0xa2   : > { %v530_v39 = vpop.permute.xlu1 %529  ;;  %v527_v40 = vpop.permute.xlu0 %526  ;;  %1648 = vmatprep.mubr.f32.mxu1 %v4918_v2  ;;  %4390 = vmatpush1.bf16.msra.mxu1 %v4389_v29  ;;  %v379_v29 = vld [vmem:[%s5070_s10 + $0xe0] sm:$0xff] }
  0xa3   : > { %856 = vperm.xlu1 %4452, %v369_v33   ;;  %472 = vperm.xlu0 %4451, %v305_v34   ;;  %vm645_vm5 = vcmp.eq.s32.totalorder %v5104_v9, %v527_v40  ;;  %vm646_vm6 = vcmp.eq.s32.totalorder %v5104_v9, %v530_v39  ;;  %v380_v34 = vld [vmem:[%s5070_s10 + $0xe8] sm:$0xff]  ;;  %v381_v39 = vld [vmem:[%s5070_s10 + $0xf0] sm:$0xff] }
  0xa4   : > { %4392 = vmatprep.subr.bf16.mxu1 %v4391_v35  ;;  %v3989_v55 = vsel %vm645_vm5, 1.0, %v4918_v2  ;;  %v3990_v60 = vsel %vm646_vm6, 1.0, %v4918_v2  ;;  %v316_v35 = vld [vmem:[%s5021_s15 + $0xe8] sm:$0xff]  ;;  %v317_v40 = vld [vmem:[%s5021_s15 + $0xf0] sm:$0xff] }
  0xa5   : > { %4115 = vmatmul.mubr.msk.f32.gmra.mrb[4].mxu1 %vm1187_vm0, %v3987_v38 }
  0xa6   : > { %v536_v47 = vpop.permute.xlu1 %535  ;;  %v533_v48 = vpop.permute.xlu0 %532  ;;  %1654 = vmatprep.mubr.f32.mxu1 %v4918_v2  ;;  %4394 = vmatpush1.bf16.msra.mxu1 %v4393_v41 }
  0xa7   : > { %859 = vperm.xlu1 %4452, %v370_v44   ;;  %475 = vperm.xlu0 %4451, %v306_v45   ;;  %vm647_vm7 = vcmp.eq.s32.totalorder %v5104_v9, %v533_v48  ;;  %vm648_vm8 = vcmp.eq.s32.totalorder %v5104_v9, %v536_v47  ;;  %v382_v44 = vld [vmem:[%s5070_s10 + $0xf8] sm:$0xff] }
  0xa8   : > { %4396 = vmatprep.subr.bf16.mxu1 %v4395_v46  ;;  %v3991_v1 = vsel %vm647_vm7, 1.0, %v4918_v2  ;;  %v3992_v7 = vsel %vm648_vm8, 1.0, %v4918_v2  ;;  %v318_v45 = vld [vmem:[%s5021_s15 + $0xf8] sm:$0xff]  ;;  %s3806_s15 = scalar_lea.sflag [#allocation5], %s5753_s29 }
  0xa9   : > { %4116 = vmatmul.mubr.msk.f32.gmra.mrb[6].mxu1 %vm1187_vm0, %v3988_v50  ;;  %v383_v50 = vld [vmem:[%s5070_s10 + $0x100] sm:$0xff] }
  0xaa   : > { %v542_v53 = vpop.permute.xlu1 %541  ;;  %v539_v54 = vpop.permute.xlu0 %538  ;;  %1660 = vmatprep.mubr.f32.mxu1 %v4918_v2  ;;  %4398 = vmatpush1.bf16.msra.mxu1 %v4397_v49  ;;  %v384_v49 = vld [vmem:[%s5070_s10 + $0x108] sm:$0xff] }
  0xab   : > { %862 = vperm.xlu1 %4452, %v371_v51   ;;  %478 = vperm.xlu0 %4451, %v307_v52   ;;  %vm649_vm9 = vcmp.eq.s32.totalorder %v5104_v9, %v539_v54  ;;  %vm650_vm10 = vcmp.eq.s32.totalorder %v5104_v9, %v542_v53 }
  0xac   : > { %v3993_v13 = vsel %vm649_vm9, 1.0, %v4918_v2  ;;  %v3994_v18 = vsel %vm650_vm10, 1.0, %v4918_v2 }
  0xad   : > { %4117 = vmatmul.mubr.msk.f32.gmra.mrb[8].mxu1 %vm1187_vm0, %v3989_v55  ;;  %v386_v55 = vld [vmem:[%s5070_s10 + $0x118] sm:$0xff] }
  0xae   : > { %v5180_v58 = vpop.permute.xlu1 %547  ;;  %v545_v59 = vpop.permute.xlu0 %544  ;;  %1666 = vmatprep.mubr.f32.mxu1 %v4918_v2 }
  0xaf   : > { %865 = vperm.xlu1 %4452, %v372_v56   ;;  %481 = vperm.xlu0 %4451, %v308_v57   ;;  %vm651_vm11 = vcmp.eq.s32.totalorder %v5104_v9, %v545_v59  ;;  %vm652_vm12 = vcmp.eq.s32.totalorder %v5104_v9, %v5180_v58  ;;  %v385_v56 = vld [vmem:[%s5070_s10 + $0x110] sm:$0xff] }
  0xb0   : > { %v3995_v23 = vsel %vm651_vm11, 1.0, %v4918_v2  ;;  %v3996_v28 = vsel %vm652_vm12, 1.0, %v4918_v2 }
  0xb1   : > { %4118 = vmatmul.mubr.msk.f32.gmra.mrb[10].mxu1 %vm1187_vm0, %v3990_v60 }
  0xb2   : > { %v5188_v63 = vpop.permute.xlu1 %553  ;;  %v5190_v0 = vpop.permute.xlu0 %550  ;;  %1672 = vmatprep.mubr.f32.mxu1 %v4918_v2 }
  0xb3   : > { %868 = vperm.xlu1 %4452, %v373_v61   ;;  %484 = vperm.xlu0 %4451, %v309_v62   ;;  %vm653_vm13 = vcmp.eq.s32.totalorder %v5104_v9, %v5190_v0  ;;  %vm654_vm14 = vcmp.eq.s32.totalorder %v5104_v9, %v5188_v63  ;;  %v388_v61 = vld [vmem:[%s5070_s10 + $0x128] sm:$0xff]  ;;  %v387_v62 = vld [vmem:[%s5070_s10 + $0x120] sm:$0xff] }
  0xb4   : > { %v3997_v33 = vsel %vm653_vm13, 1.0, %v4918_v2  ;;  %v3998_v38 = vsel %vm654_vm14, 1.0, %v4918_v2 }
  0xb5   : > { %4119 = vmatmul.mubr.msk.f32.gmra.mrb[12].mxu1 %vm1187_vm0, %v3991_v1 }
  0xb6   : > { %v5198_v5 = vpop.permute.xlu1 %559  ;;  %v5200_v6 = vpop.permute.xlu0 %556  ;;  %1678 = vmatprep.mubr.f32.mxu1 %v4918_v2 }
  0xb7   : > { %871 = vperm.xlu1 %4452, %v374_v3   ;;  %487 = vperm.xlu0 %4451, %v310_v4   ;;  %vm655_vm15 = vcmp.eq.s32.totalorder %v5104_v9, %v5200_v6  ;;  %vm656_vm1 = vcmp.eq.s32.totalorder %v5104_v9, %v5198_v5  ;;  %v390_v4 = vld [vmem:[%s5070_s10 + $0x138] sm:$0xff]  ;;  %v389_v5 = vld [vmem:[%s5070_s10 + $0x130] sm:$0xff] }
  0xb8   : > { %v3999_v43 = vsel %vm655_vm15, 1.0, %v4918_v2  ;;  %v4000_v48 = vsel %vm656_vm1, 1.0, %v4918_v2 }
  0xb9   : > { %4120 = vmatmul.mubr.msk.f32.gmra.mrb[14].mxu1 %vm1187_vm0, %v3992_v7 }
  0xba   : > { %v5208_v11 = vpop.permute.xlu1 %565  ;;  %v5210_v12 = vpop.permute.xlu0 %562  ;;  %1684 = vmatprep.mubr.f32.mxu1 %v4918_v2 }
  0xbb   : > { %874 = vperm.xlu1 %4452, %v375_v8   ;;  %490 = vperm.xlu0 %4451, %v311_v10   ;;  %vm657_vm2 = vcmp.eq.s32.totalorder %v5104_v9, %v5210_v12  ;;  %vm658_vm4 = vcmp.eq.s32.totalorder %v5104_v9, %v5208_v11  ;;  %v392_v10 = vld [vmem:[%s5070_s10 + $0x148] sm:$0xff]  ;;  %v391_v11 = vld [vmem:[%s5070_s10 + $0x140] sm:$0xff] }
  0xbc   : > { %v4001_v53 = vsel %vm657_vm2, 1.0, %v4918_v2  ;;  %v4002_v59 = vsel %vm658_vm4, 1.0, %v4918_v2 }
  0xbd   : > { %4121 = vmatmul.mubr.msk.f32.gmra.mrb[16].mxu1 %vm1187_vm0, %v3993_v13 }
  0xbe   : > { %v5218_v16 = vpop.permute.xlu1 %571  ;;  %v5220_v17 = vpop.permute.xlu0 %568  ;;  %1690 = vmatprep.mubr.f32.mxu1 %v4918_v2 }
  0xbf   : > { %877 = vperm.xlu1 %4452, %v376_v14   ;;  %493 = vperm.xlu0 %4451, %v312_v15   ;;  %vm659_vm6 = vcmp.eq.s32.totalorder %v5104_v9, %v5220_v17  ;;  %vm660_vm8 = vcmp.eq.s32.totalorder %v5104_v9, %v5218_v16  ;;  %v394_v16 = vld [vmem:[%s5070_s10 + $0x158] sm:$0xff]  ;;  %v393_v17 = vld [vmem:[%s5070_s10 + $0x150] sm:$0xff] }
  0xc0   : > { %v4003_v0 = vsel %vm659_vm6, 1.0, %v4918_v2  ;;  %v4004_v7 = vsel %vm660_vm8, 1.0, %v4918_v2 }
  0xc1   : > { %4122 = vmatmul.mubr.msk.f32.gmra.mrb[18].mxu1 %vm1187_vm0, %v3994_v18 }
  0xc2   : > { %v5228_v21 = vpop.permute.xlu1 %577  ;;  %v5230_v22 = vpop.permute.xlu0 %574  ;;  %1696 = vmatprep.mubr.f32.mxu1 %v4918_v2 }
  0xc3   : > { %880 = vperm.xlu1 %4452, %v377_v19   ;;  %496 = vperm.xlu0 %4451, %v313_v20   ;;  %vm661_vm10 = vcmp.eq.s32.totalorder %v5104_v9, %v5230_v22  ;;  %vm662_vm12 = vcmp.eq.s32.totalorder %v5104_v9, %v5228_v21  ;;  %v396_v22 = vld [vmem:[%s5070_s10 + $0x168] sm:$0xff] }
  0xc4   : > { %v4005_v14 = vsel %vm661_vm10, 1.0, %v4918_v2  ;;  %v4006_v19 = vsel %vm662_vm12, 1.0, %v4918_v2 }
  0xc5   : > { %4123 = vmatmul.mubr.msk.f32.gmra.mrb[20].mxu1 %vm1187_vm0, %v3995_v23  ;;  %v395_v23 = vld [vmem:[%s5070_s10 + $0x160] sm:$0xff] }
  0xc6   : > { %v5239_v26 = vpop.permute.xlu1 %583  ;;  %v5241_v27 = vpop.permute.xlu0 %580  ;;  %1702 = vmatprep.mubr.f32.mxu1 %v4918_v2 }
  0xc7   : > { %883 = vperm.xlu1 %4452, %v378_v24   ;;  %499 = vperm.xlu0 %4451, %v314_v25   ;;  %vm663_vm14 = vcmp.eq.s32.totalorder %v5104_v9, %v5241_v27  ;;  %v398_v27 = vld [vmem:[%s5070_s10 + $0x178] sm:$0xff]  ;;  %vm664_vm1 = vcmp.eq.s32.totalorder %v5104_v9, %v5239_v26  ;;  %v400_v26 = vld [vmem:[%s5070_s10 + $0x188] sm:$0xff] }
  0xc8   : > { %v4007_v25 = vsel %vm663_vm14, 1.0, %v4918_v2 }
  0xc9   : > { %4124 = vmatmul.mubr.msk.f32.gmra.mrb[22].mxu1 %vm1187_vm0, %v3996_v28 }
  0xca   : > { %v5250_v31 = vpop.permute.xlu1 %589  ;;  %v5252_v32 = vpop.permute.xlu0 %586  ;;  %1708 = vmatprep.mubr.f32.mxu1 %v4918_v2 }
  0xcb   : > { %886 = vperm.xlu1 %4452, %v379_v29   ;;  %502 = vperm.xlu0 %4451, %v315_v30   ;;  %v397_v29 = vld [vmem:[%s5070_s10 + $0x170] sm:$0xff] }
  0xcd   : > { %4125 = vmatmul.mubr.msk.f32.gmra.mrb[24].mxu1 %vm1187_vm0, %v3997_v33 }
  0xce   : > { %v5261_v36 = vpop.permute.xlu1 %595  ;;  %v5263_v37 = vpop.permute.xlu0 %592  ;;  %1714 = vmatprep.mubr.f32.mxu1 %v4918_v2 }
  0xcf   : > { %889 = vperm.xlu1 %4452, %v380_v34   ;;  %505 = vperm.xlu0 %4451, %v316_v35   ;;  %v4008_v34 = vsel %vm664_vm1, 1.0, %v4918_v2 }
  0xd1   : > { %4126 = vmatmul.mubr.msk.f32.gmra.mrb[26].mxu1 %vm1187_vm0, %v3998_v38  ;;  %v399_v38 = vld [vmem:[%s5070_s10 + $0x180] sm:$0xff] }
  0xd2   : > { %v5272_v41 = vpop.permute.xlu1 %601  ;;  %v5274_v42 = vpop.permute.xlu0 %598  ;;  %1720 = vmatprep.mubr.f32.mxu1 %v4918_v2 }
  0xd3   : > { %892 = vperm.xlu1 %4452, %v381_v39   ;;  %508 = vperm.xlu0 %4451, %v317_v40   ;;  %v4455_v40 = vld [vmem:[%s6549_s4 + $0x4] ss:$8 sps:$4 sm:$0xff]  }
  0xd4   : > { %2871 = vmatprep.subr.bf16.mxu0 %v4455_v40 }
  0xd5   : > { %4127 = vmatmul.mubr.msk.f32.gmra.mrb[28].mxu1 %vm1187_vm0, %v3999_v43 }
  0xd6   : > { %v5283_v46 = vpop.permute.xlu1 %607  ;;  %v5285_v47 = vpop.permute.xlu0 %604  ;;  %1726 = vmatprep.mubr.f32.mxu1 %v4918_v2 }
  0xd7   : > { %895 = vperm.xlu1 %4452, %v382_v44   ;;  %511 = vperm.xlu0 %4451, %v318_v45   ;;  %v402_v45 = vld [vmem:[%s5070_s10 + $0x198] sm:$0xff] }
  0xd9   : > { %4128 = vmatmul.mubr.msk.f32.gmra.mrb[30].mxu1 %vm1187_vm0, %v4000_v48  ;;  %v401_v48 = vld [vmem:[%s5070_s10 + $0x190] sm:$0xff] }
  0xda   : > { %v5294_v51 = vpop.permute.xlu1 %802  ;;  %v419_v52 = vpop.permute.xlu0 %418  ;;  %1732 = vmatprep.mubr.f32.mxu1 %v4918_v2 }
  0xdb   : > { %vm609_vm3 = vcmp.eq.s32.totalorder %v5104_v9, %v419_v52  ;;  %901 = vperm.xlu1 %4452, %v384_v49   ;;  %898 = vperm.xlu0 %4451, %v383_v50   ;;  %v4453_v49 = vld [vmem:[%s6549_s4] ss:$8 sps:$4 sm:$0xff]  }
  0xdc   : > { %v3953_v54 = vsel %vm609_vm3, 1.0, %v4918_v2  ;;  %vm665_vm3 = vcmp.eq.s32.totalorder %v5104_v9, %v5252_v32 }
  0xdd   : > { %4081 = vmatmul.mubr.msk.f32.vlgmr.msra.gmra.mrb[0].mxu0 %vm1187_vm0, %v3953_v54  ;;  %4129 = vmatmul.mubr.msk.f32.gmra.mrb[32].mxu1 %vm1187_vm0, %v4001_v53  ;;  %v4009_v43 = vsel %vm665_vm3, 1.0, %v4918_v2  ;;  %v404_v54 = vld [vmem:[%s5070_s10 + $0x1a8] sm:$0xff] }
  0xde   : > { %v5306_v57 = vpop.permute.xlu1 %805  ;;  %v422_v58 = vpop.permute.xlu0 %421  ;;  %1450 = vmatprep.mubr.f32.mxu0 %v4918_v2  ;;  %1738 = vmatprep.mubr.f32.mxu1 %v4918_v2 }
  0xdf   : > { %vm610_vm5 = vcmp.eq.s32.totalorder %v5104_v9, %v422_v58  ;;  %907 = vperm.xlu1 %4452, %v386_v55   ;;  %904 = vperm.xlu0 %4451, %v385_v56  }
  0xe0   : > { %v3954_v60 = vsel %vm610_vm5, 1.0, %v4918_v2  ;;  %vm666_vm5 = vcmp.eq.s32.totalorder %v5104_v9, %v5250_v31  ;;  %v403_v31 = vld [vmem:[%s5070_s10 + $0x1a0] sm:$0xff]  ;;  %2872 = vmatpush1.bf16.msra.mxu0 %v4453_v49 }
  0xe1   : > { %4082 = vmatmul.mubr.msk.f32.gmra.mrb[2].mxu0 %vm1187_vm0, %v3954_v60  ;;  %4130 = vmatmul.mubr.msk.f32.gmra.mrb[34].mxu1 %vm1187_vm0, %v4002_v59  ;;  %v4010_v52 = vsel %vm666_vm5, 1.0, %v4918_v2  ;;  %v405_v60 = vld [vmem:[%s5070_s10 + $0x1b0] sm:$0xff]  ;;  %vm1973_vm5 = vcmask 523264  }
  0xe2   : > { %v425_v63 = vpop.permute.xlu0 %424  ;;  %1456 = vmatprep.mubr.f32.mxu0 %v4918_v2  ;;  %1744 = vmatprep.mubr.f32.mxu1 %v4918_v2  ;;  %v5323_v1 = vpop.permute.xlu1 %808 }
  0xe3   : > { %vm611_vm7 = vcmp.eq.s32.totalorder %v5104_v9, %v425_v63  ;;  %913 = vperm.xlu1 %4452, %v388_v61   ;;  %910 = vperm.xlu0 %4451, %v387_v62   ;;  %v4458_v61 = vld [vmem:[%s6549_s4 + $0x14] ss:$8 sps:$4 sm:$0xff]  }
  0xe4   : > { %v3955_v3 = vsel %vm611_vm7, 1.0, %v4918_v2  ;;  %vm667_vm7 = vcmp.eq.s32.totalorder %v5104_v9, %v5263_v37  ;;  %v406_v37 = vld [vmem:[%s5070_s10 + $0x1b8] sm:$0xff]  ;;  %2873 = vmatprep.subr.bf16.mxu0 %v4458_v61 }
  0xe5   : > { %4083 = vmatmul.mubr.msk.f32.gmra.mrb[4].mxu0 %vm1187_vm0, %v3955_v3  ;;  %4131 = vmatmul.mubr.msk.f32.gmra.mrb[36].mxu1 %vm1187_vm0, %v4003_v0  ;;  %v4011_v58 = vsel %vm667_vm7, 1.0, %v4918_v2  ;;  %vm994_vm7 = vcmp.eq.s32.totalorder %v5104_v9, %v5306_v57 }
  0xe6   : > { %v428_v6 = vpop.permute.xlu0 %427  ;;  %1462 = vmatprep.mubr.f32.mxu0 %v4918_v2  ;;  %1750 = vmatprep.mubr.f32.mxu1 %v4918_v2  ;;  %v5343_v12 = vpop.permute.xlu1 %811  ;;  %v4018_v40 = vsel %vm994_vm7, 1.0, %v4918_v2 }
  0xe7   : > { %vm612_vm9 = vcmp.eq.s32.totalorder %v5104_v9, %v428_v6  ;;  %919 = vperm.xlu1 %4452, %v390_v4   ;;  %916 = vperm.xlu0 %4451, %v389_v5   ;;  %v407_v4 = vld [vmem:[%s5070_s10 + $0x1c0] sm:$0xff]  ;;  %v4456_v5 = vld [vmem:[%s6549_s4 + $0x10] ss:$8 sps:$4 sm:$0xff]  }
  0xe8   : > { %v3956_v8 = vsel %vm612_vm9, 1.0, %v4918_v2  ;;  %vm668_vm9 = vcmp.eq.s32.totalorder %v5104_v9, %v5261_v36  ;;  %v408_v36 = vld [vmem:[%s5070_s10 + $0x1c8] sm:$0xff]  ;;  %2874 = vmatpush1.bf16.msra.mxu0 %v4456_v5 }
  0xe9   : > { %4084 = vmatmul.mubr.msk.f32.gmra.mrb[6].mxu0 %vm1187_vm0, %v3956_v8  ;;  %4132 = vmatmul.mubr.msk.f32.gmra.mrb[38].mxu1 %vm1187_vm0, %v4004_v7  ;;  %v4012_v63 = vsel %vm668_vm9, 1.0, %v4918_v2  ;;  %vm995_vm9 = vcmp.eq.s32.totalorder %v5104_v9, %v5323_v1 }
  0xea   : > { %v431_v13 = vpop.permute.xlu0 %430  ;;  %1468 = vmatprep.mubr.f32.mxu0 %v4918_v2  ;;  %1756 = vmatprep.mubr.f32.mxu1 %v4918_v2  ;;  %v5360_v20 = vpop.permute.xlu1 %814  ;;  %v4019_v1 = vsel %vm995_vm9, 1.0, %v4918_v2 }
  0xeb   : > { %vm613_vm11 = vcmp.eq.s32.totalorder %v5104_v9, %v431_v13  ;;  %925 = vperm.xlu1 %4452, %v392_v10   ;;  %922 = vperm.xlu0 %4451, %v391_v11   ;;  %v410_v10 = vld [vmem:[%s5070_s10 + $0x1d8] sm:$0xff]  ;;  %v4461_v11 = vld [vmem:[%s6549_s4 + $0x24] ss:$8 sps:$4 sm:$0xff]  }
  0xec   : > { %v3957_v15 = vsel %vm613_vm11, 1.0, %v4918_v2  ;;  %vm669_vm11 = vcmp.eq.s32.totalorder %v5104_v9, %v5274_v42  ;;  %v409_v42 = vld [vmem:[%s5070_s10 + $0x1d0] sm:$0xff]  ;;  %2875 = vmatprep.subr.bf16.mxu0 %v4461_v11 }
  0xed   : > { %4085 = vmatmul.mubr.msk.f32.gmra.mrb[8].mxu0 %vm1187_vm0, %v3957_v15  ;;  %4133 = vmatmul.mubr.msk.f32.gmra.mrb[40].mxu1 %vm1187_vm0, %v4005_v14  ;;  %v4013_v7 = vsel %vm669_vm11, 1.0, %v4918_v2  ;;  %vm996_vm11 = vcmp.eq.s32.totalorder %v5104_v9, %v5343_v12 }
  0xee   : > { %v434_v18 = vpop.permute.xlu0 %433  ;;  %1474 = vmatprep.mubr.f32.mxu0 %v4918_v2  ;;  %1762 = vmatprep.mubr.f32.mxu1 %v4918_v2  ;;  %v5380_v30 = vpop.permute.xlu1 %817 }
  0xef   : > { %vm614_vm13 = vcmp.eq.s32.totalorder %v5104_v9, %v434_v18  ;;  %931 = vperm.xlu1 %4452, %v394_v16   ;;  %928 = vperm.xlu0 %4451, %v393_v17   ;;  %v411_v17 = vld [vmem:[%s5070_s10 + $0x1e0] sm:$0xff] }
  0xf0   : > { %v3958_v21 = vsel %vm614_vm13, 1.0, %v4918_v2  ;;  %vm670_vm13 = vcmp.eq.s32.totalorder %v5104_v9, %v5272_v41  ;;  %v412_v41 = vld [vmem:[%s5070_s10 + $0x1e8] sm:$0xff] }
  0xf1   : > { %4086 = vmatmul.mubr.msk.f32.gmra.mrb[10].mxu0 %vm1187_vm0, %v3958_v21  ;;  %4134 = vmatmul.mubr.msk.f32.gmra.mrb[42].mxu1 %vm1187_vm0, %v4006_v19  ;;  %v4014_v15 = vsel %vm670_vm13, 1.0, %v4918_v2  ;;  %v4459_v18 = vld [vmem:[%s6549_s4 + $0x20] ss:$8 sps:$4 sm:$0xff]   ;;  %vm997_vm13 = vcmp.eq.s32.totalorder %v5104_v9, %v5360_v20 }
  0xf2   : > { %v437_v24 = vpop.permute.xlu0 %436  ;;  %1480 = vmatprep.mubr.f32.mxu0 %v4918_v2  ;;  %1768 = vmatprep.mubr.f32.mxu1 %v4918_v2  ;;  %v5400_v32 = vpop.permute.xlu1 %820  ;;  %v4021_v20 = vsel %vm997_vm13, 1.0, %v4918_v2 }
  0xf3   : > { %vm615_vm15 = vcmp.eq.s32.totalorder %v5104_v9, %v437_v24  ;;  %937 = vperm.xlu1 %4452, %v396_v22   ;;  %934 = vperm.xlu0 %4451, %v395_v23   ;;  %v413_v24 = vld [vmem:[%s5070_s10 + $0x1f0] sm:$0xff] }
  0xf4   : > { %v3959_v28 = vsel %vm615_vm15, 1.0, %v4918_v2  ;;  %vm671_vm15 = vcmp.eq.s32.totalorder %v5104_v9, %v5285_v47  ;;  %v414_v47 = vld [vmem:[%s5070_s10 + $0x1f8] sm:$0xff]  ;;  %2876 = vmatpush1.bf16.msra.mxu0 %v4459_v18  ;;  %s6435_s10 = scalar_lea.hbm %s6551_s6, %s4382_s26 }
  0xf5   : > { %4087 = vmatmul.mubr.msk.f32.gmra.mrb[12].mxu0 %vm1187_vm0, %v3959_v28  ;;  %4135 = vmatmul.mubr.msk.f32.gmra.mrb[44].mxu1 %vm1187_vm0, %v4007_v25  ;;  %v4015_v21 = vsel %vm671_vm15, 1.0, %v4918_v2  ;;  %v4464_v25 = vld [vmem:[%s6549_s4 + $0x34] ss:$8 sps:$4 sm:$0xff]   ;;  %vm998_vm15 = vcmp.eq.s32.totalorder %v5104_v9, %v5380_v30 }
  0xf6   : > { %v440_v33 = vpop.permute.xlu0 %439  ;;  %1486 = vmatprep.mubr.f32.mxu0 %v4918_v2  ;;  %1774 = vmatprep.mubr.f32.mxu1 %v4918_v2  ;;  %v5423_v55 = vpop.permute.xlu1 %823 }
  0xf7   : > { %vm616_vm2 = vcmp.eq.s32.totalorder %v5104_v9, %v440_v33  ;;  %943 = vperm.xlu1 %4452, %v398_v27   ;;  %940 = vperm.xlu0 %4451, %v397_v29   ;;  %v4462_v27 = vld [vmem:[%s6549_s4 + $0x30] ss:$8 sps:$4 sm:$0xff]  }
  0xf8   : > { %v3960_v35 = vsel %vm616_vm2, 1.0, %v4918_v2  ;;  %vm672_vm2 = vcmp.eq.s32.totalorder %v5104_v9, %v5283_v46  ;;  %2877 = vmatprep.subr.bf16.mxu0 %v4464_v25 }
  0xf9   : > { %4088 = vmatmul.mubr.msk.f32.gmra.mrb[14].mxu0 %vm1187_vm0, %v3960_v35  ;;  %4136 = vmatmul.mubr.msk.f32.gmra.mrb[46].mxu1 %vm1187_vm0, %v4008_v34  ;;  %v4016_v29 = vsel %vm672_vm2, 1.0, %v4918_v2  ;;  %v4467_v35 = vld [vmem:[%s6549_s4 + $0x44] ss:$8 sps:$4 sm:$0xff]   ;;  %vm999_vm2 = vcmp.eq.s32.totalorder %v5104_v9, %v5400_v32  ;;  %v4474_v32 = vld [vmem:[%s6549_s4 + $0x70] ss:$8 sps:$4 sm:$0xff]  }
  0xfa   : > { %v443_v39 = vpop.permute.xlu0 %442  ;;  %1492 = vmatprep.mubr.f32.mxu0 %v4918_v2  ;;  %1780 = vmatprep.mubr.f32.mxu1 %v4918_v2  ;;  %v5443_v0 = vpop.permute.xlu1 %826 }
  0xfb   : > { %vm617_vm4 = vcmp.eq.s32.totalorder %v5104_v9, %v443_v39  ;;  %949 = vperm.xlu1 %4452, %v400_v26   ;;  %946 = vperm.xlu0 %4451, %v399_v38   ;;  %vm1001_vm7 = vcmp.eq.s32.totalorder %v5104_v9, %v5443_v0 }
  0xfc   : > { %v3961_v44 = vsel %vm617_vm4, 1.0, %v4918_v2  ;;  %vm993_vm4 = vcmp.eq.s32.totalorder %v5104_v9, %v5294_v51  ;;  %2878 = vmatpush1.bf16.msra.mxu0 %v4462_v27  ;;  %v4465_v51 = vld [vmem:[%s6549_s4 + $0x40] ss:$8 sps:$4 sm:$0xff]   ;;  %v4025_v0 = vsel %vm1001_vm7, 1.0, %v4918_v2 }
  0xfd   : > { %4089 = vmatmul.mubr.msk.f32.gmra.mrb[16].mxu0 %vm1187_vm0, %v3961_v44  ;;  %4137 = vmatmul.mubr.msk.f32.gmra.mrb[48].mxu1 %vm1187_vm0, %v4009_v43  ;;  %v4017_v26 = vsel %vm993_vm4, 1.0, %v4918_v2  ;;  %vm1000_vm4 = vcmp.eq.s32.totalorder %v5104_v9, %v5423_v55  ;;  %v4483_v27 = vld [vmem:[%s6549_s4 + $0xa0] ss:$8 sps:$4 sm:$0xff]  }
  0xfe   : > { %v446_v50 = vpop.permute.xlu0 %445  ;;  %1498 = vmatprep.mubr.f32.mxu0 %v4918_v2  ;;  %1786 = vmatprep.mubr.f32.mxu1 %v4918_v2  ;;  %v5469_v13 = vpop.permute.xlu1 %829  ;;  %v4024_v5 = vsel %vm1000_vm4, 1.0, %v4918_v2 }
  0xff   : > { %vm618_vm6 = vcmp.eq.s32.totalorder %v5104_v9, %v446_v50  ;;  %955 = vperm.xlu1 %4452, %v402_v45   ;;  %952 = vperm.xlu0 %4451, %v401_v48   ;;  %v4470_v45 = vld [vmem:[%s6549_s4 + $0x54] ss:$8 sps:$4 sm:$0xff]   ;;  %v4468_v48 = vld [vmem:[%s6549_s4 + $0x50] ss:$8 sps:$4 sm:$0xff]   ;;  %vm1002_vm9 = vcmp.eq.s32.totalorder %v5104_v9, %v5469_v13 }
 0x100   : > { %v3962_v53 = vsel %vm618_vm6, 1.0, %v4918_v2  ;;  %2879 = vmatprep.subr.bf16.mxu0 %v4467_v35 }
 0x101   : > { %4090 = vmatmul.mubr.msk.f32.gmra.mrb[18].mxu0 %vm1187_vm0, %v3962_v53  ;;  %4138 = vmatmul.mubr.msk.f32.gmra.mrb[50].mxu1 %vm1187_vm0, %v4010_v52  ;;  %v4020_v53 = vsel %vm996_vm11, 1.0, %v4918_v2 }
 0x102   : > { %v449_v56 = vpop.permute.xlu0 %448  ;;  %1504 = vmatprep.mubr.f32.mxu0 %v4918_v2  ;;  %1792 = vmatprep.mubr.f32.mxu1 %v4918_v2  ;;  %v5489_v22 = vpop.permute.xlu1 %832 }
 0x103   : > { %vm619_vm8 = vcmp.eq.s32.totalorder %v5104_v9, %v449_v56  ;;  %961 = vperm.xlu1 %4452, %v404_v54   ;;  %958 = vperm.xlu0 %4451, %v403_v31   ;;  %v4473_v31 = vld [vmem:[%s6549_s4 + $0x64] ss:$8 sps:$4 sm:$0xff]   ;;  %v4471_v56 = vld [vmem:[%s6549_s4 + $0x60] ss:$8 sps:$4 sm:$0xff]   ;;  %vm1003_vm11 = vcmp.eq.s32.totalorder %v5104_v9, %v5489_v22 }
 0x104   : > { %v3963_v59 = vsel %vm619_vm8, 1.0, %v4918_v2  ;;  %2880 = vmatpush1.bf16.msra.mxu0 %v4465_v51  ;;  %v4027_v18 = vsel %vm1003_vm11, 1.0, %v4918_v2 }
 0x105   : > { %4091 = vmatmul.mubr.msk.f32.gmra.mrb[20].mxu0 %vm1187_vm0, %v3963_v59  ;;  %4139 = vmatmul.mubr.msk.f32.gmra.mrb[52].mxu1 %vm1187_vm0, %v4011_v58 }
 0x106   : > { %v452_v62 = vpop.permute.xlu0 %451  ;;  %1510 = vmatprep.mubr.f32.mxu0 %v4918_v2  ;;  %1798 = vmatprep.mubr.f32.mxu1 %v4918_v2  ;;  %v5513_v33 = vpop.permute.xlu1 %835 }
 0x107   : > { %vm620_vm10 = vcmp.eq.s32.totalorder %v5104_v9, %v452_v62  ;;  %967 = vperm.xlu1 %4452, %v406_v37   ;;  %964 = vperm.xlu0 %4451, %v405_v60   ;;  %v4022_v60 = vsel %vm998_vm15, 1.0, %v4918_v2  ;;  %vm1004_vm13 = vcmp.eq.s32.totalorder %v5104_v9, %v5513_v33 }
 0x108   : > { %v3964_v3 = vsel %vm620_vm10, 1.0, %v4918_v2  ;;  %2881 = vmatprep.subr.bf16.mxu0 %v4470_v45 }
 0x109   : > { %4092 = vmatmul.mubr.msk.f32.gmra.mrb[22].mxu0 %vm1187_vm0, %v3964_v3  ;;  %4140 = vmatmul.mubr.msk.f32.gmra.mrb[54].mxu1 %vm1187_vm0, %v4012_v63  ;;  %v4476_v63 = vld [vmem:[%s6549_s4 + $0x74] ss:$8 sps:$4 sm:$0xff]   ;;  %v4023_v3 = vsel %vm999_vm2, 1.0, %v4918_v2 }
 0x10a   : > { %v455_v6 = vpop.permute.xlu0 %454  ;;  %1516 = vmatprep.mubr.f32.mxu0 %v4918_v2  ;;  %1804 = vmatprep.mubr.f32.mxu1 %v4918_v2  ;;  %v5534_v43 = vpop.permute.xlu1 %838 }
 0x10b   : > { %vm621_vm12 = vcmp.eq.s32.totalorder %v5104_v9, %v455_v6  ;;  %973 = vperm.xlu1 %4452, %v408_v36   ;;  %970 = vperm.xlu0 %4451, %v407_v4   ;;  %vm1005_vm15 = vcmp.eq.s32.totalorder %v5104_v9, %v5534_v43 }
 0x10c   : > { %v3965_v8 = vsel %vm621_vm12, 1.0, %v4918_v2  ;;  %2882 = vmatpush1.bf16.msra.mxu0 %v4468_v48 }
 0x10d   : > { %4093 = vmatmul.mubr.msk.f32.gmra.mrb[24].mxu0 %vm1187_vm0, %v3965_v8  ;;  %4141 = vmatmul.mubr.msk.f32.gmra.mrb[56].mxu1 %vm1187_vm0, %v4013_v7  ;;  %v4479_v8 = vld [vmem:[%s6549_s4 + $0x84] ss:$8 sps:$4 sm:$0xff]  }
 0x10e   : > { %v458_v14 = vpop.permute.xlu0 %457  ;;  %1522 = vmatprep.mubr.f32.mxu0 %v4918_v2  ;;  %1810 = vmatprep.mubr.f32.mxu1 %v4918_v2  ;;  %v5556_v50 = vpop.permute.xlu1 %841 }
 0x10f   : > { %vm622_vm14 = vcmp.eq.s32.totalorder %v5104_v9, %v458_v14  ;;  %979 = vperm.xlu1 %4452, %v410_v10   ;;  %976 = vperm.xlu0 %4451, %v409_v42   ;;  %v4477_v10 = vld [vmem:[%s6549_s4 + $0x80] ss:$8 sps:$4 sm:$0xff]   ;;  %vm1006_vm2 = vcmp.eq.s32.totalorder %v5104_v9, %v5556_v50 }
 0x110   : > { %v3966_v16 = vsel %vm622_vm14, 1.0, %v4918_v2  ;;  %2883 = vmatprep.subr.bf16.mxu0 %v4473_v31  ;;  %v4494_v31 = vld [vmem:[%s6549_s4 + $0xd4] ss:$8 sps:$4 sm:$0xff]  }
 0x111   : > { %4094 = vmatmul.mubr.msk.f32.gmra.mrb[26].mxu0 %vm1187_vm0, %v3966_v16  ;;  %4142 = vmatmul.mubr.msk.f32.gmra.mrb[58].mxu1 %vm1187_vm0, %v4014_v15  ;;  %v4026_v15 = vsel %vm1002_vm9, 1.0, %v4918_v2 }
 0x112   : > { %v461_v19 = vpop.permute.xlu0 %460  ;;  %1528 = vmatprep.mubr.f32.mxu0 %v4918_v2  ;;  %1816 = vmatprep.mubr.f32.mxu1 %v4918_v2  ;;  %v5577_v58 = vpop.permute.xlu1 %844 }
 0x113   : > { %vm623_vm1 = vcmp.eq.s32.totalorder %v5104_v9, %v461_v19  ;;  %985 = vperm.xlu1 %4452, %v412_v41   ;;  %982 = vperm.xlu0 %4451, %v411_v17   ;;  %v4482_v41 = vld [vmem:[%s6549_s4 + $0x94] ss:$8 sps:$4 sm:$0xff]   ;;  %v4480_v17 = vld [vmem:[%s6549_s4 + $0x90] ss:$8 sps:$4 sm:$0xff]   ;;  %vm1007_vm4 = vcmp.eq.s32.totalorder %v5104_v9, %v5577_v58 }
 0x114   : > { %v3967_v23 = vsel %vm623_vm1, 1.0, %v4918_v2  ;;  %2884 = vmatpush1.bf16.msra.mxu0 %v4471_v56 }
 0x115   : > { %4095 = vmatmul.mubr.msk.f32.gmra.mrb[28].mxu0 %vm1187_vm0, %v3967_v23  ;;  %4143 = vmatmul.mubr.msk.f32.gmra.mrb[60].mxu1 %vm1187_vm0, %v4015_v21  ;;  %v4028_v23 = vsel %vm1004_vm13, 1.0, %v4918_v2 }
 0x116   : > { %v464_v28 = vpop.permute.xlu0 %463  ;;  %1534 = vmatprep.mubr.f32.mxu0 %v4918_v2  ;;  %1822 = vmatprep.mubr.f32.mxu1 %v4918_v2  ;;  %v5593_v30 = vpop.permute.xlu1 %847 }
 0x117   : > { %vm624_vm3 = vcmp.eq.s32.totalorder %v5104_v9, %v464_v28  ;;  %991 = vperm.xlu1 %4452, %v414_v47   ;;  %988 = vperm.xlu0 %4451, %v413_v24   ;;  %v4485_v28 = vld [vmem:[%s6549_s4 + $0xa4] ss:$8 sps:$4 sm:$0xff]   ;;  %vm1008_vm7 = vcmp.eq.s32.totalorder %v5104_v9, %v5593_v30 }
 0x118   : > { %v3968_v46 = vsel %vm624_vm3, 1.0, %v4918_v2  ;;  %2885 = vmatprep.subr.bf16.mxu0 %v4476_v63  ;;  %v4032_v45 = vsel %vm1008_vm7, 1.0, %v4918_v2 }
 0x119   : > { %4096 = vmatmul.mubr.msk.f32.gmra.mrb[30].mxu0 %vm1187_vm0, %v3968_v46  ;;  %4144 = vmatmul.mubr.msk.f32.gmra.mrb[62].mxu1 %vm1187_vm0, %v4016_v29  ;;  %v4029_v29 = vsel %vm1005_vm15, 1.0, %v4918_v2 }
 0x11a   : > { %v467_v34 = vpop.permute.xlu0 %466  ;;  %1540 = vmatprep.mubr.f32.mxu0 %v4918_v2  ;;  %2230 = vmatprep.mubr.f32.mxu1 %v4918_v2  ;;  %v5614_v6 = vpop.permute.xlu1 %850 }
 0x11b   : > { %vm625_vm6 = vcmp.eq.s32.totalorder %v5104_v9, %v467_v34  ;;  %2886 = vmatpush1.bf16.msra.mxu0 %v4474_v32  ;;  %v4030_v34 = vsel %vm1006_vm2, 1.0, %v4918_v2  ;;  %vm1009_vm9 = vcmp.eq.s32.totalorder %v5104_v9, %v5614_v6  ;;  %v4498_v32 = vld [vmem:[%s6549_s4 + $0xf0] ss:$8 sps:$4 sm:$0xff]  }
 0x11c   : > { %v3969_v38 = vsel %vm625_vm6, 1.0, %v4918_v2  ;;  %2887 = vmatprep.subr.bf16.mxu0 %v4479_v8  ;;  %v4033_v50 = vsel %vm1009_vm9, 1.0, %v4918_v2 }
 0x11d   : > { %4097 = vmatmul.mubr.msk.f32.gmra.mrb[32].mxu0 %vm1187_vm0, %v3969_v38  ;;  %4145 = vmatmul.mubr.msk.f32.vlgmr.msra.gmra.mrb[64].mxu1 %vm1973_vm5, %v4017_v26  ;;  %v4488_v38 = vld [vmem:[%s6549_s4 + $0xb4] ss:$8 sps:$4 sm:$0xff]  }
 0x11e   : > { %v470_v39 = vpop.permute.xlu0 %469  ;;  %1546 = vmatprep.mubr.f32.mxu0 %v4918_v2  ;;  %2236 = vmatprep.mubr.f32.mxu1 %v4918_v2  ;;  %v5636_v11 = vpop.permute.xlu1 %853 }
 0x11f   : > { %vm626_vm8 = vcmp.eq.s32.totalorder %v5104_v9, %v470_v39  ;;  %2888 = vmatpush1.bf16.msra.mxu0 %v4477_v10  ;;  %v4486_v39 = vld [vmem:[%s6549_s4 + $0xb0] ss:$8 sps:$4 sm:$0xff]  }
 0x120   : > { %v3970_v44 = vsel %vm626_vm8, 1.0, %v4918_v2  ;;  %2889 = vmatprep.subr.bf16.mxu0 %v4482_v41 }
 0x121   : > { %4098 = vmatmul.mubr.msk.f32.gmra.mrb[34].mxu0 %vm1187_vm0, %v3970_v44  ;;  %4146 = vmatmul.mubr.msk.f32.gmra.mrb[66].mxu1 %vm1973_vm5, %v4018_v40  ;;  %v4031_v40 = vsel %vm1007_vm4, 1.0, %v4918_v2 }
 0x122   : > { %v473_v57 = vpop.permute.xlu0 %472  ;;  %1552 = vmatprep.mubr.f32.mxu0 %v4918_v2  ;;  %2242 = vmatprep.mubr.f32.mxu1 %v4918_v2  ;;  %v5657_v19 = vpop.permute.xlu1 %856 }
 0x123   : > { %vm627_vm10 = vcmp.eq.s32.totalorder %v5104_v9, %v473_v57  ;;  %2890 = vmatpush1.bf16.msra.mxu0 %v4480_v17 }
 0x124   : > { %v3971_v49 = vsel %vm627_vm10, 1.0, %v4918_v2  ;;  %2891 = vmatprep.subr.bf16.mxu0 %v4485_v28 }
 0x125   : > { %4099 = vmatmul.mubr.msk.f32.gmra.mrb[36].mxu0 %vm1187_vm0, %v3971_v49  ;;  %4147 = vmatmul.mubr.msk.f32.gmra.mrb[68].mxu1 %vm1973_vm5, %v4019_v1  ;;  %v4489_v1 = vld [vmem:[%s6549_s4 + $0xc0] ss:$8 sps:$4 sm:$0xff]   ;;  %v4491_v49 = vld [vmem:[%s6549_s4 + $0xc4] ss:$8 sps:$4 sm:$0xff]  }
 0x126   : > { %v476_v52 = vpop.permute.xlu0 %475  ;;  %1558 = vmatprep.mubr.f32.mxu0 %v4918_v2  ;;  %2248 = vmatprep.mubr.f32.mxu1 %v4918_v2  ;;  %v5673_v24 = vpop.permute.xlu1 %859 }
 0x127   : > { %vm628_vm12 = vcmp.eq.s32.totalorder %v5104_v9, %v476_v52  ;;  %2892 = vmatpush1.bf16.msra.mxu0 %v4483_v27  ;;  %vm1012_vm11 = vcmp.eq.s32.totalorder %v5104_v9, %v5673_v24 }
 0x128   : > { %v3972_v54 = vsel %vm628_vm12, 1.0, %v4918_v2  ;;  %2893 = vmatprep.subr.bf16.mxu0 %v4488_v38 }
 0x129   : > { %4100 = vmatmul.mubr.msk.f32.gmra.mrb[38].mxu0 %vm1187_vm0, %v3972_v54  ;;  %4148 = vmatmul.mubr.msk.f32.gmra.mrb[70].mxu1 %vm1973_vm5, %v4020_v53 }
 0x12a   : > { %v479_v12 = vpop.permute.xlu0 %478  ;;  %1564 = vmatprep.mubr.f32.mxu0 %v4918_v2  ;;  %2254 = vmatprep.mubr.f32.mxu1 %v4918_v2  ;;  %v863_v35 = vpop.permute.xlu1 %862 }
 0x12b   : > { %vm629_vm14 = vcmp.eq.s32.totalorder %v5104_v9, %v479_v12  ;;  %2894 = vmatpush1.bf16.msra.mxu0 %v4486_v39  ;;  %v4492_v12 = vld [vmem:[%s6549_s4 + $0xd0] ss:$8 sps:$4 sm:$0xff]  }
 0x12c   : > { %v3973_v59 = vsel %vm629_vm14, 1.0, %v4918_v2  ;;  %2895 = vmatprep.subr.bf16.mxu0 %v4491_v49 }
 0x12d   : > { %4101 = vmatmul.mubr.msk.f32.gmra.mrb[40].mxu0 %vm1187_vm0, %v3973_v59  ;;  %4149 = vmatmul.mubr.msk.f32.gmra.mrb[72].mxu1 %vm1973_vm5, %v4021_v20  ;;  %v4036_v20 = vsel %vm1012_vm11, 1.0, %v4918_v2  ;;  %v4495_v59 = vld [vmem:[%s6549_s4 + $0xe0] ss:$8 sps:$4 sm:$0xff]  }
 0x12e   : > { %v482_v37 = vpop.permute.xlu0 %481  ;;  %1570 = vmatprep.mubr.f32.mxu0 %v4918_v2  ;;  %2260 = vmatprep.mubr.f32.mxu1 %v4918_v2  ;;  %v866_v44 = vpop.permute.xlu1 %865 }
 0x12f   : > { %vm630_vm1 = vcmp.eq.s32.totalorder %v5104_v9, %v482_v37  ;;  %2896 = vmatpush1.bf16.msra.mxu0 %v4489_v1  ;;  %v4497_v37 = vld [vmem:[%s6549_s4 + $0xe4] ss:$8 sps:$4 sm:$0xff]   ;;  %vm1014_vm13 = vcmp.eq.s32.totalorder %v5104_v9, %v866_v44 }
 0x130   : > { %v3974_v61 = vsel %vm630_vm1, 1.0, %v4918_v2  ;;  %2897 = vmatprep.subr.bf16.mxu0 %v4494_v31  ;;  %v4038_v30 = vsel %vm1014_vm13, 1.0, %v4918_v2 }
 0x131   : > { %4102 = vmatmul.mubr.msk.f32.gmra.mrb[42].mxu0 %vm1187_vm0, %v3974_v61  ;;  %4150 = vmatmul.mubr.msk.f32.gmra.mrb[74].mxu1 %vm1973_vm5, %v4022_v60 }
 0x132   : > { %v485_v62 = vpop.permute.xlu0 %484  ;;  %1576 = vmatprep.mubr.f32.mxu0 %v4918_v2  ;;  %2266 = vmatprep.mubr.f32.mxu1 %v4918_v2  ;;  %v869_v52 = vpop.permute.xlu1 %868 }
 0x133   : > { %vm631_vm3 = vcmp.eq.s32.totalorder %v5104_v9, %v485_v62  ;;  %2898 = vmatpush1.bf16.msra.mxu0 %v4492_v12 }
 0x134   : > { %v3975_v36 = vsel %vm631_vm3, 1.0, %v4918_v2  ;;  %2899 = vmatprep.subr.bf16.mxu0 %v4497_v37 }
 0x135   : > { %4103 = vmatmul.mubr.msk.f32.gmra.mrb[44].mxu0 %vm1187_vm0, %v3975_v36  ;;  %4151 = vmatmul.mubr.msk.f32.gmra.mrb[76].mxu1 %vm1973_vm5, %v4023_v3  ;;  %v4500_v3 = vld [vmem:[%s6549_s4 + $0xf4] ss:$8 sps:$4 sm:$0xff]  }
 0x136   : > { %v488_v4 = vpop.permute.xlu0 %487  ;;  %1582 = vmatprep.mubr.f32.mxu0 %v4918_v2  ;;  %2272 = vmatprep.mubr.f32.mxu1 %v4918_v2  ;;  %v872_v54 = vpop.permute.xlu1 %871 }
 0x137   : > { %vm632_vm6 = vcmp.eq.s32.totalorder %v5104_v9, %v488_v4  ;;  %2900 = vmatpush1.bf16.msra.mxu0 %v4495_v59  ;;  %vm1016_vm15 = vcmp.eq.s32.totalorder %v5104_v9, %v872_v54 }
 0x138   : > { %v3976_v7 = vsel %vm632_vm6, 1.0, %v4918_v2  ;;  %2901 = vmatprep.subr.bf16.mxu0 %v4500_v3 }
 0x139   : > { %4104 = vmatmul.mubr.msk.f32.gmra.mrb[46].mxu0 %vm1187_vm0, %v3976_v7  ;;  %4152 = vmatmul.mubr.msk.f32.gmra.mrb[78].mxu1 %vm1973_vm5, %v4024_v5  ;;  %v4040_v7 = vsel %vm1016_vm15, 1.0, %v4918_v2 }
 0x13a   : > { %v491_v55 = vpop.permute.xlu0 %490  ;;  %1588 = vmatprep.mubr.f32.mxu0 %v4918_v2  ;;  %2278 = vmatprep.mubr.f32.mxu1 %v4918_v2  ;;  %v875_v58 = vpop.permute.xlu1 %874 }
 0x13b   : > { %vm633_vm8 = vcmp.eq.s32.totalorder %v5104_v9, %v491_v55  ;;  %2902 = vmatpush1.bf16.msra.mxu0 %v4498_v32 }
 0x13c   : > { %v3977_v42 = vsel %vm633_vm8, 1.0, %v4918_v2 }
 0x13d   : > { %4105 = vmatmul.mubr.msk.f32.gmra.mrb[48].mxu0 %vm1187_vm0, %v3977_v42  ;;  %4153 = vmatmul.mubr.msk.f32.gmra.mrb[80].mxu1 %vm1973_vm5, %v4025_v0 }
 0x13e   : > { %v494_v14 = vpop.permute.xlu0 %493  ;;  %1594 = vmatprep.mubr.f32.mxu0 %v4918_v2  ;;  %2284 = vmatprep.mubr.f32.mxu1 %v4918_v2  ;;  %v878_v61 = vpop.permute.xlu1 %877 }
 0x13f   : > { %vm634_vm10 = vcmp.eq.s32.totalorder %v5104_v9, %v494_v14  ;;  %vm1018_vm2 = vcmp.eq.s32.totalorder %v5104_v9, %v878_v61 }
 0x140   : > { %v3978_v16 = vsel %vm634_vm10, 1.0, %v4918_v2  ;;  %vm1010_vm10 = vcmp.eq.s32.totalorder %v5104_v9, %v5636_v11  ;;  %v4042_v14 = vsel %vm1018_vm2, 1.0, %v4918_v2 }
 0x141   : > { %4106 = vmatmul.mubr.msk.f32.gmra.mrb[50].mxu0 %vm1187_vm0, %v3978_v16  ;;  %4154 = vmatmul.mubr.msk.f32.gmra.mrb[82].mxu1 %vm1973_vm5, %v4026_v15  ;;  %v4034_v53 = vsel %vm1010_vm10, 1.0, %v4918_v2 }
 0x142   : > { %v497_v13 = vpop.permute.xlu0 %496  ;;  %1600 = vmatprep.mubr.f32.mxu0 %v4918_v2  ;;  %2290 = vmatprep.mubr.f32.mxu1 %v4918_v2  ;;  %v881_v4 = vpop.permute.xlu1 %880 }
 0x143   : > { %vm635_vm12 = vcmp.eq.s32.totalorder %v5104_v9, %v497_v13 }
 0x144   : > { %v3979_v21 = vsel %vm635_vm12, 1.0, %v4918_v2  ;;  %vm1013_vm12 = vcmp.eq.s32.totalorder %v5104_v9, %v863_v35 }
 0x145   : > { %4107 = vmatmul.mubr.msk.f32.gmra.mrb[52].mxu0 %vm1187_vm0, %v3979_v21  ;;  %4155 = vmatmul.mubr.msk.f32.gmra.mrb[84].mxu1 %vm1973_vm5, %v4027_v18  ;;  %v4037_v60 = vsel %vm1013_vm12, 1.0, %v4918_v2 }
 0x146   : > { %v500_v22 = vpop.permute.xlu0 %499  ;;  %1606 = vmatprep.mubr.f32.mxu0 %v4918_v2  ;;  %2296 = vmatprep.mubr.f32.mxu1 %v4918_v2  ;;  %v884_v10 = vpop.permute.xlu1 %883 }
 0x147   : > { %vm636_vm14 = vcmp.eq.s32.totalorder %v5104_v9, %v500_v22  ;;  %vm1020_vm4 = vcmp.eq.s32.totalorder %v5104_v9, %v884_v10 }
 0x148   : > { %v3980_v47 = vsel %vm636_vm14, 1.0, %v4918_v2  ;;  %vm1015_vm14 = vcmp.eq.s32.totalorder %v5104_v9, %v869_v52  ;;  %v4044_v21 = vsel %vm1020_vm4, 1.0, %v4918_v2 }
 0x149   : > { %4108 = vmatmul.mubr.msk.f32.gmra.mrb[54].mxu0 %vm1187_vm0, %v3980_v47  ;;  %4156 = vmatmul.mubr.msk.f32.gmra.mrb[86].mxu1 %vm1973_vm5, %v4028_v23  ;;  %v4039_v36 = vsel %vm1015_vm14, 1.0, %v4918_v2 }
 0x14a   : > { %v503_v25 = vpop.permute.xlu0 %502  ;;  %1612 = vmatprep.mubr.f32.mxu0 %v4918_v2  ;;  %2302 = vmatprep.mubr.f32.mxu1 %v4918_v2  ;;  %v887_v15 = vpop.permute.xlu1 %886 }
 0x14b   : > { %vm637_vm1 = vcmp.eq.s32.totalorder %v5104_v9, %v503_v25 }
 0x14c   : > { %v3981_v46 = vsel %vm637_vm1, 1.0, %v4918_v2  ;;  %vm1017_vm1 = vcmp.eq.s32.totalorder %v5104_v9, %v875_v58 }
 0x14d   : > { %4109 = vmatmul.mubr.msk.f32.gmra.mrb[56].mxu0 %vm1187_vm0, %v3981_v46  ;;  %4157 = vmatmul.mubr.msk.f32.gmra.mrb[88].mxu1 %vm1973_vm5, %v4029_v29  ;;  %v4041_v0 = vsel %vm1017_vm1, 1.0, %v4918_v2 }
 0x14e   : > { %v506_v33 = vpop.permute.xlu0 %505  ;;  %1618 = vmatprep.mubr.f32.mxu0 %v4918_v2  ;;  %2308 = vmatprep.mubr.f32.mxu1 %v4918_v2 }
 0x14f   : > { %vm638_vm3 = vcmp.eq.s32.totalorder %v5104_v9, %v506_v33 }
 0x150   : > { %v3982_v51 = vsel %vm638_vm3, 1.0, %v4918_v2  ;;  %vm1019_vm3 = vcmp.eq.s32.totalorder %v5104_v9, %v881_v4 }
 0x151   : > { %4110 = vmatmul.mubr.msk.f32.gmra.mrb[58].mxu0 %vm1187_vm0, %v3982_v51  ;;  %4158 = vmatmul.mubr.msk.f32.gmra.mrb[90].mxu1 %vm1973_vm5, %v4030_v34  ;;  %v4043_v41 = vsel %vm1019_vm3, 1.0, %v4918_v2 }
 0x152   : > { %v509_v26 = vpop.permute.xlu0 %508  ;;  %1624 = vmatprep.mubr.f32.mxu0 %v4918_v2  ;;  %2314 = vmatprep.mubr.f32.mxu1 %v4918_v2 }
 0x153   : > { %vm639_vm6 = vcmp.eq.s32.totalorder %v5104_v9, %v509_v26 }
 0x154   : > { %v3983_v43 = vsel %vm639_vm6, 1.0, %v4918_v2  ;;  %vm1021_vm6 = vcmp.eq.s32.totalorder %v5104_v9, %v887_v15 }
 0x155   : > { %4111 = vmatmul.mubr.msk.f32.gmra.mrb[60].mxu0 %vm1187_vm0, %v3983_v43  ;;  %4159 = vmatmul.mubr.msk.f32.gmra.mrb[92].mxu1 %vm1973_vm5, %v4031_v40  ;;  %v4045_v47 = vsel %vm1021_vm6, 1.0, %v4918_v2 }
 0x156   : > { %v512_v57 = vpop.permute.xlu0 %511  ;;  %1630 = vmatprep.mubr.f32.mxu0 %v4918_v2  ;;  %2320 = vmatprep.mubr.f32.mxu1 %v4918_v2 }
 0x157   : > { %vm640_vm8 = vcmp.eq.s32.totalorder %v5104_v9, %v512_v57 }
 0x158   : > { %v3984_v48 = vsel %vm640_vm8, 1.0, %v4918_v2 }
 0x159   : > { %4112 = vmatmul.mubr.msk.f32.gmra.mrb[62].mxu0 %vm1187_vm0, %v3984_v48  ;;  %4160 = vmatmul.mubr.msk.f32.gmra.mrb[94].mxu1 %vm1973_vm5, %v4032_v45  ;;  %vm1011_vm0 = vcmp.eq.s32.totalorder %v5104_v9, %v5657_v19  ;;  %v890_v19 = vpop.permute.xlu1 %889 }
 0x15a   : > { %2326 = vmatprep.mubr.f32.mxu1 %v4918_v2  ;;  %v4035_v56 = vsel %vm1011_vm0, 1.0, %v4918_v2  ;;  %vm1022_vm7 = vcmp.eq.s32.totalorder %v5104_v9, %v890_v19  ;;  %v899_v26 = vpop.permute.xlu0 %898 }
 0x15b   : > { %v4046_v27 = vsel %vm1022_vm7, 1.0, %v4918_v2  ;;  %vm1025_vm10 = vcmp.eq.s32.totalorder %v5104_v9, %v899_v26 }
 0x15c   : > { %v4049_v44 = vsel %vm1025_vm10, 1.0, %v4918_v2 }
 0x15d   : > { %4161 = vmatmul.mubr.msk.f32.gmra.mrb[96].mxu1 %vm1973_vm5, %v4033_v50  ;;  %v893_v24 = vpop.permute.xlu1 %892 }
 0x15e   : > { %2332 = vmatprep.mubr.f32.mxu1 %v4918_v2  ;;  %vm1023_vm8 = vcmp.eq.s32.totalorder %v5104_v9, %v893_v24  ;;  %v905_v48 = vpop.permute.xlu0 %904 }
 0x15f   : > { %v4047_v34 = vsel %vm1023_vm8, 1.0, %v4918_v2  ;;  %vm1027_vm11 = vcmp.eq.s32.totalorder %v5104_v9, %v905_v48 }
 0x161   : > { %4162 = vmatmul.mubr.msk.f32.gmra.mrb[98].mxu1 %vm1973_vm5, %v4034_v53  ;;  %v896_v33 = vpop.permute.xlu1 %895  ;;  %v4051_v53 = vsel %vm1027_vm11, 1.0, %v4918_v2 }
 0x162   : > { %2338 = vmatprep.mubr.f32.mxu1 %v4918_v2  ;;  %vm1024_vm9 = vcmp.eq.s32.totalorder %v5104_v9, %v896_v33  ;;  %v911_v31 = vpop.permute.xlu0 %910 }
 0x163   : > { %v4048_v38 = vsel %vm1024_vm9, 1.0, %v4918_v2  ;;  %vm1029_vm13 = vcmp.eq.s32.totalorder %v5104_v9, %v911_v31 }
 0x164   : > { %v4053_v37 = vsel %vm1029_vm13, 1.0, %v4918_v2 }
 0x165   : > { %4163 = vmatmul.mubr.msk.f32.gmra.mrb[100].mxu1 %vm1973_vm5, %v4035_v56  ;;  %v902_v43 = vpop.permute.xlu1 %901 }
 0x166   : > { %2344 = vmatprep.mubr.f32.mxu1 %v4918_v2  ;;  %vm1026_vm0 = vcmp.eq.s32.totalorder %v5104_v9, %v902_v43 }
 0x167   : > { %v4050_v1 = vsel %vm1026_vm0, 1.0, %v4918_v2 }
 0x169   : > { %4164 = vmatmul.mubr.msk.f32.gmra.mrb[102].mxu1 %vm1973_vm5, %v4036_v20  ;;  %v908_v52 = vpop.permute.xlu1 %907 }
 0x16a   : > { %2350 = vmatprep.mubr.f32.mxu1 %v4918_v2  ;;  %vm1028_vm12 = vcmp.eq.s32.totalorder %v5104_v9, %v908_v52 }
 0x16b   : > { %v4052_v56 = vsel %vm1028_vm12, 1.0, %v4918_v2 }
 0x16d   : > { %4165 = vmatmul.mubr.msk.f32.gmra.mrb[104].mxu1 %vm1973_vm5, %v4037_v60  ;;  %v914_v59 = vpop.permute.xlu1 %913 }
 0x16e   : > { %2356 = vmatprep.mubr.f32.mxu1 %v4918_v2  ;;  %vm1030_vm14 = vcmp.eq.s32.totalorder %v5104_v9, %v914_v59 }
 0x170   : > { %v1638_v62 = vpop.f32.mrb[0].mxu1 }
 0x171   : > { %1909 = vst [vmem:[%s5771_s13 + $0x200] sm:$0xff] %v1638_v62  ;;  %v1640_v63 = vpop.f32.mrb[1].mxu1  ;;  %4166 = vmatmul.mubr.msk.f32.gmra.mrb[106].mxu1 %vm1973_vm5, %v4038_v30  ;;  %v917_v30 = vpop.permute.xlu0 %916  ;;  %v4054_v62 = vsel %vm1030_vm14, 1.0, %v4918_v2 }
 0x172   : > { %1910 = vst [vmem:[%s5771_s13 + $0x208] sm:$0xff] %v1640_v63  ;;  %2362 = vmatprep.mubr.f32.mxu1 %v4918_v2  ;;  %vm1031_vm15 = vcmp.eq.s32.totalorder %v5104_v9, %v917_v30  ;;  %v920_v4 = vpop.permute.xlu1 %919 }
 0x173   : > { %vm1032_vm1 = vcmp.eq.s32.totalorder %v5104_v9, %v920_v4 }
 0x174   : > { %v1644_v5 = vpop.f32.mrb[2].mxu1 }
 0x175   : > { %1911 = vst [vmem:[%s5771_s13 + $0x210] sm:$0xff] %v1644_v5  ;;  %v1646_v6 = vpop.f32.mrb[3].mxu1  ;;  %4167 = vmatmul.mubr.msk.f32.gmra.mrb[108].mxu1 %vm1973_vm5, %v4039_v36  ;;  %v4055_v5 = vsel %vm1031_vm15, 1.0, %v4918_v2  ;;  %v923_v10 = vpop.permute.xlu0 %922 }
 0x176   : > { %1912 = vst [vmem:[%s5771_s13 + $0x218] sm:$0xff] %v1646_v6  ;;  %2368 = vmatprep.mubr.f32.mxu1 %v4918_v2  ;;  %vm1033_vm2 = vcmp.eq.s32.totalorder %v5104_v9, %v923_v10 }
 0x178   : > { %v1650_v55 = vpop.f32.mrb[4].mxu1 }
 0x179   : > { %1913 = vst [vmem:[%s5771_s13 + $0x220] sm:$0xff] %v1650_v55  ;;  %v1652_v8 = vpop.f32.mrb[5].mxu1  ;;  %4168 = vmatmul.mubr.msk.f32.gmra.mrb[110].mxu1 %vm1973_vm5, %v4040_v7 }
 0x17a   : > { %1914 = vst [vmem:[%s5771_s13 + $0x228] sm:$0xff] %v1652_v8  ;;  %2374 = vmatprep.mubr.f32.mxu1 %v4918_v2 }
 0x17c   : > { %v1656_v42 = vpop.f32.mrb[6].mxu1 }
 0x17d   : > { %1915 = vst [vmem:[%s5771_s13 + $0x230] sm:$0xff] %v1656_v42  ;;  %v1658_v11 = vpop.f32.mrb[7].mxu1  ;;  %4169 = vmatmul.mubr.msk.f32.gmra.mrb[112].mxu1 %vm1973_vm5, %v4041_v0  ;;  %v4056_v0 = vsel %vm1032_vm1, 1.0, %v4918_v2 }
 0x17e   : > { %1916 = vst [vmem:[%s5771_s13 + $0x238] sm:$0xff] %v1658_v11  ;;  %2380 = vmatprep.mubr.f32.mxu1 %v4918_v2 }
 0x180   : > { %v1662_v16 = vpop.f32.mrb[8].mxu1 }
 0x181   : > { %1917 = vst [vmem:[%s5771_s13 + $0x240] sm:$0xff] %v1662_v16  ;;  %v1664_v13 = vpop.f32.mrb[9].mxu1  ;;  %4170 = vmatmul.mubr.msk.f32.gmra.mrb[114].mxu1 %vm1973_vm5, %v4042_v14  ;;  %v926_v16 = vpop.permute.xlu1 %925 }
 0x182   : > { %1918 = vst [vmem:[%s5771_s13 + $0x248] sm:$0xff] %v1664_v13  ;;  %2386 = vmatprep.mubr.f32.mxu1 %v4918_v2  ;;  %v4057_v13 = vsel %vm1033_vm2, 1.0, %v4918_v2  ;;  %vm1034_vm3 = vcmp.eq.s32.totalorder %v5104_v9, %v926_v16 }
 0x184   : > { %v1668_v17 = vpop.f32.mrb[10].mxu1 }
 0x185   : > { %1919 = vst [vmem:[%s5771_s13 + $0x250] sm:$0xff] %v1668_v17  ;;  %v1670_v18 = vpop.f32.mrb[11].mxu1  ;;  %4171 = vmatmul.mubr.msk.f32.gmra.mrb[116].mxu1 %vm1973_vm5, %v4043_v41 }
 0x186   : > { %1920 = vst [vmem:[%s5771_s13 + $0x258] sm:$0xff] %v1670_v18  ;;  %2392 = vmatprep.mubr.f32.mxu1 %v4918_v2 }
 0x188   : > { %v1674_v22 = vpop.f32.mrb[12].mxu1 }
 0x189   : > { %1921 = vst [vmem:[%s5771_s13 + $0x260] sm:$0xff] %v1674_v22  ;;  %v1676_v23 = vpop.f32.mrb[13].mxu1  ;;  %4172 = vmatmul.mubr.msk.f32.gmra.mrb[118].mxu1 %vm1973_vm5, %v4044_v21  ;;  %v929_v21 = vpop.permute.xlu0 %928  ;;  %v4058_v22 = vsel %vm1034_vm3, 1.0, %v4918_v2 }
 0x18a   : > { %1922 = vst [vmem:[%s5771_s13 + $0x268] sm:$0xff] %v1676_v23  ;;  %2398 = vmatprep.mubr.f32.mxu1 %v4918_v2  ;;  %vm1035_vm4 = vcmp.eq.s32.totalorder %v5104_v9, %v929_v21 }
 0x18c   : > { %v1680_v25 = vpop.f32.mrb[14].mxu1 }
 0x18d   : > { %1923 = vst [vmem:[%s5771_s13 + $0x270] sm:$0xff] %v1680_v25  ;;  %v1682_v28 = vpop.f32.mrb[15].mxu1  ;;  %4173 = vmatmul.mubr.msk.f32.gmra.mrb[120].mxu1 %vm1973_vm5, %v4045_v47 }
 0x18e   : > { %1924 = vst [vmem:[%s5771_s13 + $0x278] sm:$0xff] %v1682_v28  ;;  %2404 = vmatprep.mubr.f32.mxu1 %v4918_v2  ;;  %v932_v28 = vpop.permute.xlu1 %931 }
 0x18f   : > { %vm1036_vm6 = vcmp.eq.s32.totalorder %v5104_v9, %v932_v28 }
 0x190   : > { %v1686_v29 = vpop.f32.mrb[16].mxu1 }
 0x191   : > { %1925 = vst [vmem:[%s5771_s13 + $0x280] sm:$0xff] %v1686_v29  ;;  %v1688_v46 = vpop.f32.mrb[17].mxu1  ;;  %4174 = vmatmul.mubr.msk.f32.gmra.mrb[122].mxu1 %vm1973_vm5, %v4046_v27  ;;  %v4059_v27 = vsel %vm1035_vm4, 1.0, %v4918_v2 }
 0x192   : > { %1926 = vst [vmem:[%s5771_s13 + $0x288] sm:$0xff] %v1688_v46  ;;  %2410 = vmatprep.mubr.f32.mxu1 %v4918_v2  ;;  %v938_v43 = vpop.permute.xlu1 %937 }
 0x193   : > { %vm1038_vm8 = vcmp.eq.s32.totalorder %v5104_v9, %v938_v43 }
 0x194   : > { %v1692_v35 = vpop.f32.mrb[18].mxu1 }
 0x195   : > { %1927 = vst [vmem:[%s5771_s13 + $0x290] sm:$0xff] %v1692_v35  ;;  %v1694_v51 = vpop.f32.mrb[19].mxu1  ;;  %4175 = vmatmul.mubr.msk.f32.gmra.mrb[124].mxu1 %vm1973_vm5, %v4047_v34  ;;  %v935_v35 = vpop.permute.xlu0 %934 }
 0x196   : > { %1928 = vst [vmem:[%s5771_s13 + $0x298] sm:$0xff] %v1694_v51  ;;  %2416 = vmatprep.mubr.f32.mxu1 %v4918_v2  ;;  %v4060_v51 = vsel %vm1036_vm6, 1.0, %v4918_v2  ;;  %vm1037_vm7 = vcmp.eq.s32.totalorder %v5104_v9, %v935_v35  ;;  %v944_v31 = vpop.permute.xlu1 %943 }
 0x197   : > { %vm1040_vm10 = vcmp.eq.s32.totalorder %v5104_v9, %v944_v31 }
 0x198   : > { %v1698_v39 = vpop.f32.mrb[20].mxu1 }
 0x199   : > { %1929 = vst [vmem:[%s5771_s13 + $0x2a0] sm:$0xff] %v1698_v39  ;;  %v1700_v40 = vpop.f32.mrb[21].mxu1  ;;  %4176 = vmatmul.mubr.msk.f32.gmra.mrb[126].mxu1 %vm1973_vm5, %v4048_v38 }
 0x19a   : > { %1930 = vst [vmem:[%s5771_s13 + $0x2a8] sm:$0xff] %v1700_v40  ;;  %2422 = vmatprep.mubr.f32.mxu1 %v4918_v2  ;;  %v950_v4 = vpop.permute.xlu1 %949 }
 0x19b   : > { %vm1042_vm11 = vcmp.eq.s32.totalorder %v5104_v9, %v950_v4 }
 0x19c   : > { %v1704_v57 = vpop.f32.mrb[22].mxu1 }
 0x19d   : > { %1931 = vst [vmem:[%s5771_s13 + $0x2b0] sm:$0xff] %v1704_v57  ;;  %v1706_v45 = vpop.f32.mrb[23].mxu1  ;;  %4177 = vmatmul.mubr.msk.f32.gmra.mrb[128].mxu1 %vm1973_vm5, %v4049_v44  ;;  %v4061_v44 = vsel %vm1037_vm7, 1.0, %v4918_v2 }
 0x19e   : > { %1932 = vst [vmem:[%s5771_s13 + $0x2b8] sm:$0xff] %v1706_v45  ;;  %2428 = vmatprep.mubr.f32.mxu1 %v4918_v2  ;;  %v956_v21 = vpop.permute.xlu1 %955 }
 0x19f   : > { %vm1044_vm13 = vcmp.eq.s32.totalorder %v5104_v9, %v956_v21 }
 0x1a0   : > { %v1710_v49 = vpop.f32.mrb[24].mxu1 }
 0x1a1   : > { %1933 = vst [vmem:[%s5771_s13 + $0x2c0] sm:$0xff] %v1710_v49  ;;  %v1712_v50 = vpop.f32.mrb[25].mxu1  ;;  %4178 = vmatmul.mubr.msk.f32.gmra.mrb[130].mxu1 %vm1973_vm5, %v4050_v1  ;;  %v941_v49 = vpop.permute.xlu0 %940 }
 0x1a2   : > { %1934 = vst [vmem:[%s5771_s13 + $0x2c8] sm:$0xff] %v1712_v50  ;;  %2434 = vmatprep.mubr.f32.mxu1 %v4918_v2  ;;  %v4062_v50 = vsel %vm1038_vm8, 1.0, %v4918_v2  ;;  %vm1039_vm9 = vcmp.eq.s32.totalorder %v5104_v9, %v941_v49  ;;  %v962_v43 = vpop.permute.xlu1 %961 }
 0x1a3   : > { %vm1046_vm15 = vcmp.eq.s32.totalorder %v5104_v9, %v962_v43 }
 0x1a4   : > { %v1716_v54 = vpop.f32.mrb[26].mxu1 }
 0x1a5   : > { %1935 = vst [vmem:[%s5771_s13 + $0x2d0] sm:$0xff] %v1716_v54  ;;  %v1718_v12 = vpop.f32.mrb[27].mxu1  ;;  %4179 = vmatmul.mubr.msk.f32.gmra.mrb[132].mxu1 %vm1973_vm5, %v4051_v53 }
 0x1a6   : > { %1936 = vst [vmem:[%s5771_s13 + $0x2d8] sm:$0xff] %v1718_v12  ;;  %2440 = vmatprep.mubr.f32.mxu1 %v4918_v2 }
 0x1a8   : > { %v1722_v20 = vpop.f32.mrb[28].mxu1 }
 0x1a9   : > { %1937 = vst [vmem:[%s5771_s13 + $0x2e0] sm:$0xff] %v1722_v20  ;;  %v1724_v58 = vpop.f32.mrb[29].mxu1  ;;  %4180 = vmatmul.mubr.msk.f32.gmra.mrb[134].mxu1 %vm1973_vm5, %v4052_v56  ;;  %v4063_v56 = vsel %vm1039_vm9, 1.0, %v4918_v2 }
 0x1aa   : > { %1938 = vst [vmem:[%s5771_s13 + $0x2e8] sm:$0xff] %v1724_v58  ;;  %2446 = vmatprep.mubr.f32.mxu1 %v4918_v2 }
 0x1ac   : > { %v1728_v60 = vpop.f32.mrb[30].mxu1 }
 0x1ad   : > { %1939 = vst [vmem:[%s5771_s13 + $0x2f0] sm:$0xff] %v1728_v60  ;;  %v1730_v61 = vpop.f32.mrb[31].mxu1  ;;  %4181 = vmatmul.mubr.msk.f32.gmra.mrb[136].mxu1 %vm1973_vm5, %v4053_v37  ;;  %v947_v60 = vpop.permute.xlu0 %946 }
 0x1ae   : > { %1940 = vst [vmem:[%s5771_s13 + $0x2f8] sm:$0xff] %v1730_v61  ;;  %2452 = vmatprep.mubr.f32.mxu1 %v4918_v2  ;;  %v4064_v61 = vsel %vm1040_vm10, 1.0, %v4918_v2  ;;  %vm1041_vm0 = vcmp.eq.s32.totalorder %v5104_v9, %v947_v60 }
 0x1b0   : > { %v5874_v63 = vpop.f32.mrb[0].mxu0  ;;  %v1734_v32 = vpop.f32.mrb[32].mxu1 }
 0x1b1   : > { %1845 = vst [vmem:[%s5771_s13] sm:$0xff] %v5874_v63  ;;  %1941 = vst [vmem:[%s5771_s13 + $0x300] sm:$0xff] %v1734_v32  ;;  %v5880_v3 = vpop.f32.mrb[1].mxu0  ;;  %v1736_v36 = vpop.f32.mrb[33].mxu1  ;;  %4182 = vmatmul.mubr.msk.f32.gmra.mrb[138].mxu1 %vm1973_vm5, %v4054_v62 }
 0x1b2   : > { %1846 = vst [vmem:[%s5771_s13 + $0x8] sm:$0xff] %v5880_v3  ;;  %1942 = vst [vmem:[%s5771_s13 + $0x308] sm:$0xff] %v1736_v36  ;;  %2458 = vmatprep.mubr.f32.mxu1 %v4918_v2 }
 0x1b4   : > { %v5888_v6 = vpop.f32.mrb[2].mxu0  ;;  %v1740_v7 = vpop.f32.mrb[34].mxu1 }
 0x1b5   : > { %1847 = vst [vmem:[%s5771_s13 + $0x10] sm:$0xff] %v5888_v6  ;;  %1943 = vst [vmem:[%s5771_s13 + $0x310] sm:$0xff] %v1740_v7  ;;  %v5894_v55 = vpop.f32.mrb[3].mxu0  ;;  %v1742_v8 = vpop.f32.mrb[35].mxu1  ;;  %4183 = vmatmul.mubr.msk.f32.gmra.mrb[140].mxu1 %vm1973_vm5, %v4055_v5  ;;  %v4065_v5 = vsel %vm1041_vm0, 1.0, %v4918_v2 }
 0x1b6   : > { %1848 = vst [vmem:[%s5771_s13 + $0x18] sm:$0xff] %v5894_v55  ;;  %1944 = vst [vmem:[%s5771_s13 + $0x318] sm:$0xff] %v1742_v8  ;;  %2464 = vmatprep.mubr.f32.mxu1 %v4918_v2 }
 0x1b8   : > { %v5902_v42 = vpop.f32.mrb[4].mxu0  ;;  %v1746_v11 = vpop.f32.mrb[36].mxu1 }
 0x1b9   : > { %1849 = vst [vmem:[%s5771_s13 + $0x20] sm:$0xff] %v5902_v42  ;;  %1945 = vst [vmem:[%s5771_s13 + $0x320] sm:$0xff] %v1746_v11  ;;  %v5908_v14 = vpop.f32.mrb[5].mxu0  ;;  %v1748_v15 = vpop.f32.mrb[37].mxu1  ;;  %4184 = vmatmul.mubr.msk.f32.gmra.mrb[142].mxu1 %vm1973_vm5, %v4056_v0 }
 0x1ba   : > { %1850 = vst [vmem:[%s5771_s13 + $0x28] sm:$0xff] %v5908_v14  ;;  %1946 = vst [vmem:[%s5771_s13 + $0x328] sm:$0xff] %v1748_v15  ;;  %2470 = vmatprep.mubr.f32.mxu1 %v4918_v2  ;;  %v953_v11 = vpop.permute.xlu0 %952  ;;  %v4066_v15 = vsel %vm1042_vm11, 1.0, %v4918_v2 }
 0x1bb   : > { %vm1043_vm12 = vcmp.eq.s32.totalorder %v5104_v9, %v953_v11 }
 0x1bc   : > { %v5916_v41 = vpop.f32.mrb[6].mxu0  ;;  %v1752_v17 = vpop.f32.mrb[38].mxu1 }
 0x1bd   : > { %1851 = vst [vmem:[%s5771_s13 + $0x30] sm:$0xff] %v5916_v41  ;;  %1947 = vst [vmem:[%s5771_s13 + $0x330] sm:$0xff] %v1752_v17  ;;  %v5922_v18 = vpop.f32.mrb[7].mxu0  ;;  %v1754_v19 = vpop.f32.mrb[39].mxu1  ;;  %4185 = vmatmul.mubr.msk.f32.gmra.mrb[144].mxu1 %vm1973_vm5, %v4057_v13 }
 0x1be   : > { %1852 = vst [vmem:[%s5771_s13 + $0x38] sm:$0xff] %v5922_v18  ;;  %1948 = vst [vmem:[%s5771_s13 + $0x338] sm:$0xff] %v1754_v19  ;;  %2476 = vmatprep.mubr.f32.mxu1 %v4918_v2 }
 0x1c0   : > { %v5930_v23 = vpop.f32.mrb[8].mxu0  ;;  %v1758_v47 = vpop.f32.mrb[40].mxu1 }
 0x1c1   : > { %1853 = vst [vmem:[%s5771_s13 + $0x40] sm:$0xff] %v5930_v23  ;;  %1949 = vst [vmem:[%s5771_s13 + $0x340] sm:$0xff] %v1758_v47  ;;  %v5936_v24 = vpop.f32.mrb[9].mxu0  ;;  %v1760_v25 = vpop.f32.mrb[41].mxu1  ;;  %4186 = vmatmul.mubr.msk.f32.gmra.mrb[146].mxu1 %vm1973_vm5, %v4058_v22  ;;  %v4067_v22 = vsel %vm1043_vm12, 1.0, %v4918_v2 }
 0x1c2   : > { %1854 = vst [vmem:[%s5771_s13 + $0x48] sm:$0xff] %v5936_v24  ;;  %1950 = vst [vmem:[%s5771_s13 + $0x348] sm:$0xff] %v1760_v25  ;;  %2482 = vmatprep.mubr.f32.mxu1 %v4918_v2 }
 0x1c4   : > { %v5944_v29 = vpop.f32.mrb[10].mxu0  ;;  %v1764_v46 = vpop.f32.mrb[42].mxu1 }
 0x1c5   : > { %1855 = vst [vmem:[%s5771_s13 + $0x50] sm:$0xff] %v5944_v29  ;;  %1951 = vst [vmem:[%s5771_s13 + $0x350] sm:$0xff] %v1764_v46  ;;  %v5950_v33 = vpop.f32.mrb[11].mxu0  ;;  %v1766_v34 = vpop.f32.mrb[43].mxu1  ;;  %4187 = vmatmul.mubr.msk.f32.gmra.mrb[148].mxu1 %vm1973_vm5, %v4059_v27 }
 0x1c6   : > { %1856 = vst [vmem:[%s5771_s13 + $0x58] sm:$0xff] %v5950_v33  ;;  %1952 = vst [vmem:[%s5771_s13 + $0x358] sm:$0xff] %v1766_v34  ;;  %2488 = vmatprep.mubr.f32.mxu1 %v4918_v2  ;;  %v959_v46 = vpop.permute.xlu0 %958  ;;  %v4068_v34 = vsel %vm1044_vm13, 1.0, %v4918_v2 }
 0x1c7   : > { %vm1045_vm14 = vcmp.eq.s32.totalorder %v5104_v9, %v959_v46 }
 0x1c8   : > { %v5958_v26 = vpop.f32.mrb[12].mxu0  ;;  %v1770_v38 = vpop.f32.mrb[44].mxu1 }
 0x1c9   : > { %1857 = vst [vmem:[%s5771_s13 + $0x60] sm:$0xff] %v5958_v26  ;;  %1953 = vst [vmem:[%s5771_s13 + $0x360] sm:$0xff] %v1770_v38  ;;  %v5964_v39 = vpop.f32.mrb[13].mxu0  ;;  %v1772_v40 = vpop.f32.mrb[45].mxu1  ;;  %4188 = vmatmul.mubr.msk.f32.gmra.mrb[150].mxu1 %vm1973_vm5, %v4060_v51 }
 0x1ca   : > { %1858 = vst [vmem:[%s5771_s13 + $0x68] sm:$0xff] %v5964_v39  ;;  %1954 = vst [vmem:[%s5771_s13 + $0x368] sm:$0xff] %v1772_v40  ;;  %2494 = vmatprep.mubr.f32.mxu1 %v4918_v2 }
 0x1cc   : > { %v5972_v57 = vpop.f32.mrb[14].mxu0  ;;  %v1776_v45 = vpop.f32.mrb[46].mxu1 }
 0x1cd   : > { %1859 = vst [vmem:[%s5771_s13 + $0x70] sm:$0xff] %v5972_v57  ;;  %1955 = vst [vmem:[%s5771_s13 + $0x370] sm:$0xff] %v1776_v45  ;;  %v5978_v48 = vpop.f32.mrb[15].mxu0  ;;  %v1778_v1 = vpop.f32.mrb[47].mxu1  ;;  %4189 = vmatmul.mubr.msk.f32.gmra.mrb[152].mxu1 %vm1973_vm5, %v4061_v44  ;;  %v4069_v44 = vsel %vm1045_vm14, 1.0, %v4918_v2 }
 0x1ce   : > { %1860 = vst [vmem:[%s5771_s13 + $0x78] sm:$0xff] %v5978_v48  ;;  %1956 = vst [vmem:[%s5771_s13 + $0x378] sm:$0xff] %v1778_v1  ;;  %2500 = vmatprep.mubr.f32.mxu1 %v4918_v2 }
 0x1d0   : > { %v5986_v52 = vpop.f32.mrb[16].mxu0  ;;  %v1782_v53 = vpop.f32.mrb[48].mxu1 }
 0x1d1   : > { %1861 = vst [vmem:[%s5771_s13 + $0x80] sm:$0xff] %v5986_v52  ;;  %1957 = vst [vmem:[%s5771_s13 + $0x380] sm:$0xff] %v1782_v53  ;;  %v5992_v54 = vpop.f32.mrb[17].mxu0  ;;  %v1784_v12 = vpop.f32.mrb[49].mxu1  ;;  %4190 = vmatmul.mubr.msk.f32.gmra.mrb[154].mxu1 %vm1973_vm5, %v4062_v50 }
 0x1d2   : > { %1862 = vst [vmem:[%s5771_s13 + $0x88] sm:$0xff] %v5992_v54  ;;  %1958 = vst [vmem:[%s5771_s13 + $0x388] sm:$0xff] %v1784_v12  ;;  %2506 = vmatprep.mubr.f32.mxu1 %v4918_v2  ;;  %v965_v53 = vpop.permute.xlu0 %964  ;;  %v4070_v12 = vsel %vm1046_vm15, 1.0, %v4918_v2 }
 0x1d3   : > { %vm1047_vm1 = vcmp.eq.s32.totalorder %v5104_v9, %v965_v53 }
 0x1d4   : > { %v6000_v20 = vpop.f32.mrb[18].mxu0  ;;  %v1788_v58 = vpop.f32.mrb[50].mxu1 }
 0x1d5   : > { %1863 = vst [vmem:[%s5771_s13 + $0x90] sm:$0xff] %v6000_v20  ;;  %1959 = vst [vmem:[%s5771_s13 + $0x390] sm:$0xff] %v1788_v58  ;;  %v6006_v59 = vpop.f32.mrb[19].mxu0  ;;  %v1790_v37 = vpop.f32.mrb[51].mxu1  ;;  %4191 = vmatmul.mubr.msk.f32.gmra.mrb[156].mxu1 %vm1973_vm5, %v4063_v56 }
 0x1d6   : > { %1864 = vst [vmem:[%s5771_s13 + $0x98] sm:$0xff] %v6006_v59  ;;  %1960 = vst [vmem:[%s5771_s13 + $0x398] sm:$0xff] %v1790_v37  ;;  %2512 = vmatprep.mubr.f32.mxu1 %v4918_v2 }
 0x1d8   : > { %v6014_v30 = vpop.f32.mrb[20].mxu0  ;;  %v1794_v62 = vpop.f32.mrb[52].mxu1 }
 0x1d9   : > { %1865 = vst [vmem:[%s5771_s13 + $0xa0] sm:$0xff] %v6014_v30  ;;  %1961 = vst [vmem:[%s5771_s13 + $0x3a0] sm:$0xff] %v1794_v62  ;;  %v6020_v32 = vpop.f32.mrb[21].mxu0  ;;  %v1796_v36 = vpop.f32.mrb[53].mxu1  ;;  %4192 = vmatmul.mubr.msk.f32.gmra.mrb[158].mxu1 %vm1973_vm5, %v4064_v61 }
 0x1da   : > { %1866 = vst [vmem:[%s5771_s13 + $0xa8] sm:$0xff] %v6020_v32  ;;  %1962 = vst [vmem:[%s5771_s13 + $0x3a8] sm:$0xff] %v1796_v36  ;;  %2518 = vmatprep.mubr.f32.mxu1 %v4918_v2  ;;  %v968_v61 = vpop.permute.xlu1 %967  ;;  %v4071_v36 = vsel %vm1047_vm1, 1.0, %v4918_v2 }
 0x1db   : > { %vm1048_vm2 = vcmp.eq.s32.totalorder %v5104_v9, %v968_v61 }
 0x1dc   : > { %v6028_v7 = vpop.f32.mrb[22].mxu0  ;;  %v1800_v8 = vpop.f32.mrb[54].mxu1 }
 0x1dd   : > { %1867 = vst [vmem:[%s5771_s13 + $0xb0] sm:$0xff] %v6028_v7  ;;  %1963 = vst [vmem:[%s5771_s13 + $0x3b0] sm:$0xff] %v1800_v8  ;;  %v6034_v10 = vpop.f32.mrb[23].mxu0  ;;  %v1802_v0 = vpop.f32.mrb[55].mxu1  ;;  %4193 = vmatmul.mubr.msk.f32.gmra.mrb[160].mxu1 %vm1973_vm5, %v4065_v5 }
 0x1de   : > { %1868 = vst [vmem:[%s5771_s13 + $0xb8] sm:$0xff] %v6034_v10  ;;  %1964 = vst [vmem:[%s5771_s13 + $0x3b8] sm:$0xff] %v1802_v0  ;;  %2524 = vmatprep.mubr.f32.mxu1 %v4918_v2 }
 0x1e0   : > { %v6042_v16 = vpop.f32.mrb[24].mxu0  ;;  %v1806_v13 = vpop.f32.mrb[56].mxu1 }
 0x1e1   : > { %1869 = vst [vmem:[%s5771_s13 + $0xc0] sm:$0xff] %v6042_v16  ;;  %1965 = vst [vmem:[%s5771_s13 + $0x3c0] sm:$0xff] %v1806_v13  ;;  %v6048_v17 = vpop.f32.mrb[25].mxu0  ;;  %v1808_v19 = vpop.f32.mrb[57].mxu1  ;;  %4194 = vmatmul.mubr.msk.f32.gmra.mrb[162].mxu1 %vm1973_vm5, %v4066_v15  ;;  %v4072_v13 = vsel %vm1048_vm2, 1.0, %v4918_v2 }
 0x1e2   : > { %1870 = vst [vmem:[%s5771_s13 + $0xc8] sm:$0xff] %v6048_v17  ;;  %1966 = vst [vmem:[%s5771_s13 + $0x3c8] sm:$0xff] %v1808_v19  ;;  %2530 = vmatprep.mubr.f32.mxu1 %v4918_v2 }
 0x1e4   : > { %v6056_v47 = vpop.f32.mrb[26].mxu0  ;;  %v1812_v25 = vpop.f32.mrb[58].mxu1 }
 0x1e5   : > { %1871 = vst [vmem:[%s5771_s13 + $0xd0] sm:$0xff] %v6056_v47  ;;  %1967 = vst [vmem:[%s5771_s13 + $0x3d0] sm:$0xff] %v1812_v25  ;;  %v6062_v28 = vpop.f32.mrb[27].mxu0  ;;  %v1814_v27 = vpop.f32.mrb[59].mxu1  ;;  %4195 = vmatmul.mubr.msk.f32.gmra.mrb[164].mxu1 %vm1973_vm5, %v4067_v22 }
 0x1e6   : > { %1872 = vst [vmem:[%s5771_s13 + $0xd8] sm:$0xff] %v6062_v28  ;;  %1968 = vst [vmem:[%s5771_s13 + $0x3d8] sm:$0xff] %v1814_v27  ;;  %2536 = vmatprep.mubr.f32.mxu1 %v4918_v2 }
 0x1e8   : > { %v6070_v35 = vpop.f32.mrb[28].mxu0  ;;  %v1818_v51 = vpop.f32.mrb[60].mxu1 }
 0x1e9   : > { %1873 = vst [vmem:[%s5771_s13 + $0xe0] sm:$0xff] %v6070_v35  ;;  %1969 = vst [vmem:[%s5771_s13 + $0x3e0] sm:$0xff] %v1818_v51  ;;  %v6076_v38 = vpop.f32.mrb[29].mxu0  ;;  %v1820_v40 = vpop.f32.mrb[61].mxu1  ;;  %4196 = vmatmul.mubr.msk.f32.gmra.mrb[166].mxu1 %vm1973_vm5, %v4068_v34 }
 0x1ea   : > { %1874 = vst [vmem:[%s5771_s13 + $0xe8] sm:$0xff] %v6076_v38  ;;  %1970 = vst [vmem:[%s5771_s13 + $0x3e8] sm:$0xff] %v1820_v40  ;;  %2542 = vmatprep.mubr.f32.mxu1 %v4918_v2 }
 0x1ec   : > { %v6084_v45 = vpop.f32.mrb[30].mxu0  ;;  %v1824_v1 = vpop.f32.mrb[62].mxu1 }
 0x1ed   : > { %1875 = vst [vmem:[%s5771_s13 + $0xf0] sm:$0xff] %v6084_v45  ;;  %1971 = vst [vmem:[%s5771_s13 + $0x3f0] sm:$0xff] %v1824_v1  ;;  %v6090_v49 = vpop.f32.mrb[31].mxu0  ;;  %v1826_v50 = vpop.f32.mrb[63].mxu1  ;;  %4197 = vmatmul.mubr.msk.f32.gmra.mrb[168].mxu1 %vm1973_vm5, %v4069_v44 }
 0x1ee   : > { %1876 = vst [vmem:[%s5771_s13 + $0xf8] sm:$0xff] %v6090_v49  ;;  %1972 = vst [vmem:[%s5771_s13 + $0x3f8] sm:$0xff] %v1826_v50  ;;  %2548 = vmatprep.mubr.f32.mxu1 %v4918_v2 }
 0x1f0   : > { %v6098_v31 = vpop.f32.mrb[32].mxu0  ;;  %v2232_v56 = vpop.f32.mrb[64].mxu1 }
 0x1f1   : > { %1877 = vst [vmem:[%s5771_s13 + $0x100] sm:$0xff] %v6098_v31  ;;  %v2233_v58 = vadd.f32 %v2232_v56, %v5874_v63  ;;  %v6104_v37 = vpop.f32.mrb[33].mxu0  ;;  %v2234_v60 = vpop.f32.mrb[65].mxu1  ;;  %4198 = vmatmul.mubr.msk.f32.gmra.mrb[170].mxu1 %vm1973_vm5, %v4070_v12 }
 0x1f2   : > { %1878 = vst [vmem:[%s5771_s13 + $0x108] sm:$0xff] %v6104_v37  ;;  %v2235_v62 = vadd.f32 %v2234_v60, %v5880_v3  ;;  %2554 = vmatprep.mubr.f32.mxu1 %v4918_v2  ;;  %v971_v3 = vpop.permute.xlu0 %970 }
 0x1f3   : > { %vm1049_vm3 = vcmp.eq.s32.totalorder %v5104_v9, %v971_v3 }
 0x1f4   : > { %v6112_v4 = vpop.f32.mrb[34].mxu0  ;;  %v2238_v5 = vpop.f32.mrb[66].mxu1  ;;  %v4073_v34 = vsel %vm1049_vm3, 1.0, %v4918_v2 }
 0x1f5   : > { %1879 = vst [vmem:[%s5771_s13 + $0x110] sm:$0xff] %v6112_v4  ;;  %v2239_v63 = vadd.f32 %v2238_v5, %v5888_v6  ;;  %v6118_v8 = vpop.f32.mrb[35].mxu0  ;;  %v2240_v0 = vpop.f32.mrb[67].mxu1  ;;  %4199 = vmatmul.mubr.msk.f32.gmra.mrb[172].mxu1 %vm1973_vm5, %v4071_v36 }
 0x1f6   : > { %1880 = vst [vmem:[%s5771_s13 + $0x118] sm:$0xff] %v6118_v8  ;;  %v2241_v11 = vadd.f32 %v2240_v0, %v5894_v55  ;;  %2560 = vmatprep.mubr.f32.mxu1 %v4918_v2  ;;  %v974_v55 = vpop.permute.xlu1 %973 }
 0x1f7   : > { %v2615_v15 = vpack.c.bf16 %v2239_v63, %v2233_v58  ;;  %vm1050_vm4 = vcmp.eq.s32.totalorder %v5104_v9, %v974_v55 }
 0x1f8   : > { %v2616_v19 = vpack.c.bf16 %v2241_v11, %v2235_v62  ;;  %v6126_v21 = vpop.f32.mrb[36].mxu0  ;;  %v2244_v6 = vpop.f32.mrb[68].mxu1  ;;  %v4074_v53 = vsel %vm1050_vm4, 1.0, %v4918_v2 }
 0x1f9   : > { %1881 = vst [vmem:[%s5771_s13 + $0x120] sm:$0xff] %v6126_v21  ;;  %v2245_v22 = vadd.f32 %v2244_v6, %v5902_v42  ;;  %v6132_v25 = vpop.f32.mrb[37].mxu0  ;;  %v2246_v27 = vpop.f32.mrb[69].mxu1  ;;  %4200 = vmatmul.mubr.msk.f32.gmra.mrb[174].mxu1 %vm1973_vm5, %v4072_v13 }
 0x1fa   : > { %1882 = vst [vmem:[%s5771_s13 + $0x128] sm:$0xff] %v6132_v25  ;;  %v2247_v46 = vadd.f32 %v2246_v27, %v5908_v14  ;;  %2903 = vmatprep.mubr.bf16.mxu0 %v2616_v19  ;;  %2566 = vmatprep.mubr.f32.mxu1 %v4918_v2  ;;  %v977_v14 = vpop.permute.xlu0 %976 }
 0x1fb   : > { %2904 = vmatmul.mubr.bf16.vlgmr.msra.gmra.mrb[64].mxu0 %v2615_v15  ;;  %vm1051_vm6 = vcmp.eq.s32.totalorder %v5104_v9, %v977_v14 }
 0x1fc   : > { %v6140_v51 = vpop.f32.mrb[38].mxu0  ;;  %v2250_v42 = vpop.f32.mrb[70].mxu1  ;;  %v4075_v36 = vsel %vm1051_vm6, 1.0, %v4918_v2 }
 0x1fd   : > { %1883 = vst [vmem:[%s5771_s13 + $0x130] sm:$0xff] %v6140_v51  ;;  %v2251_v40 = vadd.f32 %v2250_v42, %v5916_v41  ;;  %v6146_v43 = vpop.f32.mrb[39].mxu0  ;;  %v2252_v44 = vpop.f32.mrb[71].mxu1  ;;  %4201 = vmatmul.mubr.msk.f32.gmra.mrb[176].mxu1 %vm1973_vm5, %v4073_v34 }
 0x1fe   : > { %1884 = vst [vmem:[%s5771_s13 + $0x138] sm:$0xff] %v6146_v43  ;;  %v2253_v1 = vadd.f32 %v2252_v44, %v5922_v18  ;;  %2572 = vmatprep.mubr.f32.mxu1 %v4918_v2  ;;  %v980_v18 = vpop.permute.xlu1 %979 }
 0x1ff   : > { %v2617_v50 = vpack.c.bf16 %v2251_v40, %v2245_v22  ;;  %vm1052_vm7 = vcmp.eq.s32.totalorder %v5104_v9, %v980_v18 }
 0x200   : > { %v2618_v12 = vpack.c.bf16 %v2253_v1, %v2247_v46  ;;  %v6154_v56 = vpop.f32.mrb[40].mxu0  ;;  %v2256_v41 = vpop.f32.mrb[72].mxu1  ;;  %v4076_v13 = vsel %vm1052_vm7, 1.0, %v4918_v2 }
 0x201   : > { %1885 = vst [vmem:[%s5771_s13 + $0x140] sm:$0xff] %v6154_v56  ;;  %v2257_v58 = vadd.f32 %v2256_v41, %v5930_v23  ;;  %v6160_v60 = vpop.f32.mrb[41].mxu0  ;;  %v2258_v61 = vpop.f32.mrb[73].mxu1  ;;  %4202 = vmatmul.mubr.msk.f32.gmra.mrb[178].mxu1 %vm1973_vm5, %v4074_v53 }
 0x202   : > { %1886 = vst [vmem:[%s5771_s13 + $0x148] sm:$0xff] %v6160_v60  ;;  %v2259_v62 = vadd.f32 %v2258_v61, %v5936_v24  ;;  %2913 = vmatprep.mubr.bf16.mxu0 %v2618_v12  ;;  %2578 = vmatprep.mubr.f32.mxu1 %v4918_v2  ;;  %v983_v24 = vpop.permute.xlu0 %982 }
 0x203   : > { %2914 = vmatmul.mubr.bf16.gmra.mrb[68].mxu0 %v2617_v50  ;;  %vm1053_vm8 = vcmp.eq.s32.totalorder %v5104_v9, %v983_v24 }
 0x204   : > { %v6168_v5 = vpop.f32.mrb[42].mxu0  ;;  %v2262_v23 = vpop.f32.mrb[74].mxu1  ;;  %v4077_v34 = vsel %vm1053_vm8, 1.0, %v4918_v2 }
 0x205   : > { %1887 = vst [vmem:[%s5771_s13 + $0x150] sm:$0xff] %v6168_v5  ;;  %v2263_v63 = vadd.f32 %v2262_v23, %v5944_v29  ;;  %v6174_v0 = vpop.f32.mrb[43].mxu0  ;;  %v2264_v3 = vpop.f32.mrb[75].mxu1  ;;  %4203 = vmatmul.mubr.msk.f32.gmra.mrb[180].mxu1 %vm1973_vm5, %v4075_v36 }
 0x206   : > { %1888 = vst [vmem:[%s5771_s13 + $0x158] sm:$0xff] %v6174_v0  ;;  %v2265_v11 = vadd.f32 %v2264_v3, %v5950_v33  ;;  %2584 = vmatprep.mubr.f32.mxu1 %v4918_v2  ;;  %v986_v33 = vpop.permute.xlu1 %985 }
 0x207   : > { %v2619_v15 = vpack.c.bf16 %v2263_v63, %v2257_v58  ;;  %vm1054_vm9 = vcmp.eq.s32.totalorder %v5104_v9, %v986_v33 }
 0x208   : > { %v2620_v19 = vpack.c.bf16 %v2265_v11, %v2259_v62  ;;  %v6182_v6 = vpop.f32.mrb[44].mxu0  ;;  %v2268_v29 = vpop.f32.mrb[76].mxu1  ;;  %v4078_v53 = vsel %vm1054_vm9, 1.0, %v4918_v2 }
 0x209   : > { %1889 = vst [vmem:[%s5771_s13 + $0x160] sm:$0xff] %v6182_v6  ;;  %v2269_v22 = vadd.f32 %v2268_v29, %v5958_v26  ;;  %v6188_v27 = vpop.f32.mrb[45].mxu0  ;;  %v2270_v55 = vpop.f32.mrb[77].mxu1  ;;  %4204 = vmatmul.mubr.msk.f32.gmra.mrb[182].mxu1 %vm1973_vm5, %v4076_v13 }
 0x20a   : > { %1890 = vst [vmem:[%s5771_s13 + $0x168] sm:$0xff] %v6188_v27  ;;  %v2271_v46 = vadd.f32 %v2270_v55, %v5964_v39  ;;  %2923 = vmatprep.mubr.bf16.mxu0 %v2620_v19  ;;  %2590 = vmatprep.mubr.f32.mxu1 %v4918_v2  ;;  %v989_v39 = vpop.permute.xlu0 %988 }
 0x20b   : > { %2924 = vmatmul.mubr.bf16.gmra.mrb[72].mxu0 %v2619_v15  ;;  %vm1055_vm10 = vcmp.eq.s32.totalorder %v5104_v9, %v989_v39 }
 0x20c   : > { %v6196_v42 = vpop.f32.mrb[46].mxu0  ;;  %v2274_v26 = vpop.f32.mrb[78].mxu1  ;;  %v4079_v36 = vsel %vm1055_vm10, 1.0, %v4918_v2 }
 0x20d   : > { %1891 = vst [vmem:[%s5771_s13 + $0x170] sm:$0xff] %v6196_v42  ;;  %v2275_v40 = vadd.f32 %v2274_v26, %v5972_v57  ;;  %v6202_v44 = vpop.f32.mrb[47].mxu0  ;;  %v2276_v14 = vpop.f32.mrb[79].mxu1  ;;  %4205 = vmatmul.mubr.msk.f32.gmra.mrb[184].mxu1 %vm1973_vm5, %v4077_v34 }
 0x20e   : > { %1892 = vst [vmem:[%s5771_s13 + $0x178] sm:$0xff] %v6202_v44  ;;  %v2277_v1 = vadd.f32 %v2276_v14, %v5978_v48  ;;  %2596 = vmatprep.mubr.f32.mxu1 %v4918_v2  ;;  %v992_v48 = vpop.permute.xlu1 %991 }
 0x20f   : > { %v2621_v50 = vpack.c.bf16 %v2275_v40, %v2269_v22  ;;  %vm1056_vm0 = vcmp.eq.s32.totalorder %v5104_v9, %v992_v48 }
 0x210   : > { %v2622_v12 = vpack.c.bf16 %v2277_v1, %v2271_v46  ;;  %v6210_v41 = vpop.f32.mrb[48].mxu0  ;;  %v2280_v57 = vpop.f32.mrb[80].mxu1  ;;  %v4080_v9 = vsel %vm1056_vm0, 1.0, %v4918_v2 }
 0x211   : > { %1893 = vst [vmem:[%s5771_s13 + $0x180] sm:$0xff] %v6210_v41  ;;  %v2281_v58 = vadd.f32 %v2280_v57, %v5986_v52  ;;  %v6216_v61 = vpop.f32.mrb[49].mxu0  ;;  %v2282_v18 = vpop.f32.mrb[81].mxu1  ;;  %4206 = vmatmul.mubr.msk.f32.gmra.mrb[186].mxu1 %vm1973_vm5, %v4078_v53 }
 0x212   : > { %1894 = vst [vmem:[%s5771_s13 + $0x188] sm:$0xff] %v6216_v61  ;;  %v2283_v62 = vadd.f32 %v2282_v18, %v5992_v54  ;;  %2933 = vmatprep.mubr.bf16.mxu0 %v2622_v12  ;;  %2602 = vmatprep.mubr.f32.mxu1 %v4918_v2 }
 0x213   : > { %2934 = vmatmul.mubr.bf16.gmra.mrb[76].mxu0 %v2621_v50 }
 0x214   : > { %v6224_v23 = vpop.f32.mrb[50].mxu0  ;;  %v2286_v52 = vpop.f32.mrb[82].mxu1 }
 0x215   : > { %1895 = vst [vmem:[%s5771_s13 + $0x190] sm:$0xff] %v6224_v23  ;;  %v2287_v63 = vadd.f32 %v2286_v52, %v6000_v20  ;;  %v6230_v3 = vpop.f32.mrb[51].mxu0  ;;  %v2288_v54 = vpop.f32.mrb[83].mxu1  ;;  %4207 = vmatmul.mubr.msk.f32.gmra.mrb[188].mxu1 %vm1973_vm5, %v4079_v36 }
 0x216   : > { %1896 = vst [vmem:[%s5771_s13 + $0x198] sm:$0xff] %v6230_v3  ;;  %v2289_v24 = vadd.f32 %v2288_v54, %v6006_v59  ;;  %2608 = vmatprep.mubr.f32.mxu1 %v4918_v2 }
 0x217   : > { %v2623_v11 = vpack.c.bf16 %v2287_v63, %v2281_v58 }
 0x218   : > { %v2624_v15 = vpack.c.bf16 %v2289_v24, %v2283_v62  ;;  %v6238_v13 = vpop.f32.mrb[52].mxu0  ;;  %v2292_v20 = vpop.f32.mrb[84].mxu1 }
 0x219   : > { %1897 = vst [vmem:[%s5771_s13 + $0x1a0] sm:$0xff] %v6238_v13  ;;  %v2293_v19 = vadd.f32 %v2292_v20, %v6014_v30  ;;  %v6243_v29 = vpop.f32.mrb[53].mxu0  ;;  %v2294_v22 = vpop.f32.mrb[85].mxu1  ;;  %4208 = vmatmul.mubr.msk.f32.gmra.mrb[190].mxu1 %vm1973_vm5, %v4080_v9 }
 0x21a   : > { %1898 = vst [vmem:[%s5771_s13 + $0x1a8] sm:$0xff] %v6243_v29  ;;  %v2295_v59 = vadd.f32 %v2294_v22, %v6020_v32  ;;  %2943 = vmatprep.mubr.bf16.mxu0 %v2624_v15 }
 0x21b   : > { %2944 = vmatmul.mubr.bf16.gmra.mrb[80].mxu0 %v2623_v11 }
 0x21c   : > { %v6249_v2 = vpop.f32.mrb[54].mxu0  ;;  %v2298_v55 = vpop.f32.mrb[86].mxu1 }
 0x21d   : > { %1899 = vst [vmem:[%s5771_s13 + $0x1b0] sm:$0xff] %v6249_v2  ;;  %v2299_v30 = vadd.f32 %v2298_v55, %v6028_v7  ;;  %v6254_v33 = vpop.f32.mrb[55].mxu0  ;;  %v2300_v46 = vpop.f32.mrb[87].mxu1 }
 0x21e   : > { %1900 = vst [vmem:[%s5771_s13 + $0x1b8] sm:$0xff] %v6254_v33  ;;  %v2301_v34 = vadd.f32 %v2300_v46, %v6034_v10 }
 0x21f   : > { %v2625_v26 = vpack.c.bf16 %v2299_v30, %v2293_v19 }
 0x220   : > { %v2626_v32 = vpack.c.bf16 %v2301_v34, %v2295_v59  ;;  %v6259_v40 = vpop.f32.mrb[56].mxu0  ;;  %v2304_v14 = vpop.f32.mrb[88].mxu1 }
 0x221   : > { %1901 = vst [vmem:[%s5771_s13 + $0x1c0] sm:$0xff] %v6259_v40  ;;  %v2305_v39 = vadd.f32 %v2304_v14, %v6042_v16  ;;  %v6264_v1 = vpop.f32.mrb[57].mxu0  ;;  %v2306_v7 = vpop.f32.mrb[89].mxu1 }
 0x222   : > { %1902 = vst [vmem:[%s5771_s13 + $0x1c8] sm:$0xff] %v6264_v1  ;;  %v2307_v50 = vadd.f32 %v2306_v7, %v6048_v17  ;;  %2953 = vmatprep.mubr.bf16.mxu0 %v2626_v32 }
 0x223   : > { %2954 = vmatmul.mubr.bf16.gmra.mrb[84].mxu0 %v2625_v26 }
 0x224   : > { %v6269_v10 = vpop.f32.mrb[58].mxu0  ;;  %v2310_v53 = vpop.f32.mrb[90].mxu1 }
 0x225   : > { %1903 = vst [vmem:[%s5771_s13 + $0x1d0] sm:$0xff] %v6269_v10  ;;  %v2311_v12 = vadd.f32 %v2310_v53, %v6056_v47  ;;  %v6274_v57 = vpop.f32.mrb[59].mxu0  ;;  %v2312_v16 = vpop.f32.mrb[91].mxu1 }
 0x226   : > { %1904 = vst [vmem:[%s5771_s13 + $0x1d8] sm:$0xff] %v6274_v57  ;;  %v2313_v58 = vadd.f32 %v2312_v16, %v6062_v28 }
 0x227   : > { %v2627_v18 = vpack.c.bf16 %v2311_v12, %v2305_v39 }
 0x228   : > { %v2628_v17 = vpack.c.bf16 %v2313_v58, %v2307_v50  ;;  %v6279_v48 = vpop.f32.mrb[60].mxu0  ;;  %v2316_v62 = vpop.f32.mrb[92].mxu1 }
 0x229   : > { %1905 = vst [vmem:[%s5771_s13 + $0x1e0] sm:$0xff] %v6279_v48  ;;  %v2317_v36 = vadd.f32 %v2316_v62, %v6070_v35  ;;  %v6284_v52 = vpop.f32.mrb[61].mxu0  ;;  %v2318_v47 = vpop.f32.mrb[93].mxu1 }
 0x22a   : > { %1906 = vst [vmem:[%s5771_s13 + $0x1e8] sm:$0xff] %v6284_v52  ;;  %v2319_v63 = vadd.f32 %v2318_v47, %v6076_v38  ;;  %2963 = vmatprep.mubr.bf16.mxu0 %v2628_v17 }
 0x22b   : > { %2964 = vmatmul.mubr.bf16.gmra.mrb[88].mxu0 %v2627_v18 }
 0x22c   : > { %v6289_v28 = vpop.f32.mrb[62].mxu0  ;;  %v2322_v54 = vpop.f32.mrb[94].mxu1 }
 0x22d   : > { %1907 = vst [vmem:[%s5771_s13 + $0x1f0] sm:$0xff] %v6289_v28  ;;  %v2323_v24 = vadd.f32 %v2322_v54, %v6084_v45  ;;  %v6294_v11 = vpop.f32.mrb[63].mxu0  ;;  %v2324_v9 = vpop.f32.mrb[95].mxu1 }
 0x22e   : > { %1908 = vst [vmem:[%s5771_s13 + $0x1f8] sm:$0xff] %v6294_v11  ;;  %v2325_v35 = vadd.f32 %v2324_v9, %v6090_v49 }
 0x22f   : > { %v2629_v15 = vpack.c.bf16 %v2323_v24, %v2317_v36 }
 0x230   : > { %v2630_v20 = vpack.c.bf16 %v2325_v35, %v2319_v63  ;;  %v2328_v19 = vpop.f32.mrb[96].mxu1 }
 0x231   : > { %v2329_v38 = vadd.f32 %v2328_v19, %v6098_v31  ;;  %v2330_v22 = vpop.f32.mrb[97].mxu1 }
 0x232   : > { %v2331_v59 = vadd.f32 %v2330_v22, %v6104_v37  ;;  %2973 = vmatprep.mubr.bf16.mxu0 %v2630_v20 }
 0x233   : > { %2974 = vmatmul.mubr.bf16.gmra.mrb[92].mxu0 %v2629_v15 }
 0x234   : > { %v2334_v55 = vpop.f32.mrb[98].mxu1 }
 0x235   : > { %v2335_v45 = vadd.f32 %v2334_v55, %v6112_v4  ;;  %v2336_v30 = vpop.f32.mrb[99].mxu1 }
 0x236   : > { %v2337_v46 = vadd.f32 %v2336_v30, %v6118_v8 }
 0x237   : > { %v2631_v34 = vpack.c.bf16 %v2335_v45, %v2329_v38 }
 0x238   : > { %v2632_v26 = vpack.c.bf16 %v2337_v46, %v2331_v59  ;;  %v2340_v32 = vpop.f32.mrb[100].mxu1 }
 0x239   : > { %v2341_v49 = vadd.f32 %v2340_v32, %v6126_v21  ;;  %v2342_v14 = vpop.f32.mrb[101].mxu1 }
 0x23a   : > { %v2343_v39 = vadd.f32 %v2342_v14, %v6132_v25  ;;  %2983 = vmatprep.mubr.bf16.mxu0 %v2632_v26 }
 0x23b   : > { %2984 = vmatmul.mubr.bf16.gmra.mrb[96].mxu0 %v2631_v34 }
 0x23c   : > { %v2346_v31 = vpop.f32.mrb[102].mxu1 }
 0x23d   : > { %v2347_v37 = vadd.f32 %v2346_v31, %v6140_v51  ;;  %v2348_v7 = vpop.f32.mrb[103].mxu1 }
 0x23e   : > { %v2349_v50 = vadd.f32 %v2348_v7, %v6146_v43 }
 0x23f   : > { %v2633_v4 = vpack.c.bf16 %v2347_v37, %v2341_v49 }
 0x240   : > { %v2634_v53 = vpack.c.bf16 %v2349_v50, %v2343_v39  ;;  %v2352_v12 = vpop.f32.mrb[104].mxu1 }
 0x241   : > { %v2353_v8 = vadd.f32 %v2352_v12, %v6154_v56  ;;  %v2354_v16 = vpop.f32.mrb[105].mxu1 }
 0x242   : > { %v2355_v58 = vadd.f32 %v2354_v16, %v6160_v60  ;;  %2993 = vmatprep.mubr.bf16.mxu0 %v2634_v53 }
 0x243   : > { %2994 = vmatmul.mubr.bf16.gmra.mrb[100].mxu0 %v2633_v4 }
 0x244   : > { %v2358_v21 = vpop.f32.mrb[106].mxu1 }
 0x245   : > { %v2359_v25 = vadd.f32 %v2358_v21, %v6168_v5  ;;  %v2360_v18 = vpop.f32.mrb[107].mxu1 }
 0x246   : > { %v2361_v17 = vadd.f32 %v2360_v18, %v6174_v0 }
 0x247   : > { %v2635_v51 = vpack.c.bf16 %v2359_v25, %v2353_v8  ;;  %v4757_v8 = vld [vmem:[%s5771_s13 + $0x200] sm:$0xff]  ;;  %v4759_v25 = vld [vmem:[%s5771_s13 + $0x210] sm:$0xff] }
 0x248   : > { %v2636_v62 = vpack.c.bf16 %v2361_v17, %v2355_v58  ;;  %v2364_v36 = vpop.f32.mrb[108].mxu1  ;;  %v4758_v58 = vld [vmem:[%s5771_s13 + $0x208] sm:$0xff]  ;;  %v4760_v17 = vld [vmem:[%s5771_s13 + $0x218] sm:$0xff] }
 0x249   : > { %v2365_v43 = vadd.f32 %v2364_v36, %v6182_v6  ;;  %v2366_v47 = vpop.f32.mrb[109].mxu1 }
 0x24a   : > { %v2367_v63 = vadd.f32 %v2366_v47, %v6188_v27  ;;  %3003 = vmatprep.mubr.bf16.mxu0 %v2636_v62 }
 0x24b   : > { %3004 = vmatmul.mubr.bf16.gmra.mrb[104].mxu0 %v2635_v51 }
 0x24c   : > { %v2370_v56 = vpop.f32.mrb[110].mxu1 }
 0x24d   : > { %v2371_v60 = vadd.f32 %v2370_v56, %v6196_v42  ;;  %v2372_v54 = vpop.f32.mrb[111].mxu1  ;;  %v4762_v56 = vld [vmem:[%s5771_s13 + $0x228] sm:$0xff] }
 0x24e   : > { %v2373_v24 = vadd.f32 %v2372_v54, %v6202_v44 }
 0x24f   : > { %v2637_v5 = vpack.c.bf16 %v2371_v60, %v2365_v43  ;;  %v4761_v43 = vld [vmem:[%s5771_s13 + $0x220] sm:$0xff] }
 0x250   : > { %v2638_v9 = vpack.c.bf16 %v2373_v24, %v2367_v63  ;;  %v2376_v35 = vpop.f32.mrb[112].mxu1  ;;  %v4763_v24 = vld [vmem:[%s5771_s13 + $0x230] sm:$0xff] }
 0x251   : > { %v2377_v0 = vadd.f32 %v2376_v35, %v6210_v41  ;;  %v2378_v15 = vpop.f32.mrb[113].mxu1  ;;  %v4764_v35 = vld [vmem:[%s5771_s13 + $0x238] sm:$0xff] }
 0x252   : > { %v2379_v20 = vadd.f32 %v2378_v15, %v6216_v61  ;;  %3013 = vmatprep.mubr.bf16.mxu0 %v2638_v9 }
 0x253   : > { %3014 = vmatmul.mubr.bf16.gmra.mrb[108].mxu0 %v2637_v5 }
 0x254   : > { %v2382_v6 = vpop.f32.mrb[114].mxu1 }
 0x255   : > { %v2383_v27 = vadd.f32 %v2382_v6, %v6224_v23  ;;  %v2384_v19 = vpop.f32.mrb[115].mxu1 }
 0x256   : > { %v2385_v38 = vadd.f32 %v2384_v19, %v6230_v3 }
 0x257   : > { %v2639_v42 = vpack.c.bf16 %v2383_v27, %v2377_v0  ;;  %v4765_v27 = vld [vmem:[%s5771_s13 + $0x240] sm:$0xff] }
 0x258   : > { %v2640_v22 = vpack.c.bf16 %v2385_v38, %v2379_v20  ;;  %v2388_v59 = vpop.f32.mrb[116].mxu1 }
 0x259   : > { %v2389_v44 = vadd.f32 %v2388_v59, %v6238_v13  ;;  %v2390_v55 = vpop.f32.mrb[117].mxu1 }
 0x25a   : > { %v2391_v45 = vadd.f32 %v2390_v55, %v6243_v29  ;;  %3023 = vmatprep.mubr.bf16.mxu0 %v2640_v22 }
 0x25b   : > { %3024 = vmatmul.mubr.bf16.gmra.mrb[112].mxu0 %v2639_v42  ;;  %v4766_v42 = vld [vmem:[%s5771_s13 + $0x248] sm:$0xff] }
 0x25c   : > { %v2394_v41 = vpop.f32.mrb[118].mxu1 }
 0x25d   : > { %v2395_v61 = vadd.f32 %v2394_v41, %v6249_v2  ;;  %v2396_v30 = vpop.f32.mrb[119].mxu1  ;;  %v4768_v41 = vld [vmem:[%s5771_s13 + $0x258] sm:$0xff] }
 0x25e   : > { %v2397_v46 = vadd.f32 %v2396_v30, %v6254_v33 }
 0x25f   : > { %v2641_v23 = vpack.c.bf16 %v2395_v61, %v2389_v44  ;;  %v4767_v44 = vld [vmem:[%s5771_s13 + $0x250] sm:$0xff] }
 0x260   : > { %v2642_v34 = vpack.c.bf16 %v2397_v46, %v2391_v45  ;;  %v2400_v26 = vpop.f32.mrb[120].mxu1 }
 0x261   : > { %v2401_v3 = vadd.f32 %v2400_v26, %v6259_v40  ;;  %v2402_v32 = vpop.f32.mrb[121].mxu1 }
 0x262   : > { %v2403_v49 = vadd.f32 %v2402_v32, %v6264_v1  ;;  %3033 = vmatprep.mubr.bf16.mxu0 %v2642_v34  ;;  %v4769_v34 = vld [vmem:[%s5771_s13 + $0x260] sm:$0xff]  ;;  %v4770_v32 = vld [vmem:[%s5771_s13 + $0x268] sm:$0xff] }
 0x263   : > { %3034 = vmatmul.mubr.bf16.gmra.mrb[116].mxu0 %v2641_v23 }
 0x264   : > { %v2406_v13 = vpop.f32.mrb[122].mxu1 }
 0x265   : > { %v2407_v29 = vadd.f32 %v2406_v13, %v6269_v10  ;;  %v2408_v14 = vpop.f32.mrb[123].mxu1 }
 0x266   : > { %v2409_v39 = vadd.f32 %v2408_v14, %v6274_v57 }
 0x267   : > { %v2643_v2 = vpack.c.bf16 %v2407_v29, %v2401_v3  ;;  %v4771_v29 = vld [vmem:[%s5771_s13 + $0x270] sm:$0xff] }
 0x268   : > { %v2644_v31 = vpack.c.bf16 %v2409_v39, %v2403_v49  ;;  %v2412_v33 = vpop.f32.mrb[124].mxu1 }
 0x269   : > { %v2413_v37 = vadd.f32 %v2412_v33, %v6279_v48  ;;  %v2414_v7 = vpop.f32.mrb[125].mxu1 }
 0x26a   : > { %v2415_v40 = vadd.f32 %v2414_v7, %v6284_v52  ;;  %3043 = vmatprep.mubr.bf16.mxu0 %v2644_v31 }
 0x26b   : > { %3044 = vmatmul.mubr.bf16.gmra.mrb[120].mxu0 %v2643_v2  ;;  %v4772_v2 = vld [vmem:[%s5771_s13 + $0x278] sm:$0xff] }
 0x26c   : > { %v2418_v1 = vpop.f32.mrb[126].mxu1 }
 0x26d   : > { %v2419_v50 = vadd.f32 %v2418_v1, %v6289_v28  ;;  %v2420_v10 = vpop.f32.mrb[127].mxu1 }
 0x26e   : > { %v2421_v57 = vadd.f32 %v2420_v10, %v6294_v11  ;;  %v4774_v10 = vld [vmem:[%s5771_s13 + $0x288] sm:$0xff] }
 0x26f   : > { %v2645_v4 = vpack.c.bf16 %v2419_v50, %v2413_v37 }
 0x270   : > { %v2646_v53 = vpack.c.bf16 %v2421_v57, %v2415_v40  ;;  %v2424_v12 = vpop.f32.mrb[128].mxu1  ;;  %v4773_v40 = vld [vmem:[%s5771_s13 + $0x280] sm:$0xff] }
 0x271   : > { %v2425_v16 = vadd.f32 %v4757_v8, %v2424_v12  ;;  %v2426_v48 = vpop.f32.mrb[129].mxu1 }
 0x272   : > { %v2427_v52 = vadd.f32 %v4758_v58, %v2426_v48  ;;  %3053 = vmatprep.mubr.bf16.mxu0 %v2646_v53  ;;  %v4775_v53 = vld [vmem:[%s5771_s13 + $0x290] sm:$0xff] }
 0x273   : > { %3054 = vmatmul.mubr.bf16.gmra.mrb[124].mxu0 %v2645_v4 }
 0x274   : > { %v2430_v21 = vpop.f32.mrb[130].mxu1 }
 0x275   : > { %v2431_v28 = vadd.f32 %v4759_v25, %v2430_v21  ;;  %v2432_v18 = vpop.f32.mrb[131].mxu1  ;;  %v4777_v25 = vld [vmem:[%s5771_s13 + $0x2a0] sm:$0xff] }
 0x276   : > { %v2433_v11 = vadd.f32 %v4760_v17, %v2432_v18  ;;  %v4778_v17 = vld [vmem:[%s5771_s13 + $0x2a8] sm:$0xff] }
 0x277   : > { %v2647_v51 = vpack.c.bf16 %v2431_v28, %v2425_v16  ;;  %v4776_v16 = vld [vmem:[%s5771_s13 + $0x298] sm:$0xff] }
 0x278   : > { %v2648_v62 = vpack.c.bf16 %v2433_v11, %v2427_v52  ;;  %v2436_v36 = vpop.f32.mrb[132].mxu1 }
 0x279   : > { %v2437_v47 = vadd.f32 %v4761_v43, %v2436_v36  ;;  %v2438_v63 = vpop.f32.mrb[133].mxu1 }
 0x27a   : > { %v2439_v60 = vadd.f32 %v4762_v56, %v2438_v63  ;;  %3063 = vmatprep.mubr.bf16.mxu0 %v2648_v62  ;;  %v4779_v62 = vld [vmem:[%s5771_s13 + $0x2b0] sm:$0xff] }
 0x27b   : > { %3064 = vmatmul.mubr.bf16.gmra.mrb[128].mxu0 %v2647_v51 }
 0x27c   : > { %v2442_v54 = vpop.f32.mrb[134].mxu1 }
 0x27d   : > { %v2443_v5 = vadd.f32 %v4763_v24, %v2442_v54  ;;  %v2444_v9 = vpop.f32.mrb[135].mxu1  ;;  %v4781_v24 = vld [vmem:[%s5771_s13 + $0x2c0] sm:$0xff] }
 0x27e   : > { %v2445_v0 = vadd.f32 %v4764_v35, %v2444_v9  ;;  %v4782_v35 = vld [vmem:[%s5771_s13 + $0x2c8] sm:$0xff] }
 0x27f   : > { %v2649_v15 = vpack.c.bf16 %v2443_v5, %v2437_v47  ;;  %v4780_v47 = vld [vmem:[%s5771_s13 + $0x2b8] sm:$0xff] }
 0x280   : > { %v2650_v20 = vpack.c.bf16 %v2445_v0, %v2439_v60  ;;  %v2448_v6 = vpop.f32.mrb[136].mxu1 }
 0x281   : > { %v2449_v19 = vadd.f32 %v4765_v27, %v2448_v6  ;;  %v2450_v38 = vpop.f32.mrb[137].mxu1 }
 0x282   : > { %v2451_v22 = vadd.f32 %v4766_v42, %v2450_v38  ;;  %3073 = vmatprep.mubr.bf16.mxu0 %v2650_v20  ;;  %v4783_v20 = vld [vmem:[%s5771_s13 + $0x2d0] sm:$0xff] }
 0x283   : > { %3074 = vmatmul.mubr.bf16.gmra.mrb[132].mxu0 %v2649_v15 }
 0x284   : > { %v2454_v59 = vpop.f32.mrb[138].mxu1 }
 0x285   : > { %v2455_v55 = vadd.f32 %v4767_v44, %v2454_v59  ;;  %v2456_v45 = vpop.f32.mrb[139].mxu1  ;;  %v4785_v44 = vld [vmem:[%s5771_s13 + $0x2e0] sm:$0xff] }
 0x286   : > { %v2457_v61 = vadd.f32 %v4768_v41, %v2456_v45  ;;  %v4786_v41 = vld [vmem:[%s5771_s13 + $0x2e8] sm:$0xff] }
 0x287   : > { %v2651_v30 = vpack.c.bf16 %v2455_v55, %v2449_v19  ;;  %v4784_v19 = vld [vmem:[%s5771_s13 + $0x2d8] sm:$0xff] }
 0x288   : > { %v2652_v46 = vpack.c.bf16 %v2457_v61, %v2451_v22  ;;  %v2460_v23 = vpop.f32.mrb[140].mxu1 }
 0x289   : > { %v2461_v26 = vadd.f32 %v4769_v34, %v2460_v23  ;;  %v2462_v3 = vpop.f32.mrb[141].mxu1 }
 0x28a   : > { %v2463_v49 = vadd.f32 %v4770_v32, %v2462_v3  ;;  %3083 = vmatprep.mubr.bf16.mxu0 %v2652_v46  ;;  %v4787_v46 = vld [vmem:[%s5771_s13 + $0x2f0] sm:$0xff] }
 0x28b   : > { %3084 = vmatmul.mubr.bf16.gmra.mrb[136].mxu0 %v2651_v30 }
 0x28c   : > { %v2466_v13 = vpop.f32.mrb[142].mxu1 }
 0x28d   : > { %v2467_v14 = vadd.f32 %v4771_v29, %v2466_v13  ;;  %v2468_v39 = vpop.f32.mrb[143].mxu1  ;;  %v4789_v29 = vld [vmem:[%s5771_s13 + $0x300] sm:$0xff] }
 0x28e   : > { %v2469_v31 = vadd.f32 %v4772_v2, %v2468_v39  ;;  %v4790_v2 = vld [vmem:[%s5771_s13 + $0x308] sm:$0xff] }
 0x28f   : > { %v2653_v33 = vpack.c.bf16 %v2467_v14, %v2461_v26  ;;  %v4788_v26 = vld [vmem:[%s5771_s13 + $0x2f8] sm:$0xff] }
 0x290   : > { %v2654_v37 = vpack.c.bf16 %v2469_v31, %v2463_v49  ;;  %v2472_v7 = vpop.f32.mrb[144].mxu1 }
 0x291   : > { %v2473_v1 = vadd.f32 %v4773_v40, %v2472_v7  ;;  %v2474_v50 = vpop.f32.mrb[145].mxu1 }
 0x292   : > { %v2475_v57 = vadd.f32 %v4774_v10, %v2474_v50  ;;  %3093 = vmatprep.mubr.bf16.mxu0 %v2654_v37  ;;  %v4791_v37 = vld [vmem:[%s5771_s13 + $0x310] sm:$0xff] }
 0x293   : > { %3094 = vmatmul.mubr.bf16.gmra.mrb[140].mxu0 %v2653_v33 }
 0x294   : > { %v2478_v4 = vpop.f32.mrb[146].mxu1 }
 0x295   : > { %v2479_v12 = vadd.f32 %v4775_v53, %v2478_v4  ;;  %v2480_v8 = vpop.f32.mrb[147].mxu1  ;;  %v4793_v53 = vld [vmem:[%s5771_s13 + $0x320] sm:$0xff] }
 0x296   : > { %v2481_v48 = vadd.f32 %v4776_v16, %v2480_v8  ;;  %v4794_v16 = vld [vmem:[%s5771_s13 + $0x328] sm:$0xff] }
 0x297   : > { %v2655_v58 = vpack.c.bf16 %v2479_v12, %v2473_v1  ;;  %v4792_v1 = vld [vmem:[%s5771_s13 + $0x318] sm:$0xff] }
 0x298   : > { %v2656_v52 = vpack.c.bf16 %v2481_v48, %v2475_v57  ;;  %v2484_v21 = vpop.f32.mrb[148].mxu1 }
 0x299   : > { %v2485_v28 = vadd.f32 %v4777_v25, %v2484_v21  ;;  %v2486_v18 = vpop.f32.mrb[149].mxu1 }
 0x29a   : > { %v2487_v11 = vadd.f32 %v4778_v17, %v2486_v18  ;;  %3103 = vmatprep.mubr.bf16.mxu0 %v2656_v52  ;;  %v4795_v52 = vld [vmem:[%s5771_s13 + $0x330] sm:$0xff] }
 0x29b   : > { %3104 = vmatmul.mubr.bf16.gmra.mrb[144].mxu0 %v2655_v58 }
 0x29c   : > { %v2490_v51 = vpop.f32.mrb[150].mxu1 }
 0x29d   : > { %v2491_v36 = vadd.f32 %v4779_v62, %v2490_v51  ;;  %v2492_v43 = vpop.f32.mrb[151].mxu1  ;;  %v4797_v62 = vld [vmem:[%s5771_s13 + $0x340] sm:$0xff] }
 0x29e   : > { %v2493_v63 = vadd.f32 %v4780_v47, %v2492_v43  ;;  %v4798_v47 = vld [vmem:[%s5771_s13 + $0x348] sm:$0xff] }
 0x29f   : > { %v2657_v56 = vpack.c.bf16 %v2491_v36, %v2485_v28  ;;  %v4796_v28 = vld [vmem:[%s5771_s13 + $0x338] sm:$0xff] }
 0x2a0   : > { %v2658_v60 = vpack.c.bf16 %v2493_v63, %v2487_v11  ;;  %v2496_v54 = vpop.f32.mrb[152].mxu1 }
 0x2a1   : > { %v2497_v5 = vadd.f32 %v4781_v24, %v2496_v54  ;;  %v2498_v9 = vpop.f32.mrb[153].mxu1 }
 0x2a2   : > { %v2499_v0 = vadd.f32 %v4782_v35, %v2498_v9  ;;  %3113 = vmatprep.mubr.bf16.mxu0 %v2658_v60  ;;  %v4799_v60 = vld [vmem:[%s5771_s13 + $0x350] sm:$0xff] }
 0x2a3   : > { %3114 = vmatmul.mubr.bf16.gmra.mrb[148].mxu0 %v2657_v56 }
 0x2a4   : > { %v2502_v15 = vpop.f32.mrb[154].mxu1 }
 0x2a5   : > { %v2503_v6 = vadd.f32 %v4783_v20, %v2502_v15  ;;  %v2504_v27 = vpop.f32.mrb[155].mxu1  ;;  %v4801_v20 = vld [vmem:[%s5771_s13 + $0x360] sm:$0xff] }
 0x2a6   : > { %v2505_v38 = vadd.f32 %v4784_v19, %v2504_v27  ;;  %v4802_v19 = vld [vmem:[%s5771_s13 + $0x368] sm:$0xff] }
 0x2a7   : > { %v2659_v42 = vpack.c.bf16 %v2503_v6, %v2497_v5  ;;  %v4800_v5 = vld [vmem:[%s5771_s13 + $0x358] sm:$0xff] }
 0x2a8   : > { %v2660_v22 = vpack.c.bf16 %v2505_v38, %v2499_v0  ;;  %v2508_v59 = vpop.f32.mrb[156].mxu1 }
 0x2a9   : > { %v2509_v55 = vadd.f32 %v4785_v44, %v2508_v59  ;;  %v2510_v45 = vpop.f32.mrb[157].mxu1 }
 0x2aa   : > { %v2511_v61 = vadd.f32 %v4786_v41, %v2510_v45  ;;  %3123 = vmatprep.mubr.bf16.mxu0 %v2660_v22  ;;  %v4803_v22 = vld [vmem:[%s5771_s13 + $0x370] sm:$0xff] }
 0x2ab   : > { %3124 = vmatmul.mubr.bf16.gmra.mrb[152].mxu0 %v2659_v42 }
 0x2ac   : > { %v2514_v30 = vpop.f32.mrb[158].mxu1 }
 0x2ad   : > { %v2515_v23 = vadd.f32 %v4787_v46, %v2514_v30  ;;  %v2516_v34 = vpop.f32.mrb[159].mxu1 }
 0x2ae   : > { %v2517_v3 = vadd.f32 %v4788_v26, %v2516_v34  ;;  %v4805_v26 = vld [vmem:[%s5771_s13 + $0x380] sm:$0xff] }
 0x2af   : > { %v2661_v32 = vpack.c.bf16 %v2515_v23, %v2509_v55  ;;  %v4804_v55 = vld [vmem:[%s5771_s13 + $0x378] sm:$0xff] }
 0x2b0   : > { %v2662_v49 = vpack.c.bf16 %v2517_v3, %v2511_v61  ;;  %v2520_v13 = vpop.f32.mrb[160].mxu1 }
 0x2b1   : > { %v2521_v14 = vadd.f32 %v4789_v29, %v2520_v13  ;;  %v2522_v39 = vpop.f32.mrb[161].mxu1  ;;  %v4806_v13 = vld [vmem:[%s5771_s13 + $0x388] sm:$0xff] }
 0x2b2   : > { %v2523_v31 = vadd.f32 %v4790_v2, %v2522_v39  ;;  %3133 = vmatprep.mubr.bf16.mxu0 %v2662_v49  ;;  %v4807_v39 = vld [vmem:[%s5771_s13 + $0x390] sm:$0xff] }
 0x2b3   : > { %3134 = vmatmul.mubr.bf16.gmra.mrb[156].mxu0 %v2661_v32 }
 0x2b4   : > { %v2526_v33 = vpop.f32.mrb[162].mxu1 }
 0x2b5   : > { %v2527_v7 = vadd.f32 %v4791_v37, %v2526_v33  ;;  %v2528_v40 = vpop.f32.mrb[163].mxu1  ;;  %v4808_v33 = vld [vmem:[%s5771_s13 + $0x398] sm:$0xff] }
 0x2b6   : > { %v2529_v50 = vadd.f32 %v4792_v1, %v2528_v40 }
 0x2b7   : > { %v2663_v10 = vpack.c.bf16 %v2527_v7, %v2521_v14 }
 0x2b8   : > { %v2664_v57 = vpack.c.bf16 %v2529_v50, %v2523_v31  ;;  %v2532_v4 = vpop.f32.mrb[164].mxu1 }
 0x2b9   : > { %v2533_v12 = vadd.f32 %v4793_v53, %v2532_v4  ;;  %v2534_v8 = vpop.f32.mrb[165].mxu1  ;;  %v4809_v53 = vld [vmem:[%s5771_s13 + $0x3a0] sm:$0xff] }
 0x2ba   : > { %v2535_v48 = vadd.f32 %v4794_v16, %v2534_v8  ;;  %3143 = vmatprep.mubr.bf16.mxu0 %v2664_v57 }
 0x2bb   : > { %3144 = vmatmul.mubr.bf16.gmra.mrb[160].mxu0 %v2663_v10 }
 0x2bc   : > { %v2538_v58 = vpop.f32.mrb[166].mxu1 }
 0x2bd   : > { %v2539_v21 = vadd.f32 %v4795_v52, %v2538_v58  ;;  %v2540_v25 = vpop.f32.mrb[167].mxu1  ;;  %v4810_v58 = vld [vmem:[%s5771_s13 + $0x3a8] sm:$0xff] }
 0x2be   : > { %v2541_v18 = vadd.f32 %v4796_v28, %v2540_v25 }
 0x2bf   : > { %v2665_v17 = vpack.c.bf16 %v2539_v21, %v2533_v12 }
 0x2c0   : > { %v2666_v11 = vpack.c.bf16 %v2541_v18, %v2535_v48  ;;  %v2544_v51 = vpop.f32.mrb[168].mxu1 }
 0x2c1   : > { %v2545_v36 = vadd.f32 %v4797_v62, %v2544_v51  ;;  %v2546_v43 = vpop.f32.mrb[169].mxu1 }
 0x2c2   : > { %v2547_v63 = vadd.f32 %v4798_v47, %v2546_v43  ;;  %3153 = vmatprep.mubr.bf16.mxu0 %v2666_v11  ;;  %v4811_v11 = vld [vmem:[%s5771_s13 + $0x3b0] sm:$0xff] }
 0x2c3   : > { %3154 = vmatmul.mubr.bf16.gmra.mrb[164].mxu0 %v2665_v17 }
 0x2c4   : > { %v2550_v56 = vpop.f32.mrb[170].mxu1 }
 0x2c5   : > { %v2551_v54 = vadd.f32 %v4799_v60, %v2550_v56  ;;  %v2552_v24 = vpop.f32.mrb[171].mxu1 }
 0x2c6   : > { %v2553_v9 = vadd.f32 %v4800_v5, %v2552_v24 }
 0x2c7   : > { %v2667_v35 = vpack.c.bf16 %v2551_v54, %v2545_v36  ;;  %v4812_v36 = vld [vmem:[%s5771_s13 + $0x3b8] sm:$0xff] }
 0x2c8   : > { %v2668_v0 = vpack.c.bf16 %v2553_v9, %v2547_v63  ;;  %v2556_v15 = vpop.f32.mrb[172].mxu1  ;;  %v4813_v9 = vld [vmem:[%s5771_s13 + $0x3c0] sm:$0xff] }
 0x2c9   : > { %v2557_v6 = vadd.f32 %v4801_v20, %v2556_v15  ;;  %v2558_v27 = vpop.f32.mrb[173].mxu1 }
 0x2ca   : > { %v2559_v38 = vadd.f32 %v4802_v19, %v2558_v27  ;;  %3163 = vmatprep.mubr.bf16.mxu0 %v2668_v0 }
 0x2cb   : > { %3164 = vmatmul.mubr.bf16.gmra.mrb[168].mxu0 %v2667_v35 }
 0x2cc   : > { %v2562_v42 = vpop.f32.mrb[174].mxu1 }
 0x2cd   : > { %v2563_v59 = vadd.f32 %v4803_v22, %v2562_v42  ;;  %v2564_v44 = vpop.f32.mrb[175].mxu1 }
 0x2ce   : > { %v2565_v45 = vadd.f32 %v4804_v55, %v2564_v44  ;;  %v2905_v41 = vpop.f32.mrb[64].mxu0  ;;  %v4815_v44 = vld [vmem:[%s5771_s13 + $0x3d0] sm:$0xff] }
 0x2cf   : > { %v2669_v61 = vpack.c.bf16 %v2563_v59, %v2557_v6  ;;  %4501 = vtanh.f32 %v2905_v41  ;;  %v2907_v30 = vpop.f32.mrb[65].mxu0  ;;  %v4814_v6 = vld [vmem:[%s5771_s13 + $0x3c8] sm:$0xff]  ;;  %v4816_v41 = vld [vmem:[%s5771_s13 + $0x3d8] sm:$0xff] }
 0x2d0   : > { %v2670_v46 = vpack.c.bf16 %v2565_v45, %v2559_v38  ;;  %4503 = vtanh.f32 %v2907_v30  ;;  %v2568_v23 = vpop.f32.mrb[176].mxu1  ;;  %v2909_v34 = vpop.f32.mrb[66].mxu0 }
 0x2d1   : > { %v2569_v3 = vadd.f32 %v4805_v26, %v2568_v23  ;;  %4505 = vtanh.f32 %v2909_v34  ;;  %v2570_v32 = vpop.f32.mrb[177].mxu1  ;;  %v2911_v49 = vpop.f32.mrb[67].mxu0 }
 0x2d2   : > { %v2571_v29 = vadd.f32 %v4806_v13, %v2570_v32  ;;  %4507 = vtanh.f32 %v2911_v49  ;;  %3173 = vmatprep.mubr.bf16.mxu0 %v2670_v46  ;;  %v4817_v49 = vld [vmem:[%s5771_s13 + $0x3e0] sm:$0xff] }
 0x2d3   : > { %3174 = vmatmul.mubr.bf16.gmra.mrb[172].mxu0 %v2669_v61 }
 0x2d4   : > { %v2574_v14 = vpop.f32.mrb[178].mxu1 }
 0x2d5   : > { %v2575_v2 = vadd.f32 %v4807_v39, %v2574_v14  ;;  %v2576_v31 = vpop.f32.mrb[179].mxu1 }
 0x2d6   : > { %v2577_v37 = vadd.f32 %v4808_v33, %v2576_v31  ;;  %v2915_v7 = vpop.f32.mrb[68].mxu0 }
 0x2d7   : > { %v2671_v40 = vpack.c.bf16 %v2575_v2, %v2569_v3  ;;  %4509 = vtanh.f32 %v2915_v7  ;;  %v2917_v1 = vpop.f32.mrb[69].mxu0  ;;  %v4818_v2 = vld [vmem:[%s5771_s13 + $0x3e8] sm:$0xff] }
 0x2d8   : > { %v2672_v50 = vpack.c.bf16 %v2577_v37, %v2571_v29  ;;  %4511 = vtanh.f32 %v2917_v1  ;;  %v2580_v10 = vpop.f32.mrb[180].mxu1  ;;  %v2919_v57 = vpop.f32.mrb[70].mxu0 }
 0x2d9   : > { %v4502_v4 = vpop.eup %4501  ;;  %v2581_v12 = vadd.f32 %v4809_v53, %v2580_v10  ;;  %4513 = vtanh.f32 %v2919_v57  ;;  %v2582_v8 = vpop.f32.mrb[181].mxu1 }
 0x2da   : > { %v2921_v16 = vpop.f32.mrb[71].mxu0  ;;  %v4504_v48 = vpop.eup %4503  ;;  %v2583_v52 = vadd.f32 %v4810_v58, %v2582_v8  ;;  %3183 = vmatprep.mubr.bf16.mxu0 %v2672_v50  ;;  %v4819_v50 = vld [vmem:[%s5771_s13 + $0x3f0] sm:$0xff] }
 0x2db   : > { %4515 = vtanh.f32 %v2921_v16  ;;  %v4506_v21 = vpop.eup %4505  ;;  %v4315_v25 = vpack.c.bf16 %v4504_v48, %v4502_v4  ;;  %3184 = vmatmul.mubr.bf16.gmra.mrb[176].mxu0 %v2671_v40  ;;  %v4820_v4 = vld [vmem:[%s5771_s13 + $0x3f8] sm:$0xff]  ;;  %s4919_s13 = smov [#allocation4]  }
 0x2dc   : > { %v4508_v28 = vpop.eup %4507  ;;  %v2586_v18 = vpop.f32.mrb[182].mxu1  ;;  %s4825_s14 = sshll.u32 %s4919_s13, 4  ;;  %s4826_s14 = int_to_ptr.vmem [resolvable:$false] %s4825_s14 }
 0x2dd   : > { %3736 = vst [vmem:[%s6386_s20] sm:$0xff] %v4315_v25  ;;  %v4316_v17 = vpack.c.bf16 %v4508_v28, %v4506_v21  ;;  %v2587_v51 = vadd.f32 %v4811_v11, %v2586_v18  ;;  %v2588_v62 = vpop.f32.mrb[183].mxu1  ;;  %s4827_s16 = scalar_lea.vmem %s4826_s14, 32768  ;;  %p4828_p0 = scmp.lt.s32.totalorder %s6437_s28, %s4826_s14 }
 0x2de   : > { %v2589_v43 = vadd.f32 %v4812_v36, %v2588_v62  ;;  %v2925_v47 = vpop.f32.mrb[72].mxu0  ;;  %p4829_p1 = scmp.lt.s32.totalorder %s4827_s16, %s4821_s12 }
 0x2df   : > { %3737 = vst [vmem:[%s6386_s20 + $0x8] sm:$0xff] %v4316_v17  ;;  %v2673_v63 = vpack.c.bf16 %v2587_v51, %v2581_v12  ;;  %4517 = vtanh.f32 %v2925_v47  ;;  %v2927_v56 = vpop.f32.mrb[73].mxu0 }
 0x2e0   : > { %v2674_v60 = vpack.c.bf16 %v2589_v43, %v2583_v52  ;;  %4519 = vtanh.f32 %v2927_v56  ;;  %v2592_v54 = vpop.f32.mrb[184].mxu1  ;;  %v2929_v24 = vpop.f32.mrb[74].mxu0  ;;  %p4830_p2 = por %p4829_p1, %p4828_p0 }
 0x2e1   : > { %v4510_v5 = vpop.eup %4509  ;;  %v2593_v35 = vadd.f32 %v4813_v9, %v2592_v54  ;;  %4521 = vtanh.f32 %v2929_v24  ;;  %v2594_v0 = vpop.f32.mrb[185].mxu1 }
 0x2e2   : > { %v2931_v15 = vpop.f32.mrb[75].mxu0  ;;  %v4512_v20 = vpop.eup %4511  ;;  %v2595_v27 = vadd.f32 %v4814_v6, %v2594_v0  ;;  %3193 = vmatprep.mubr.bf16.mxu0 %v2674_v60  ;;  %p4831_p3 = pnand %p4830_p2, %p4824_p13 }
 0x2e3   : > { %4523 = vtanh.f32 %v2931_v15  ;;  %v4514_v19 = vpop.eup %4513  ;;  %v4317_v38 = vpack.c.bf16 %v4512_v20, %v4510_v5  ;;  %3194 = vmatmul.mubr.bf16.gmra.mrb[180].mxu0 %v2673_v63 }
 0x2e4   : > { %v2598_v22 = vpop.f32.mrb[186].mxu1 }
 0x2e5   : > { %v4516_v42 = vpop.eup %4515  ;;  %3738 = vst [vmem:[%s6386_s20 + $0x10] sm:$0xff] %v4317_v38  ;;  %v2599_v55 = vadd.f32 %v4815_v44, %v2598_v22  ;;  %v2600_v45 = vpop.f32.mrb[187].mxu1 }
 0x2e6   : > { %v4318_v59 = vpack.c.bf16 %v4516_v42, %v4514_v19  ;;  %v2601_v61 = vadd.f32 %v4816_v41, %v2600_v45  ;;  %v2935_v30 = vpop.f32.mrb[76].mxu0 }
 0x2e7   : > { %v2675_v46 = vpack.c.bf16 %v2599_v55, %v2593_v35  ;;  %4525 = vtanh.f32 %v2935_v30  ;;  %v2937_v23 = vpop.f32.mrb[77].mxu0 }
 0x2e8   : > { %3739 = vst [vmem:[%s6386_s20 + $0x18] sm:$0xff] %v4318_v59  ;;  %v2676_v34 = vpack.c.bf16 %v2601_v61, %v2595_v27  ;;  %4527 = vtanh.f32 %v2937_v23  ;;  %v2604_v26 = vpop.f32.mrb[188].mxu1  ;;  %v2939_v3 = vpop.f32.mrb[78].mxu0 }
 0x2e9   : > { %v4518_v32 = vpop.eup %4517  ;;  %v2605_v13 = vadd.f32 %v4817_v49, %v2604_v26  ;;  %4529 = vtanh.f32 %v2939_v3  ;;  %v2606_v29 = vpop.f32.mrb[189].mxu1 }
 0x2ea   : > { %v2941_v14 = vpop.f32.mrb[79].mxu0  ;;  %v4520_v39 = vpop.eup %4519  ;;  %v2607_v31 = vadd.f32 %v4818_v2, %v2606_v29  ;;  %3203 = vmatprep.mubr.bf16.mxu0 %v2676_v34 }
 0x2eb   : > { %4531 = vtanh.f32 %v2941_v14  ;;  %v4522_v33 = vpop.eup %4521  ;;  %v4319_v37 = vpack.c.bf16 %v4520_v39, %v4518_v32  ;;  %3204 = vmatmul.mubr.bf16.gmra.mrb[184].mxu0 %v2675_v46 }
 0x2ec   : > { %v2610_v40 = vpop.f32.mrb[190].mxu1 }
 0x2ed   : > { %v4524_v7 = vpop.eup %4523  ;;  %3740 = vst [vmem:[%s6386_s20 + $0x20] sm:$0xff] %v4319_v37  ;;  %v2611_v10 = vadd.f32 %v4819_v50, %v2610_v40  ;;  %v2612_v57 = vpop.f32.mrb[191].mxu1 }
 0x2ee   : > { %v4320_v1 = vpack.c.bf16 %v4524_v7, %v4522_v33  ;;  %v2613_v53 = vadd.f32 %v4820_v4, %v2612_v57  ;;  %v2945_v12 = vpop.f32.mrb[80].mxu0 }
 0x2ef   : > { %v2677_v8 = vpack.c.bf16 %v2611_v10, %v2605_v13  ;;  %4533 = vtanh.f32 %v2945_v12  ;;  %v2947_v16 = vpop.f32.mrb[81].mxu0 }
 0x2f0   : > { %3741 = vst [vmem:[%s6386_s20 + $0x28] sm:$0xff] %v4320_v1  ;;  %v2678_v48 = vpack.c.bf16 %v2613_v53, %v2607_v31  ;;  %4535 = vtanh.f32 %v2947_v16  ;;  %v2949_v58 = vpop.f32.mrb[82].mxu0 }
 0x2f1   : > { %v4526_v52 = vpop.eup %4525  ;;  %4537 = vtanh.f32 %v2949_v58  ;;  %v2951_v21 = vpop.f32.mrb[83].mxu0 }
 0x2f2   : > { %v4528_v25 = vpop.eup %4527  ;;  %4539 = vtanh.f32 %v2951_v21  ;;  %3213 = vmatprep.mubr.bf16.mxu0 %v2678_v48 }
 0x2f3   : > { %v4530_v28 = vpop.eup %4529  ;;  %v4321_v18 = vpack.c.bf16 %v4528_v25, %v4526_v52  ;;  %3214 = vmatmul.mubr.bf16.gmra.mrb[188].mxu0 %v2677_v8 }
 0x2f5   : > { %v4532_v17 = vpop.eup %4531  ;;  %3742 = vst [vmem:[%s6386_s20 + $0x30] sm:$0xff] %v4321_v18 }
 0x2f6   : > { %v4322_v11 = vpack.c.bf16 %v4532_v17, %v4530_v28  ;;  %v2955_v51 = vpop.f32.mrb[84].mxu0 }
 0x2f7   : > { %4541 = vtanh.f32 %v2955_v51  ;;  %v2957_v62 = vpop.f32.mrb[85].mxu0 }
 0x2f8   : > { %3743 = vst [vmem:[%s6386_s20 + $0x38] sm:$0xff] %v4322_v11  ;;  %4543 = vtanh.f32 %v2957_v62  ;;  %v2959_v36 = vpop.f32.mrb[86].mxu0 }
 0x2f9   : > { %v4534_v43 = vpop.eup %4533  ;;  %4545 = vtanh.f32 %v2959_v36  ;;  %v2961_v47 = vpop.f32.mrb[87].mxu0 }
 0x2fa   : > { %v4536_v63 = vpop.eup %4535  ;;  %4547 = vtanh.f32 %v2961_v47 }
 0x2fb   : > { %v4538_v56 = vpop.eup %4537  ;;  %v4323_v60 = vpack.c.bf16 %v4536_v63, %v4534_v43 }
 0x2fc   : > { %v4540_v54 = vpop.eup %4539 }
 0x2fd   : > { %3744 = vst [vmem:[%s6386_s20 + $0x40] sm:$0xff] %v4323_v60  ;;  %v4324_v24 = vpack.c.bf16 %v4540_v54, %v4538_v56 }
 0x2fe   : > { %v2965_v5 = vpop.f32.mrb[88].mxu0 }
 0x2ff   : > { %3745 = vst [vmem:[%s6386_s20 + $0x48] sm:$0xff] %v4324_v24  ;;  %4549 = vtanh.f32 %v2965_v5  ;;  %v2967_v9 = vpop.f32.mrb[89].mxu0 }
 0x300   : > { %4551 = vtanh.f32 %v2967_v9  ;;  %v2969_v35 = vpop.f32.mrb[90].mxu0 }
 0x301   : > { %v4542_v0 = vpop.eup %4541  ;;  %4553 = vtanh.f32 %v2969_v35  ;;  %v2971_v15 = vpop.f32.mrb[91].mxu0 }
 0x302   : > { %v4544_v20 = vpop.eup %4543  ;;  %4555 = vtanh.f32 %v2971_v15 }
 0x303   : > { %v4546_v6 = vpop.eup %4545  ;;  %v4325_v27 = vpack.c.bf16 %v4544_v20, %v4542_v0 }
 0x304   : > { %v4548_v19 = vpop.eup %4547 }
 0x305   : > { %3746 = vst [vmem:[%s6386_s20 + $0x50] sm:$0xff] %v4325_v27  ;;  %v4326_v38 = vpack.c.bf16 %v4548_v19, %v4546_v6 }
 0x306   : > { %v2975_v42 = vpop.f32.mrb[92].mxu0 }
 0x307   : > { %3747 = vst [vmem:[%s6386_s20 + $0x58] sm:$0xff] %v4326_v38  ;;  %4557 = vtanh.f32 %v2975_v42  ;;  %v2977_v22 = vpop.f32.mrb[93].mxu0 }
 0x308   : > { %4559 = vtanh.f32 %v2977_v22  ;;  %v2979_v59 = vpop.f32.mrb[94].mxu0 }
 0x309   : > { %v4550_v44 = vpop.eup %4549  ;;  %4561 = vtanh.f32 %v2979_v59  ;;  %v2981_v55 = vpop.f32.mrb[95].mxu0 }
 0x30a   : > { %v4552_v45 = vpop.eup %4551  ;;  %4563 = vtanh.f32 %v2981_v55 }
 0x30b   : > { %v4554_v41 = vpop.eup %4553  ;;  %v4327_v61 = vpack.c.bf16 %v4552_v45, %v4550_v44 }
 0x30c   : > { %v4556_v30 = vpop.eup %4555 }
 0x30d   : > { %3748 = vst [vmem:[%s6386_s20 + $0x60] sm:$0xff] %v4327_v61  ;;  %v4328_v46 = vpack.c.bf16 %v4556_v30, %v4554_v41 }
 0x30e   : > { %v2985_v23 = vpop.f32.mrb[96].mxu0 }
 0x30f   : > { %3749 = vst [vmem:[%s6386_s20 + $0x68] sm:$0xff] %v4328_v46  ;;  %4565 = vtanh.f32 %v2985_v23  ;;  %v2987_v34 = vpop.f32.mrb[97].mxu0 }
 0x310   : > { %4567 = vtanh.f32 %v2987_v34  ;;  %v2989_v26 = vpop.f32.mrb[98].mxu0 }
 0x311   : > { %v4558_v3 = vpop.eup %4557  ;;  %4569 = vtanh.f32 %v2989_v26  ;;  %v2991_v32 = vpop.f32.mrb[99].mxu0 }
 0x312   : > { %v4560_v49 = vpop.eup %4559  ;;  %4571 = vtanh.f32 %v2991_v32 }
 0x313   : > { %v4562_v13 = vpop.eup %4561  ;;  %v4329_v29 = vpack.c.bf16 %v4560_v49, %v4558_v3 }
 0x314   : > { %v4564_v14 = vpop.eup %4563 }
 0x315   : > { %3750 = vst [vmem:[%s6386_s20 + $0x70] sm:$0xff] %v4329_v29  ;;  %v4330_v39 = vpack.c.bf16 %v4564_v14, %v4562_v13 }
 0x316   : > { %v2995_v2 = vpop.f32.mrb[100].mxu0 }
 0x317   : > { %3751 = vst [vmem:[%s6386_s20 + $0x78] sm:$0xff] %v4330_v39  ;;  %4573 = vtanh.f32 %v2995_v2  ;;  %v2997_v31 = vpop.f32.mrb[101].mxu0 }
 0x318   : > { %4575 = vtanh.f32 %v2997_v31  ;;  %v2999_v33 = vpop.f32.mrb[102].mxu0 }
 0x319   : > { %v4566_v37 = vpop.eup %4565  ;;  %4577 = vtanh.f32 %v2999_v33  ;;  %v3001_v7 = vpop.f32.mrb[103].mxu0 }
 0x31a   : > { %v4568_v40 = vpop.eup %4567  ;;  %4579 = vtanh.f32 %v3001_v7 }
 0x31b   : > { %v4570_v1 = vpop.eup %4569  ;;  %v4331_v50 = vpack.c.bf16 %v4568_v40, %v4566_v37 }
 0x31c   : > { %v4572_v10 = vpop.eup %4571 }
 0x31d   : > { %3752 = vst [vmem:[%s6386_s20 + $0x80] sm:$0xff] %v4331_v50  ;;  %v4332_v57 = vpack.c.bf16 %v4572_v10, %v4570_v1 }
 0x31e   : > { %v3005_v4 = vpop.f32.mrb[104].mxu0 }
 0x31f   : > { %3753 = vst [vmem:[%s6386_s20 + $0x88] sm:$0xff] %v4332_v57  ;;  %4581 = vtanh.f32 %v3005_v4  ;;  %v3007_v53 = vpop.f32.mrb[105].mxu0 }
 0x320   : > { %4583 = vtanh.f32 %v3007_v53  ;;  %v3009_v12 = vpop.f32.mrb[106].mxu0 }
 0x321   : > { %v4574_v8 = vpop.eup %4573  ;;  %4585 = vtanh.f32 %v3009_v12  ;;  %v3011_v16 = vpop.f32.mrb[107].mxu0 }
 0x322   : > { %v4576_v48 = vpop.eup %4575  ;;  %4587 = vtanh.f32 %v3011_v16 }
 0x323   : > { %v4578_v58 = vpop.eup %4577  ;;  %v4333_v52 = vpack.c.bf16 %v4576_v48, %v4574_v8 }
 0x324   : > { %v4580_v21 = vpop.eup %4579 }
 0x325   : > { %3754 = vst [vmem:[%s6386_s20 + $0x90] sm:$0xff] %v4333_v52  ;;  %v4334_v25 = vpack.c.bf16 %v4580_v21, %v4578_v58 }
 0x326   : > { %v3015_v28 = vpop.f32.mrb[108].mxu0 }
 0x327   : > { %3755 = vst [vmem:[%s6386_s20 + $0x98] sm:$0xff] %v4334_v25  ;;  %4589 = vtanh.f32 %v3015_v28  ;;  %v3017_v18 = vpop.f32.mrb[109].mxu0 }
 0x328   : > { %4591 = vtanh.f32 %v3017_v18  ;;  %v3019_v17 = vpop.f32.mrb[110].mxu0 }
 0x329   : > { %v4582_v11 = vpop.eup %4581  ;;  %4593 = vtanh.f32 %v3019_v17  ;;  %v3021_v51 = vpop.f32.mrb[111].mxu0 }
 0x32a   : > { %v4584_v62 = vpop.eup %4583  ;;  %4595 = vtanh.f32 %v3021_v51 }
 0x32b   : > { %v4586_v36 = vpop.eup %4585  ;;  %v4335_v43 = vpack.c.bf16 %v4584_v62, %v4582_v11 }
 0x32c   : > { %v4588_v47 = vpop.eup %4587 }
 0x32d   : > { %3756 = vst [vmem:[%s6386_s20 + $0xa0] sm:$0xff] %v4335_v43  ;;  %v4336_v63 = vpack.c.bf16 %v4588_v47, %v4586_v36 }
 0x32e   : > { %v3025_v56 = vpop.f32.mrb[112].mxu0 }
 0x32f   : > { %3757 = vst [vmem:[%s6386_s20 + $0xa8] sm:$0xff] %v4336_v63  ;;  %4597 = vtanh.f32 %v3025_v56  ;;  %v3027_v60 = vpop.f32.mrb[113].mxu0 }
 0x330   : > { %4599 = vtanh.f32 %v3027_v60  ;;  %v3029_v54 = vpop.f32.mrb[114].mxu0 }
 0x331   : > { %v4590_v24 = vpop.eup %4589  ;;  %4601 = vtanh.f32 %v3029_v54  ;;  %v3031_v5 = vpop.f32.mrb[115].mxu0 }
 0x332   : > { %v4592_v9 = vpop.eup %4591  ;;  %4603 = vtanh.f32 %v3031_v5 }
 0x333   : > { %v4594_v35 = vpop.eup %4593  ;;  %v4337_v0 = vpack.c.bf16 %v4592_v9, %v4590_v24 }
 0x334   : > { %v4596_v15 = vpop.eup %4595 }
 0x335   : > { %3758 = vst [vmem:[%s6386_s20 + $0xb0] sm:$0xff] %v4337_v0  ;;  %v4338_v20 = vpack.c.bf16 %v4596_v15, %v4594_v35 }
 0x336   : > { %v3035_v6 = vpop.f32.mrb[116].mxu0 }
 0x337   : > { %3759 = vst [vmem:[%s6386_s20 + $0xb8] sm:$0xff] %v4338_v20  ;;  %4605 = vtanh.f32 %v3035_v6  ;;  %v3037_v27 = vpop.f32.mrb[117].mxu0 }
 0x338   : > { %4607 = vtanh.f32 %v3037_v27  ;;  %v3039_v19 = vpop.f32.mrb[118].mxu0 }
 0x339   : > { %v4598_v38 = vpop.eup %4597  ;;  %4609 = vtanh.f32 %v3039_v19  ;;  %v3041_v42 = vpop.f32.mrb[119].mxu0 }
 0x33a   : > { %v4600_v22 = vpop.eup %4599  ;;  %4611 = vtanh.f32 %v3041_v42 }
 0x33b   : > { %v4602_v59 = vpop.eup %4601  ;;  %v4339_v44 = vpack.c.bf16 %v4600_v22, %v4598_v38 }
 0x33c   : > { %v4604_v55 = vpop.eup %4603 }
 0x33d   : > { %3760 = vst [vmem:[%s6386_s20 + $0xc0] sm:$0xff] %v4339_v44  ;;  %v4340_v45 = vpack.c.bf16 %v4604_v55, %v4602_v59 }
 0x33e   : > { %v3045_v41 = vpop.f32.mrb[120].mxu0 }
 0x33f   : > { %3761 = vst [vmem:[%s6386_s20 + $0xc8] sm:$0xff] %v4340_v45  ;;  %4613 = vtanh.f32 %v3045_v41  ;;  %v3047_v61 = vpop.f32.mrb[121].mxu0 }
 0x340   : > { %4615 = vtanh.f32 %v3047_v61  ;;  %v3049_v30 = vpop.f32.mrb[122].mxu0 }
 0x341   : > { %v4606_v46 = vpop.eup %4605  ;;  %4617 = vtanh.f32 %v3049_v30  ;;  %v3051_v23 = vpop.f32.mrb[123].mxu0 }
 0x342   : > { %v4608_v34 = vpop.eup %4607  ;;  %4619 = vtanh.f32 %v3051_v23 }
 0x343   : > { %v4610_v26 = vpop.eup %4609  ;;  %v4341_v3 = vpack.c.bf16 %v4608_v34, %v4606_v46 }
 0x344   : > { %v4612_v32 = vpop.eup %4611 }
 0x345   : > { %3762 = vst [vmem:[%s6386_s20 + $0xd0] sm:$0xff] %v4341_v3  ;;  %v4342_v49 = vpack.c.bf16 %v4612_v32, %v4610_v26 }
 0x346   : > { %v3055_v13 = vpop.f32.mrb[124].mxu0 }
 0x347   : > { %3763 = vst [vmem:[%s6386_s20 + $0xd8] sm:$0xff] %v4342_v49  ;;  %4621 = vtanh.f32 %v3055_v13  ;;  %v3057_v29 = vpop.f32.mrb[125].mxu0 }
 0x348   : > { %4623 = vtanh.f32 %v3057_v29  ;;  %v3059_v14 = vpop.f32.mrb[126].mxu0 }
 0x349   : > { %v4614_v39 = vpop.eup %4613  ;;  %4625 = vtanh.f32 %v3059_v14  ;;  %v3061_v2 = vpop.f32.mrb[127].mxu0 }
 0x34a   : > { %v4616_v31 = vpop.eup %4615  ;;  %4627 = vtanh.f32 %v3061_v2 }
 0x34b   : > { %v4618_v33 = vpop.eup %4617  ;;  %v4343_v37 = vpack.c.bf16 %v4616_v31, %v4614_v39 }
 0x34c   : > { %v4620_v7 = vpop.eup %4619 }
 0x34d   : > { %3764 = vst [vmem:[%s6386_s20 + $0xe0] sm:$0xff] %v4343_v37  ;;  %v4344_v40 = vpack.c.bf16 %v4620_v7, %v4618_v33 }
 0x34e   : > { %v3065_v1 = vpop.f32.mrb[128].mxu0 }
 0x34f   : > { %3765 = vst [vmem:[%s6386_s20 + $0xe8] sm:$0xff] %v4344_v40  ;;  %4629 = vtanh.f32 %v3065_v1  ;;  %v3067_v50 = vpop.f32.mrb[129].mxu0 }
 0x350   : > { %4631 = vtanh.f32 %v3067_v50  ;;  %v3069_v10 = vpop.f32.mrb[130].mxu0 }
 0x351   : > { %v4622_v57 = vpop.eup %4621  ;;  %4633 = vtanh.f32 %v3069_v10  ;;  %v3071_v4 = vpop.f32.mrb[131].mxu0 }
 0x352   : > { %v4624_v53 = vpop.eup %4623  ;;  %4635 = vtanh.f32 %v3071_v4 }
 0x353   : > { %v4626_v12 = vpop.eup %4625  ;;  %v4345_v8 = vpack.c.bf16 %v4624_v53, %v4622_v57 }
 0x354   : > { %v4628_v16 = vpop.eup %4627 }
 0x355   : > { %3766 = vst [vmem:[%s6386_s20 + $0xf0] sm:$0xff] %v4345_v8  ;;  %v4346_v48 = vpack.c.bf16 %v4628_v16, %v4626_v12 }
 0x356   : > { %v3075_v58 = vpop.f32.mrb[132].mxu0 }
 0x357   : > { %3767 = vst [vmem:[%s6386_s20 + $0xf8] sm:$0xff] %v4346_v48  ;;  %4637 = vtanh.f32 %v3075_v58  ;;  %v3077_v52 = vpop.f32.mrb[133].mxu0 }
 0x358   : > { %4639 = vtanh.f32 %v3077_v52  ;;  %v3079_v21 = vpop.f32.mrb[134].mxu0 }
 0x359   : > { %v4630_v25 = vpop.eup %4629  ;;  %4641 = vtanh.f32 %v3079_v21  ;;  %v3081_v28 = vpop.f32.mrb[135].mxu0 }
 0x35a   : > { %v4632_v18 = vpop.eup %4631  ;;  %4643 = vtanh.f32 %v3081_v28 }
 0x35b   : > { %v4634_v17 = vpop.eup %4633  ;;  %v4347_v11 = vpack.c.bf16 %v4632_v18, %v4630_v25 }
 0x35c   : > { %v4636_v51 = vpop.eup %4635 }
 0x35d   : > { %3768 = vst [vmem:[%s6386_s20 + $0x100] sm:$0xff] %v4347_v11  ;;  %v4348_v62 = vpack.c.bf16 %v4636_v51, %v4634_v17 }
 0x35e   : > { %4834 = shalt.err (!%p4831_p3)
}
 0x35f   : > { %s4835_s17 = scalar_lea.hbm %s6435_s10, 16384  ;;  %s4839_s26 = scalar_lea.hbm %s6551_s6, 32768 }
 0x360   : > { %p4836_p4 = scmp.ne.s32.totalorder %s6435_s10, %s4835_s17  ;;  %p4840_p9 = scmp.lt.u32.totalorder %s6435_s10, %s6551_s6 }
 0x361   : > { %p4841_p10 = scmp.lt.u32.totalorder %s4839_s26, %s4835_s17  ;;  %p4843_p12 = scmp.lt.u32.totalorder %s4835_s17, %s6435_s10 }
 0x362   : > { %p4837_p7 = pnand %p4836_p4, %p4998_p5 }
 0x363   : > { %p4842_p11 = por %p4841_p10, %p4840_p9 }
 0x364   : > { %p4838_p8 = pneg %p4837_p7 }
 0x365   : > { %p4844_p13 = por %p4843_p12, %p4842_p11 }
 0x367   : > { %p4845_p0 = pnand %p4844_p13, %p4838_p8 }
 0x369   : > { %4848 = shalt.err (!%p4845_p0)
}
 0x36a   : > { %s4920_s12 = smov 256   ;;  %s4921_s13 = smov 16   ;;  %v3085_v36 = vpop.f32.mrb[136].mxu0  ;;  %3769 = vst [vmem:[%s6386_s20 + $0x108] sm:$0xff] %v4348_v62  ;;  %v4638_v63 = vpop.eup %4637 }
 0x36b   : > { %4402 = dma.vmem_to_hbm [thread:$0]  (%p4998_p5), %s6437_s28, 16384, %s6435_s10, %s3806_s15, %s4920_s12, %s4920_s12, %s4921_s13   ;;  %4645 = vtanh.f32 %v3085_v36  ;;  %v3087_v43 = vpop.f32.mrb[137].mxu0  ;;  %v4640_v60 = vpop.eup %4639 }
 0x36c   : > { %4647 = vtanh.f32 %v3087_v43  ;;  %v3089_v47 = vpop.f32.mrb[138].mxu0  ;;  %v4642_v54 = vpop.eup %4641  ;;  %v4349_v24 = vpack.c.bf16 %v4640_v60, %v4638_v63  ;;  %s4380_s28 = sshll.u32 %s4981_s25, 13  ;;  %s3820_s10 = sshll.u32 %s6386_s20, 4  ;;  %s6500_s10 = int_to_ptr.vmem [resolvable:$true] %s3820_s10 }
 0x36d   : > { %4649 = vtanh.f32 %v3089_v47  ;;  %v3091_v56 = vpop.f32.mrb[139].mxu0  ;;  %v4644_v5 = vpop.eup %4643  ;;  %s6498_s16 = scalar_lea.hbm %s6550_s5, %s4380_s28  ;;  %s3801_s17 = scalar_lea.sflag [#allocation3], %s5753_s29 }
 0x36e   : > { %4651 = vtanh.f32 %v3091_v56  ;;  %3770 = vst [vmem:[%s6386_s20 + $0x110] sm:$0xff] %v4349_v24  ;;  %v4350_v9 = vpack.c.bf16 %v4644_v5, %v4642_v54  ;;  %v3095_v35 = vpop.f32.mrb[140].mxu0  ;;  %s4849_s25 = scalar_lea.vmem %s6500_s10, 8192  ;;  %s4922_s18 = smov [#allocation2]  }
 0x36f   : > { %4653 = vtanh.f32 %v3095_v35  ;;  %v3097_v0 = vpop.f32.mrb[141].mxu0  ;;  %p4850_p1 = scmp.ne.s32.totalorder %s6500_s10, %s4849_s25  ;;  %s4853_s19 = sshll.u32 %s4922_s18, 4  ;;  %s4854_s19 = int_to_ptr.vmem [resolvable:$false] %s4853_s19 }
 0x370   : > { %3771 = vst [vmem:[%s6386_s20 + $0x118] sm:$0xff] %v4350_v9  ;;  %4655 = vtanh.f32 %v3097_v0  ;;  %v3099_v15 = vpop.f32.mrb[142].mxu0  ;;  %s4855_s26 = scalar_lea.vmem %s4854_s19, 16384  ;;  %p4856_p4 = scmp.lt.s32.totalorder %s6500_s10, %s4854_s19 }
 0x371   : > { %4657 = vtanh.f32 %v3099_v15  ;;  %v3101_v6 = vpop.f32.mrb[143].mxu0  ;;  %p4851_p2 = pnand %p4850_p1, %p4998_p5  ;;  %p4857_p7 = scmp.lt.s32.totalorder %s4855_s26, %s4849_s25 }
 0x372   : > { %4659 = vtanh.f32 %v3101_v6  ;;  %v3105_v59 = vpop.f32.mrb[144].mxu0 }
 0x373   : > { %4661 = vtanh.f32 %v3105_v59  ;;  %v3107_v44 = vpop.f32.mrb[145].mxu0  ;;  %p4852_p3 = pneg %p4851_p2  ;;  %p4858_p8 = por %p4857_p7, %p4856_p4 }
 0x374   : > { %4663 = vtanh.f32 %v3107_v44  ;;  %v3109_v55 = vpop.f32.mrb[146].mxu0 }
 0x375   : > { %v4646_v20 = vpop.eup %4645  ;;  %4665 = vtanh.f32 %v3109_v55  ;;  %v3111_v41 = vpop.f32.mrb[147].mxu0  ;;  %p4859_p9 = pnand %p4858_p8, %p4852_p3 }
 0x376   : > { %v4648_v27 = vpop.eup %4647  ;;  %4667 = vtanh.f32 %v3111_v41  ;;  %v3115_v26 = vpop.f32.mrb[148].mxu0 }
 0x377   : > { %v4650_v19 = vpop.eup %4649  ;;  %v4351_v38 = vpack.c.bf16 %v4648_v27, %v4646_v20  ;;  %4669 = vtanh.f32 %v3115_v26  ;;  %v3117_v3 = vpop.f32.mrb[149].mxu0 }
 0x378   : > { %v4652_v42 = vpop.eup %4651  ;;  %4671 = vtanh.f32 %v3117_v3  ;;  %v3119_v32 = vpop.f32.mrb[150].mxu0 }
 0x379   : > { %3772 = vst [vmem:[%s6386_s20 + $0x120] sm:$0xff] %v4351_v38  ;;  %v4352_v22 = vpack.c.bf16 %v4652_v42, %v4650_v19  ;;  %v4654_v45 = vpop.eup %4653  ;;  %4673 = vtanh.f32 %v3119_v32  ;;  %v3121_v13 = vpop.f32.mrb[151].mxu0 }
 0x37a   : > { %v4656_v61 = vpop.eup %4655  ;;  %4675 = vtanh.f32 %v3121_v13 }
 0x37b   : > { %3773 = vst [vmem:[%s6386_s20 + $0x128] sm:$0xff] %v4352_v22  ;;  %v4658_v30 = vpop.eup %4657  ;;  %v4353_v46 = vpack.c.bf16 %v4656_v61, %v4654_v45 }
 0x37c   : > { %v4660_v23 = vpop.eup %4659 }
 0x37d   : > { %3774 = vst [vmem:[%s6386_s20 + $0x130] sm:$0xff] %v4353_v46  ;;  %v4354_v34 = vpack.c.bf16 %v4660_v23, %v4658_v30  ;;  %v4662_v49 = vpop.eup %4661 }
 0x37e   : > { %v4664_v29 = vpop.eup %4663  ;;  %v3125_v33 = vpop.f32.mrb[152].mxu0 }
 0x37f   : > { %3775 = vst [vmem:[%s6386_s20 + $0x138] sm:$0xff] %v4354_v34  ;;  %v4666_v14 = vpop.eup %4665  ;;  %v4355_v39 = vpack.c.bf16 %v4664_v29, %v4662_v49  ;;  %4677 = vtanh.f32 %v3125_v33  ;;  %v3127_v37 = vpop.f32.mrb[153].mxu0 }
 0x380   : > { %v4668_v2 = vpop.eup %4667  ;;  %4679 = vtanh.f32 %v3127_v37  ;;  %v3129_v7 = vpop.f32.mrb[154].mxu0 }
 0x381   : > { %3776 = vst [vmem:[%s6386_s20 + $0x140] sm:$0xff] %v4355_v39  ;;  %v4356_v31 = vpack.c.bf16 %v4668_v2, %v4666_v14  ;;  %v4670_v40 = vpop.eup %4669  ;;  %4681 = vtanh.f32 %v3129_v7  ;;  %v3131_v1 = vpop.f32.mrb[155].mxu0 }
 0x382   : > { %v4672_v50 = vpop.eup %4671  ;;  %4683 = vtanh.f32 %v3131_v1 }
 0x383   : > { %3777 = vst [vmem:[%s6386_s20 + $0x148] sm:$0xff] %v4356_v31  ;;  %v4674_v10 = vpop.eup %4673  ;;  %v4357_v57 = vpack.c.bf16 %v4672_v50, %v4670_v40 }
 0x384   : > { %v4676_v4 = vpop.eup %4675 }
 0x385   : > { %3778 = vst [vmem:[%s6386_s20 + $0x150] sm:$0xff] %v4357_v57  ;;  %v4358_v53 = vpack.c.bf16 %v4676_v4, %v4674_v10 }
 0x386   : > { %v3135_v12 = vpop.f32.mrb[156].mxu0 }
 0x387   : > { %3779 = vst [vmem:[%s6386_s20 + $0x158] sm:$0xff] %v4358_v53  ;;  %4685 = vtanh.f32 %v3135_v12  ;;  %v3137_v8 = vpop.f32.mrb[157].mxu0 }
 0x388   : > { %4687 = vtanh.f32 %v3137_v8  ;;  %v3139_v16 = vpop.f32.mrb[158].mxu0 }
 0x389   : > { %v4678_v48 = vpop.eup %4677  ;;  %4689 = vtanh.f32 %v3139_v16  ;;  %v3141_v58 = vpop.f32.mrb[159].mxu0 }
 0x38a   : > { %v4680_v52 = vpop.eup %4679  ;;  %4691 = vtanh.f32 %v3141_v58 }
 0x38b   : > { %v4682_v21 = vpop.eup %4681  ;;  %v4359_v25 = vpack.c.bf16 %v4680_v52, %v4678_v48 }
 0x38c   : > { %v4684_v28 = vpop.eup %4683 }
 0x38d   : > { %3780 = vst [vmem:[%s6386_s20 + $0x160] sm:$0xff] %v4359_v25  ;;  %v4360_v18 = vpack.c.bf16 %v4684_v28, %v4682_v21 }
 0x38e   : > { %v3145_v17 = vpop.f32.mrb[160].mxu0 }
 0x38f   : > { %3781 = vst [vmem:[%s6386_s20 + $0x168] sm:$0xff] %v4360_v18  ;;  %4693 = vtanh.f32 %v3145_v17  ;;  %v3147_v11 = vpop.f32.mrb[161].mxu0 }
 0x390   : > { %4695 = vtanh.f32 %v3147_v11  ;;  %v3149_v51 = vpop.f32.mrb[162].mxu0 }
 0x391   : > { %v4686_v62 = vpop.eup %4685  ;;  %4697 = vtanh.f32 %v3149_v51  ;;  %v3151_v36 = vpop.f32.mrb[163].mxu0 }
 0x392   : > { %v4688_v43 = vpop.eup %4687  ;;  %4699 = vtanh.f32 %v3151_v36 }
 0x393   : > { %v4690_v47 = vpop.eup %4689  ;;  %v4361_v63 = vpack.c.bf16 %v4688_v43, %v4686_v62 }
 0x394   : > { %v4692_v56 = vpop.eup %4691 }
 0x395   : > { %3782 = vst [vmem:[%s6386_s20 + $0x170] sm:$0xff] %v4361_v63  ;;  %v4362_v60 = vpack.c.bf16 %v4692_v56, %v4690_v47 }
 0x396   : > { %v3155_v54 = vpop.f32.mrb[164].mxu0 }
 0x397   : > { %3783 = vst [vmem:[%s6386_s20 + $0x178] sm:$0xff] %v4362_v60  ;;  %4701 = vtanh.f32 %v3155_v54  ;;  %v3157_v24 = vpop.f32.mrb[165].mxu0 }
 0x398   : > { %4703 = vtanh.f32 %v3157_v24  ;;  %v3159_v5 = vpop.f32.mrb[166].mxu0 }
 0x399   : > { %v4694_v9 = vpop.eup %4693  ;;  %4705 = vtanh.f32 %v3159_v5  ;;  %v3161_v35 = vpop.f32.mrb[167].mxu0 }
 0x39a   : > { %v4696_v0 = vpop.eup %4695  ;;  %4707 = vtanh.f32 %v3161_v35 }
 0x39b   : > { %v4698_v15 = vpop.eup %4697  ;;  %v4363_v20 = vpack.c.bf16 %v4696_v0, %v4694_v9 }
 0x39c   : > { %v4700_v6 = vpop.eup %4699 }
 0x39d   : > { %3784 = vst [vmem:[%s6386_s20 + $0x180] sm:$0xff] %v4363_v20  ;;  %v4364_v27 = vpack.c.bf16 %v4700_v6, %v4698_v15 }
 0x39e   : > { %v3165_v19 = vpop.f32.mrb[168].mxu0 }
 0x39f   : > { %3785 = vst [vmem:[%s6386_s20 + $0x188] sm:$0xff] %v4364_v27  ;;  %4709 = vtanh.f32 %v3165_v19  ;;  %v3167_v38 = vpop.f32.mrb[169].mxu0 }
 0x3a0   : > { %4711 = vtanh.f32 %v3167_v38  ;;  %v3169_v42 = vpop.f32.mrb[170].mxu0 }
 0x3a1   : > { %v4702_v22 = vpop.eup %4701  ;;  %4713 = vtanh.f32 %v3169_v42  ;;  %v3171_v59 = vpop.f32.mrb[171].mxu0 }
 0x3a2   : > { %v4704_v44 = vpop.eup %4703  ;;  %4715 = vtanh.f32 %v3171_v59 }
 0x3a3   : > { %v4706_v55 = vpop.eup %4705  ;;  %v4365_v45 = vpack.c.bf16 %v4704_v44, %v4702_v22 }
 0x3a4   : > { %v4708_v41 = vpop.eup %4707 }
 0x3a5   : > { %3786 = vst [vmem:[%s6386_s20 + $0x190] sm:$0xff] %v4365_v45  ;;  %v4366_v61 = vpack.c.bf16 %v4708_v41, %v4706_v55 }
 0x3a6   : > { %v3175_v30 = vpop.f32.mrb[172].mxu0 }
 0x3a7   : > { %3787 = vst [vmem:[%s6386_s20 + $0x198] sm:$0xff] %v4366_v61  ;;  %4717 = vtanh.f32 %v3175_v30  ;;  %v3177_v46 = vpop.f32.mrb[173].mxu0 }
 0x3a8   : > { %4719 = vtanh.f32 %v3177_v46  ;;  %v3179_v23 = vpop.f32.mrb[174].mxu0 }
 0x3a9   : > { %v4710_v34 = vpop.eup %4709  ;;  %4721 = vtanh.f32 %v3179_v23  ;;  %v3181_v26 = vpop.f32.mrb[175].mxu0 }
 0x3aa   : > { %v4712_v3 = vpop.eup %4711  ;;  %4723 = vtanh.f32 %v3181_v26 }
 0x3ab   : > { %v4714_v32 = vpop.eup %4713  ;;  %v4367_v49 = vpack.c.bf16 %v4712_v3, %v4710_v34 }
 0x3ac   : > { %v4716_v13 = vpop.eup %4715 }
 0x3ad   : > { %3788 = vst [vmem:[%s6386_s20 + $0x1a0] sm:$0xff] %v4367_v49  ;;  %v4368_v29 = vpack.c.bf16 %v4716_v13, %v4714_v32 }
 0x3ae   : > { %v3185_v14 = vpop.f32.mrb[176].mxu0 }
 0x3af   : > { %3789 = vst [vmem:[%s6386_s20 + $0x1a8] sm:$0xff] %v4368_v29  ;;  %4725 = vtanh.f32 %v3185_v14  ;;  %v3187_v39 = vpop.f32.mrb[177].mxu0 }
 0x3b0   : > { %4727 = vtanh.f32 %v3187_v39  ;;  %v3189_v2 = vpop.f32.mrb[178].mxu0 }
 0x3b1   : > { %v4718_v31 = vpop.eup %4717  ;;  %4729 = vtanh.f32 %v3189_v2  ;;  %v3191_v33 = vpop.f32.mrb[179].mxu0 }
 0x3b2   : > { %v4720_v37 = vpop.eup %4719  ;;  %4731 = vtanh.f32 %v3191_v33 }
 0x3b3   : > { %v4722_v7 = vpop.eup %4721  ;;  %v4369_v40 = vpack.c.bf16 %v4720_v37, %v4718_v31 }
 0x3b4   : > { %v4724_v1 = vpop.eup %4723 }
 0x3b5   : > { %3790 = vst [vmem:[%s6386_s20 + $0x1b0] sm:$0xff] %v4369_v40  ;;  %v4370_v50 = vpack.c.bf16 %v4724_v1, %v4722_v7 }
 0x3b6   : > { %v3195_v10 = vpop.f32.mrb[180].mxu0 }
 0x3b7   : > { %3791 = vst [vmem:[%s6386_s20 + $0x1b8] sm:$0xff] %v4370_v50  ;;  %4733 = vtanh.f32 %v3195_v10  ;;  %v3197_v57 = vpop.f32.mrb[181].mxu0 }
 0x3b8   : > { %4735 = vtanh.f32 %v3197_v57  ;;  %v3199_v4 = vpop.f32.mrb[182].mxu0 }
 0x3b9   : > { %v4726_v53 = vpop.eup %4725  ;;  %4737 = vtanh.f32 %v3199_v4  ;;  %v3201_v12 = vpop.f32.mrb[183].mxu0 }
 0x3ba   : > { %v4728_v8 = vpop.eup %4727  ;;  %4739 = vtanh.f32 %v3201_v12 }
 0x3bb   : > { %v4730_v16 = vpop.eup %4729  ;;  %v4371_v48 = vpack.c.bf16 %v4728_v8, %v4726_v53 }
 0x3bc   : > { %v4732_v58 = vpop.eup %4731 }
 0x3bd   : > { %3792 = vst [vmem:[%s6386_s20 + $0x1c0] sm:$0xff] %v4371_v48  ;;  %v4372_v52 = vpack.c.bf16 %v4732_v58, %v4730_v16 }
 0x3be   : > { %v3205_v21 = vpop.f32.mrb[184].mxu0 }
 0x3bf   : > { %3793 = vst [vmem:[%s6386_s20 + $0x1c8] sm:$0xff] %v4372_v52  ;;  %4741 = vtanh.f32 %v3205_v21  ;;  %v3207_v25 = vpop.f32.mrb[185].mxu0 }
 0x3c0   : > { %4743 = vtanh.f32 %v3207_v25  ;;  %v3209_v28 = vpop.f32.mrb[186].mxu0 }
 0x3c1   : > { %v4734_v18 = vpop.eup %4733  ;;  %4745 = vtanh.f32 %v3209_v28  ;;  %v3211_v17 = vpop.f32.mrb[187].mxu0 }
 0x3c2   : > { %v4736_v11 = vpop.eup %4735  ;;  %4747 = vtanh.f32 %v3211_v17 }
 0x3c3   : > { %v4738_v51 = vpop.eup %4737  ;;  %v4373_v62 = vpack.c.bf16 %v4736_v11, %v4734_v18 }
 0x3c4   : > { %v4740_v36 = vpop.eup %4739 }
 0x3c5   : > { %3794 = vst [vmem:[%s6386_s20 + $0x1d0] sm:$0xff] %v4373_v62  ;;  %v4374_v43 = vpack.c.bf16 %v4740_v36, %v4738_v51 }
 0x3c6   : > { %v3215_v47 = vpop.f32.mrb[188].mxu0 }
 0x3c7   : > { %3795 = vst [vmem:[%s6386_s20 + $0x1d8] sm:$0xff] %v4374_v43  ;;  %4749 = vtanh.f32 %v3215_v47  ;;  %v3217_v63 = vpop.f32.mrb[189].mxu0 }
 0x3c8   : > { %4751 = vtanh.f32 %v3217_v63  ;;  %v3219_v56 = vpop.f32.mrb[190].mxu0 }
 0x3c9   : > { %v4742_v60 = vpop.eup %4741  ;;  %4753 = vtanh.f32 %v3219_v56  ;;  %v3221_v54 = vpop.f32.mrb[191].mxu0 }
 0x3ca   : > { %v4744_v24 = vpop.eup %4743  ;;  %4755 = vtanh.f32 %v3221_v54 }
 0x3cb   : > { %v4746_v5 = vpop.eup %4745  ;;  %v4375_v9 = vpack.c.bf16 %v4744_v24, %v4742_v60 }
 0x3cc   : > { %v4748_v35 = vpop.eup %4747 }
 0x3cd   : > { %3796 = vst [vmem:[%s6386_s20 + $0x1e0] sm:$0xff] %v4375_v9  ;;  %v4376_v0 = vpack.c.bf16 %v4748_v35, %v4746_v5 }
 0x3cf   : > { %3797 = vst [vmem:[%s6386_s20 + $0x1e8] sm:$0xff] %v4376_v0 }
 0x3d1   : > { %v4750_v15 = vpop.eup %4749 }
 0x3d2   : > { %v4752_v20 = vpop.eup %4751 }
 0x3d3   : > { %v4754_v6 = vpop.eup %4753  ;;  %v4377_v27 = vpack.c.bf16 %v4752_v20, %v4750_v15 }
 0x3d4   : > { %v4756_v19 = vpop.eup %4755 }
 0x3d5   : > { %3798 = vst [vmem:[%s6386_s20 + $0x1f0] sm:$0xff] %v4377_v27  ;;  %v4378_v38 = vpack.c.bf16 %v4756_v19, %v4754_v6 }
 0x3d7   : > { %3799 = vst [vmem:[%s6386_s20 + $0x1f8] sm:$0xff] %v4378_v38 }
 0x3d8   : > { %4862 = shalt.err (!%p4859_p9)
}
 0x3d9   : > { %s4863_s20 = scalar_lea.hbm %s6498_s16, 8192  ;;  %s4867_s12 = scalar_lea.hbm %s6550_s5, 16384 }
 0x3da   : > { %p4864_p10 = scmp.ne.s32.totalorder %s6498_s16, %s4863_s20  ;;  %p4868_p13 = scmp.lt.u32.totalorder %s6498_s16, %s6550_s5 }
 0x3db   : > { %p4869_p0 = scmp.lt.u32.totalorder %s4867_s12, %s4863_s20  ;;  %p4871_p2 = scmp.lt.u32.totalorder %s4863_s20, %s6498_s16 }
 0x3dc   : > { %p4865_p11 = pnand %p4864_p10, %p4998_p5 }
 0x3dd   : > { %p4870_p1 = por %p4869_p0, %p4868_p13 }
 0x3de   : > { %p4866_p12 = pneg %p4865_p11 }
 0x3df   : > { %p4872_p3 = por %p4871_p2, %p4870_p1 }
 0x3e1   : > { %p4873_p4 = pnand %p4872_p3, %p4866_p12 }
 0x3e3   : > { %4876 = shalt.err (!%p4873_p4)
}
 0x3e4   : > { %s4923_s15 = smov 128   ;;  %s4924_s14 = smov 8  }
 0x3e5   : > { %4401 = dma.vmem_to_hbm [thread:$0]  (%p4998_p5), %s6500_s10, 8192, %s6498_s16, %s3801_s17, %s4923_s15, %s4923_s15, %s4924_s14  }
 0x3e6 PF: > { %p4412_p7 = scmp.ge.s32.totalorder %s4915_s24, 2  ;;  %s3852_s25 = sand.u32 1, %s4903_s21  }
 0x3e7   : > { %s3853_s18 = scalar_lea.sflag [#allocation3], %s3852_s25 }
 0x3e8   : > { %p4406_p8 = pnand %p4412_p7, %p5002_p6 }
 0x3ea   : > { %4894 = dma.done.wait (!%p4406_p8), %s3853_s18, 8192  }
 0x3eb   : > { %4896 = vsyncadd (!%p4406_p8), %s3853_s18, 4294959104  ;;  %s3862_s19 = scalar_lea.sflag [#allocation5], %s3852_s25 }
 0x3ec   : > { %4898 = dma.done.wait (!%p4406_p8), %s3862_s19, 16384  }
 0x3ed   : > { %4900 = vsyncadd (!%p4406_p8), %s3862_s19, 4294950912  ;;  %p20_p5 = scmp.ge.s32.totalorder %s4985_s27, 4   ;;  %s6554_s21 = smov %s4907_s22 }
 0x3ee   : > { %s6555_s22 = smov %s4911_s23  ;;  %s6556_s23 = smov %s4996_s30 }
 0x3ef   : > { %s6557_s24 = smov %s4985_s27  ;;  %22 = sbr.rel (!%p20_p5) target bundleno = 5 (0x5), region = 95 }
 0x3f6   :  { %3867 = vsyncpa [#allocation3], 1 }
 0x3f7   :  { %3869 = vsyncpa [#allocation3 + $0x1], 1 }
 0x3f8   :  { %3870 = vsyncpa [#allocation5], 1 }
 0x3f9   :  { %3872 = vsyncpa [#allocation5 + $0x1], 1 }

</bundles_post_ra>
